<compile_context>
chip_gen: v6e
topology: v6e:2x2x1
jax: 0.10.0
libtpu: 0.0.40
codegen_flags: <defaults>
</compile_context>

<pallas_src>
import numpy as np
import jax
import jax.numpy as jnp
from jax.experimental import pallas as pl
from jax.experimental.pallas import tpu as pltpu

# ----------------------- static model configuration -----------------------
B = 2              # batch
S = 8              # sequence length
V = 50             # vocab size
D = 32             # word embedding dim (word_dim)
HDIM = 64          # word_hidden_dim (bidirectional output dim)
R = HDIM // 2      # per-direction LSTM hidden size
FILTER_SIZES = (2, 3, 4, 5)
C = 32             # conv out_channels
EMBED_SIZE = 32    # conv kernel width
WOUT = HDIM - EMBED_SIZE + 1        # 33 conv output width
PADW = 1152                          # WOUT*C=1056 padded to 9*128 (lane dense)
F1, F2, F3 = 384, 256, 128           # fc widths 300/200/50 padded to x*128
BN_EPS = 1e-5
BN_SCALE = float(1.0 / np.sqrt(1.0 + BN_EPS))   # eval BatchNorm2d, fresh stats
TOKPAD = 128        # two-hot lane width
BWD_OFF = 64        # lane offset of the backward-direction token one-hot

assert V <= BWD_OFF and BWD_OFF + V <= TOKPAD


def _rows_for_filter(f):
    # Conv2d input height == 1, padding=(f//2, 0): output row i only sees
    # kernel row kh = f//2 - i (all other rows hit zero padding).
    pad = f // 2
    hout = 2 * pad - f + 2
    return [pad - i for i in range(hout)]


ROWS_PER_FILTER = tuple(len(_rows_for_filter(f)) for f in FILTER_SIZES)  # (2,1,2,1)
NROWS = sum(ROWS_PER_FILTER)                                             # 6


# ------------------------------ fused kernel ------------------------------
def birnn_kernel(meta_ref, lstm_ref,
                 convmat_hbm, summat_hbm, w1_hbm, w2_hbm, w3_hbm, bias_hbm,
                 out_ref,
                 conv_buf, summat_buf, w1_buf, w2_buf, w3_buf, bias_buf, sem):
    # ---- kick off DMAs of late-used conv/FC weights; they finish under the
    #      serial LSTM recurrence and are only waited on right before use. ----
    conv_cp = pltpu.make_async_copy(convmat_hbm, conv_buf, sem.at[0])
    sum_cp = pltpu.make_async_copy(summat_hbm, summat_buf, sem.at[1])
    w1_cp = pltpu.make_async_copy(w1_hbm, w1_buf, sem.at[2])
    w2_cp = pltpu.make_async_copy(w2_hbm, w2_buf, sem.at[3])
    w3_cp = pltpu.make_async_copy(w3_hbm, w3_buf, sem.at[4])
    bias_cp = pltpu.make_async_copy(bias_hbm, bias_buf, sem.at[5])
    conv_cp.start()
    sum_cp.start()
    w1_cp.start()
    w2_cp.start()
    w3_cp.start()
    bias_cp.start()

    # ---- fused embedding lookup + fwd/bwd input projections + bias:
    #      one two-hot table matmul (K=128). Rows are time-major (t*B + b). ----
    meta = meta_ref[...]                                           # (S*B, 4) int32
    lane128 = jax.lax.broadcasted_iota(jnp.int32, (S * B, TOKPAD), 1)
    two_hot = jnp.where((meta[:, 0:1] == lane128) | (meta[:, 1:2] == lane128),
                        1.0, 0.0).astype(jnp.float32)              # (S*B, 128)
    gate_table = lstm_ref[0:TOKPAD, :]                             # (128, 8R)
    whh = lstm_ref[TOKPAD:TOKPAD + 2 * R, :]                       # (2R, 8R) block-diag
    gate_in_all = jnp.dot(two_hot, gate_table,
                          preferred_element_type=jnp.float32)      # (S*B, 8R)

    lens = meta[0:B, 2:3]                                          # (B, 1) int32
    lane = jax.lax.broadcasted_iota(jnp.int32, (B, 2 * R), 1)
    is_fwd_lane = lane < R

    # ---- interleaved fwd/bwd recurrence (fwd step t, bwd step S-1-t) ----
    # Gate-column layout (blocks of width R): [i_f,i_b, f_f,f_b, o_f,o_b, g_f,g_b]
    h = jnp.zeros((B, 2 * R), jnp.float32)                         # [h_fwd | h_bwd]
    c = jnp.zeros((B, 2 * R), jnp.float32)
    for t in range(S):
        tb = S - 1 - t
        gates = gate_in_all[t * B:(t + 1) * B, :] + jnp.dot(
            h, whh, preferred_element_type=jnp.float32)            # (B, 8R)
        sig = jax.nn.sigmoid(gates[:, :6 * R])                     # i,f,o both dirs
        i_g = sig[:, 0:2 * R]
        f_g = sig[:, 2 * R:4 * R]
        o_g = sig[:, 4 * R:6 * R]
        g_g = jnp.tanh(gates[:, 6 * R:8 * R])
        c_new = f_g * c + i_g * g_g
        h_new = o_g * jnp.tanh(c_new)
        # pack_padded_sequence semantics: padded steps never update h/c.
        step_t = jnp.where(is_fwd_lane, t, tb)                     # (B, 2R) int32
        upd = step_t < lens                                        # (B, 2R) bool
        h = jnp.where(upd, h_new, h)
        c = jnp.where(upd, c_new, c)

    feat = h                                                       # (B, HDIM) = [h_f|h_b]

    # ---- CNNLayer: stacked Toeplitz conv matmul + ReLU, per-row mean & max ----
    conv_cp.wait()
    sum_cp.wait()
    conv = jnp.dot(feat.astype(jnp.bfloat16), conv_buf[...],
                   preferred_element_type=jnp.float32)             # (B, NROWS*PADW)
    conv = jnp.maximum(conv, 0.0).astype(jnp.bfloat16)
    summat = summat_buf[...]                                       # (PADW, C) bf16; BN/WOUT folded
    means = []
    for r in range(NROWS):
        blk = conv[:, r * PADW:(r + 1) * PADW]                     # lane-aligned slice
        means.append(jnp.dot(blk, summat,
                             preferred_element_type=jnp.float32))  # (B, C)
    pooled = []
    idx = 0
    for nrows in ROWS_PER_FILTER:                                  # max over conv height
        g = means[idx]
        for k in range(1, nrows):
            g = jnp.maximum(g, means[idx + k])
        pooled.append(g)
        idx += nrows
    x = jnp.concatenate(pooled, axis=-1)                           # (B, 4*C) = (B, 128)

    # ---- fc1..fc4 (dropouts identity in eval), bf16 weights, f32 accumulate ----
    w1_cp.wait()
    w2_cp.wait()
    w3_cp.wait()
    bias_cp.wait()
    bias = bias_buf[...]                                           # (8, F1) f32 pack
    b1 = bias[0:1, 0:F1]
    b2 = bias[1:2, 0:F2]
    b3 = bias[2:3, 0:F3]
    b4 = bias[3:4, 0:1]
    w4row = bias[4:5, 0:F3]                                        # fc4 weight as a row
    x = jnp.maximum(jnp.dot(x.astype(jnp.bfloat16), w1_buf[...],
                            preferred_element_type=jnp.float32) + b1, 0.0)
    x = jnp.maximum(jnp.dot(x.astype(jnp.bfloat16), w2_buf[...],
                            preferred_element_type=jnp.float32) + b2, 0.0)
    x = jnp.maximum(jnp.dot(x.astype(jnp.bfloat16), w3_buf[...],
                            preferred_element_type=jnp.float32) + b3, 0.0)
    out_ref[...] = jnp.sum(x * w4row, axis=-1, keepdims=True) + b4  # (B, 1)


# ------------------------------ call wrapper ------------------------------
_VMEM = pl.BlockSpec(memory_space=pltpu.MemorySpace.VMEM)
_ANY = pl.BlockSpec(memory_space=pl.ANY)


def birnn_pallas(word_tensor, word_lengths, kp):
    tok = word_tensor.astype(jnp.int32)                            # (B, S)
    tok_fwd = tok.T.reshape(S * B, 1)                              # row t*B+b = tok[b, t]
    tok_bwd = tok[:, ::-1].T.reshape(S * B, 1) + BWD_OFF           # row t*B+b = tok[b, S-1-t]+64
    lens = word_lengths.astype(jnp.int32).reshape(B, 1)
    lens_col = jnp.concatenate(
        [lens, jnp.zeros((S * B - B, 1), jnp.int32)], axis=0)      # lens stored in rows 0..B-1
    zeros_col = jnp.zeros((S * B, 1), jnp.int32)
    meta = jnp.concatenate([tok_fwd, tok_bwd, lens_col, zeros_col], axis=1)  # (S*B, 4)

    return pl.pallas_call(
        birnn_kernel,
        out_shape=jax.ShapeDtypeStruct((B, 1), jnp.float32),
        in_specs=[_VMEM, _VMEM, _ANY, _ANY, _ANY, _ANY, _ANY, _ANY],
        out_specs=_VMEM,
        scratch_shapes=[
            pltpu.VMEM((HDIM, NROWS * PADW), jnp.bfloat16),   # convmat buffer
            pltpu.VMEM((PADW, C), jnp.bfloat16),              # summat buffer
            pltpu.VMEM((4 * C, F1), jnp.bfloat16),            # fc1 weights
            pltpu.VMEM((F1, F2), jnp.bfloat16),               # fc2 weights
            pltpu.VMEM((F2, F3), jnp.bfloat16),               # fc3 weights
            pltpu.VMEM((8, F1), jnp.float32),                 # bias / fc4 pack
            pltpu.SemaphoreType.DMA((6,)),
        ],
    )(meta, kp["lstm_slab"],
      kp["convmat"], kp["summat"], kp["w1"], kp["w2"], kp["w3"], kp["bias_pack"])


birnn_forward = jax.jit(birnn_pallas)


# ------------------------- parameter construction -------------------------
def _uniform(key, shape, scale):
    return jax.random.uniform(key, shape, jnp.float32, -scale, scale)


def init_raw_params(key):
    """Raw parameters in PyTorch layouts (used by the reference and preprocessing)."""
    keys = jax.random.split(key, 24)
    ki = iter(keys)
    raw = {}
    raw["emb"] = _uniform(next(ki), (V, D), float(np.sqrt(3.0 / D)))  # random_embedding
    s = 1.0 / np.sqrt(R)
    for d in ("f", "b"):                      # gate row order [i, f, g, o]
        raw[f"wih_{d}"] = _uniform(next(ki), (4 * R, D), s)
        raw[f"whh_{d}"] = _uniform(next(ki), (4 * R, R), s)
        raw[f"bih_{d}"] = _uniform(next(ki), (4 * R,), s)
        raw[f"bhh_{d}"] = _uniform(next(ki), (4 * R,), s)
    conv_w = []
    for f in FILTER_SIZES:                    # Conv2d(1, C, (f, EMBED_SIZE), bias=False)
        kf = 1.0 / np.sqrt(1 * f * EMBED_SIZE)
        conv_w.append(_uniform(next(ki), (C, 1, f, EMBED_SIZE), float(kf)))
    raw["conv_w"] = conv_w

    def linear(kw, kb, fan_in, fan_out):
        sc = 1.0 / np.sqrt(fan_in)
        return _uniform(kw, (fan_out, fan_in), sc), _uniform(kb, (fan_out,), sc)

    raw["fc1_w"], raw["fc1_b"] = linear(next(ki), next(ki), 4 * C, 300)
    raw["fc2_w"], raw["fc2_b"] = linear(next(ki), next(ki), 300, 200)
    raw["fc3_w"], raw["fc3_b"] = linear(next(ki), next(ki), 200, 50)
    raw["fc4_w"], raw["fc4_b"] = linear(next(ki), next(ki), 50, 1)
    return raw


def build_kernel_params(raw):
    """Preprocess raw weights into the lane-friendly layouts the kernel expects."""
    def n(x):
        return np.asarray(x, np.float32)

    # Bidirectional LSTM: interleaved gate layout (blocks of width R):
    #   [i_f, i_b, f_f, f_b, o_f, o_b, g_f, g_b]
    gate_to_block = {0: 0, 1: 2, 2: 6, 3: 4}       # torch gate (i,f,g,o) -> fwd block
    wih_f_big = np.zeros((D, 8 * R), np.float32)
    wih_b_big = np.zeros((D, 8 * R), np.float32)
    whh_big = np.zeros((2 * R, 8 * R), np.float32)
    b_big = np.zeros((1, 8 * R), np.float32)
    for g, blk_f in gate_to_block.items():
        blk_b = blk_f + 1
        rows = slice(g * R, (g + 1) * R)
        wih_f_big[:, blk_f * R:(blk_f + 1) * R] = n(raw["wih_f"])[rows].T
        wih_b_big[:, blk_b * R:(blk_b + 1) * R] = n(raw["wih_b"])[rows].T
        whh_big[:R, blk_f * R:(blk_f + 1) * R] = n(raw["whh_f"])[rows].T
        whh_big[R:, blk_b * R:(blk_b + 1) * R] = n(raw["whh_b"])[rows].T
        b_big[0, blk_f * R:(blk_f + 1) * R] = n(raw["bih_f"])[rows] + n(raw["bhh_f"])[rows]
        b_big[0, blk_b * R:(blk_b + 1) * R] = n(raw["bih_b"])[rows] + n(raw["bhh_b"])[rows]

    # Two-hot gate table: rows 0..V-1 -> emb @ Wih_fwd, rows 64..64+V-1 ->
    # emb @ Wih_bwd + bias (both directions' biases folded once per step).
    emb = n(raw["emb"])                                  # (V, D)
    gate_table = np.zeros((TOKPAD, 8 * R), np.float32)
    gate_table[:V, :] = emb @ wih_f_big
    gate_table[BWD_OFF:BWD_OFF + V, :] = emb @ wih_b_big + b_big
    lstm_slab = np.concatenate([gate_table, whh_big], axis=0)   # (192, 8R) f32

    # Conv-as-matmul: (HDIM, NROWS*PADW) stacking the 6 reachable kernel rows.
    blocks = []
    for f_idx, fsz in enumerate(FILTER_SIZES):
        wf = n(raw["conv_w"][f_idx])                     # (C, 1, fsz, EMBED_SIZE)
        for kh in _rows_for_filter(fsz):
            krow = wf[:, 0, kh, :]                       # (C, EMBED_SIZE)
            M = np.zeros((HDIM, PADW), np.float32)
            for w in range(WOUT):
                for kw in range(EMBED_SIZE):
                    M[w + kw, w * C:(w + 1) * C] = krow[:, kw]
            blocks.append(M)
    convmat = np.concatenate(blocks, axis=1)             # (HDIM, NROWS*PADW)

    # Mean-over-width + eval BatchNorm scale folded into one matrix (bf16).
    summat = np.zeros((PADW, C), np.float32)
    summat[:WOUT * C, :] = np.tile(np.eye(C, dtype=np.float32),
                                   (WOUT, 1)) * (BN_SCALE / WOUT)

    # Lane-padded FC stack (zero padding is exact: padded lanes stay 0 through ReLU).
    def pad_fc(w, b, pin, pout):
        wn, bn = n(w), n(b)
        wt = np.zeros((pin, pout), np.float32)
        wt[:wn.shape[1], :wn.shape[0]] = wn.T
        bp = np.zeros((pout,), np.float32)
        bp[:bn.shape[0]] = bn
        return wt, bp

    w1, b1 = pad_fc(raw["fc1_w"], raw["fc1_b"], 4 * C, F1)
    w2, b2 = pad_fc(raw["fc2_w"], raw["fc2_b"], F1, F2)
    w3, b3 = pad_fc(raw["fc3_w"], raw["fc3_b"], F2, F3)

    bias_pack = np.zeros((8, F1), np.float32)            # b1 | b2 | b3 | b4 | fc4 weights
    bias_pack[0, :F1] = b1
    bias_pack[1, :F2] = b2
    bias_pack[2, :F3] = b3
    bias_pack[3, 0] = n(raw["fc4_b"])[0]
    bias_pack[4, :n(raw["fc4_w"]).shape[1]] = n(raw["fc4_w"])[0, :]

    return {
        "lstm_slab": jnp.asarray(lstm_slab),
        "convmat": jnp.asarray(convmat, dtype=jnp.bfloat16),
        "summat": jnp.asarray(summat, dtype=jnp.bfloat16),
        "w1": jnp.asarray(w1, dtype=jnp.bfloat16),
        "w2": jnp.asarray(w2, dtype=jnp.bfloat16),
        "w3": jnp.asarray(w3, dtype=jnp.bfloat16),
        "bias_pack": jnp.asarray(bias_pack),
    }


# ------------------------- pure-JAX reference (f32) -------------------------
def _q(x):
    # bf16 round-trip, matching the precision of the kernel's bf16 MXU inputs.
    return jnp.asarray(x).astype(jnp.bfloat16).astype(jnp.float32)


def birnn_reference(word_tensor, word_lengths, raw):
    embs = jnp.asarray(raw["emb"])[word_tensor]             # (B, S, D)
    lens = word_lengths.astype(jnp.int32)[:, None]          # (B, 1)

    def run_dir(wih, whh, bih, bhh, reverse):
        h = jnp.zeros((B, R), jnp.float32)
        c = jnp.zeros((B, R), jnp.float32)
        bias = bih + bhh
        steps = range(S - 1, -1, -1) if reverse else range(S)
        for t in steps:
            x_t = embs[:, t, :]
            gates = x_t @ wih.T + h @ whh.T + bias          # (B, 4R), gate order i,f,g,o
            i = jax.nn.sigmoid(gates[:, 0:R])
            f = jax.nn.sigmoid(gates[:, R:2 * R])
            g = jnp.tanh(gates[:, 2 * R:3 * R])
            o = jax.nn.sigmoid(gates[:, 3 * R:4 * R])
            c_new = f * c + i * g
            h_new = o * jnp.tanh(c_new)
            m = lens > t
            h = jnp.where(m, h_new, h)
            c = jnp.where(m, c_new, c)
        return h

    h_f = run_dir(raw["wih_f"], raw["whh_f"], raw["bih_f"], raw["bhh_f"], False)
    h_b = run_dir(raw["wih_b"], raw["whh_b"], raw["bih_b"], raw["bhh_b"], True)
    feat = jnp.concatenate([h_f, h_b], axis=-1)             # (B, HDIM)

    featq = _q(feat)
    windows = jnp.stack([featq[:, w:w + EMBED_SIZE] for w in range(WOUT)], axis=1)  # (B,WOUT,32)
    scale_q = _q(jnp.asarray(BN_SCALE / WOUT, jnp.float32))  # matches bf16 summat entries
    pooled = []
    for f_idx, fsz in enumerate(FILTER_SIZES):
        wf = _q(raw["conv_w"][f_idx])                       # (C, 1, fsz, 32)
        rows = []
        for kh in _rows_for_filter(fsz):
            cvv = jnp.einsum("bwk,ck->bwc", windows, wf[:, 0, kh, :])
            cvv = _q(jnp.maximum(cvv, 0.0))                 # ReLU, bf16 conv slab
            rows.append(jnp.sum(cvv, axis=1) * scale_q)     # mean*BN over width -> (B, C)
        g = rows[0]
        for other in rows[1:]:
            g = jnp.maximum(g, other)                       # max_pool1d over conv height
        pooled.append(g)
    x = jnp.concatenate(pooled, axis=-1)                    # (B, 4*C)

    x = jnp.maximum(_q(x) @ _q(raw["fc1_w"]).T + raw["fc1_b"], 0.0)
    x = jnp.maximum(_q(x) @ _q(raw["fc2_w"]).T + raw["fc2_b"], 0.0)
    x = jnp.maximum(_q(x) @ _q(raw["fc3_w"]).T + raw["fc3_b"], 0.0)
    return x @ raw["fc4_w"].T + raw["fc4_b"]                # (B, 1)


# ----------------------------------- main -----------------------------------
if __name__ == "__main__":
    key = jax.random.PRNGKey(0)
    pkey, dkey = jax.random.split(key)
    raw = init_raw_params(pkey)
    kp = build_kernel_params(raw)

    # deterministic inputs; lengths sorted descending (pack_padded_sequence convention)
    lengths = jnp.array([S, S - 3], dtype=jnp.int32)                  # (B,)
    tok = jax.random.randint(dkey, (B, S), 1, V, dtype=jnp.int32)
    pos = jnp.arange(S)[None, :]
    word_tensor = jnp.where(pos < lengths[:, None], tok, 0)           # 0 = pad id

    out = birnn_forward(word_tensor, lengths, kp)
    out = jax.block_until_ready(out)
    assert out.shape == (B, 1)

    ref = birnn_reference(word_tensor, lengths, raw)
    np.testing.assert_allclose(np.asarray(out), np.asarray(ref), rtol=2e-2, atol=2e-2)
    print("KERNEL_OK")
</pallas_src>

<mosaic_0001>
module attributes {stable_mosaic.version = 11 : i64} {
  func.func @birnn_kernel(%arg0: memref<16x4xi32, #tpu.memory_space<vmem>>, %arg1: memref<192x256xf32, #tpu.memory_space<vmem>>, %arg2: memref<64x6912xbf16, #tpu.memory_space<any>>, %arg3: memref<1152x32xbf16, #tpu.memory_space<any>>, %arg4: memref<128x384xbf16, #tpu.memory_space<any>>, %arg5: memref<384x256xbf16, #tpu.memory_space<any>>, %arg6: memref<256x128xbf16, #tpu.memory_space<any>>, %arg7: memref<8x384xf32, #tpu.memory_space<any>>, %arg8: memref<2x1xf32, #tpu.memory_space<vmem>>, %arg9: memref<64x6912xbf16, #tpu.memory_space<vmem>>, %arg10: memref<1152x32xbf16, #tpu.memory_space<vmem>>, %arg11: memref<128x384xbf16, #tpu.memory_space<vmem>>, %arg12: memref<384x256xbf16, #tpu.memory_space<vmem>>, %arg13: memref<256x128xbf16, #tpu.memory_space<vmem>>, %arg14: memref<8x384xf32, #tpu.memory_space<vmem>>, %arg15: memref<6x!tpu.dma_semaphore, #tpu.memory_space<semaphore_mem>>) attributes {dimension_semantics = [], scalar_prefetch = 0 : i64, scratch_operands = 7 : i64, tpu.core_type = #tpu.core_type<tc>} {
    %c0_i32 = arith.constant 0 : i32
    %0 = tpu.memref_slice %arg15[%c0_i32] : memref<6x!tpu.dma_semaphore, #tpu.memory_space<semaphore_mem>> -> memref<1x!tpu.dma_semaphore, #tpu.memory_space<semaphore_mem>>
    %1 = tpu.memref_squeeze %0 : memref<1x!tpu.dma_semaphore, #tpu.memory_space<semaphore_mem>> -> memref<!tpu.dma_semaphore, #tpu.memory_space<semaphore_mem>>
    tpu.enqueue_dma source(%arg2 : memref<64x6912xbf16, #tpu.memory_space<any>>) target(%arg9 : memref<64x6912xbf16, #tpu.memory_space<vmem>>) target_semaphore(%1 : memref<!tpu.dma_semaphore, #tpu.memory_space<semaphore_mem>>)
    %c1_i32 = arith.constant 1 : i32
    %2 = tpu.memref_slice %arg15[%c1_i32] : memref<6x!tpu.dma_semaphore, #tpu.memory_space<semaphore_mem>> -> memref<1x!tpu.dma_semaphore, #tpu.memory_space<semaphore_mem>>
    %3 = tpu.memref_squeeze %2 : memref<1x!tpu.dma_semaphore, #tpu.memory_space<semaphore_mem>> -> memref<!tpu.dma_semaphore, #tpu.memory_space<semaphore_mem>>
    tpu.enqueue_dma source(%arg3 : memref<1152x32xbf16, #tpu.memory_space<any>>) target(%arg10 : memref<1152x32xbf16, #tpu.memory_space<vmem>>) target_semaphore(%3 : memref<!tpu.dma_semaphore, #tpu.memory_space<semaphore_mem>>)
    %c2_i32 = arith.constant 2 : i32
    %4 = tpu.memref_slice %arg15[%c2_i32] : memref<6x!tpu.dma_semaphore, #tpu.memory_space<semaphore_mem>> -> memref<1x!tpu.dma_semaphore, #tpu.memory_space<semaphore_mem>>
    %5 = tpu.memref_squeeze %4 : memref<1x!tpu.dma_semaphore, #tpu.memory_space<semaphore_mem>> -> memref<!tpu.dma_semaphore, #tpu.memory_space<semaphore_mem>>
    tpu.enqueue_dma source(%arg4 : memref<128x384xbf16, #tpu.memory_space<any>>) target(%arg11 : memref<128x384xbf16, #tpu.memory_space<vmem>>) target_semaphore(%5 : memref<!tpu.dma_semaphore, #tpu.memory_space<semaphore_mem>>)
    %c3_i32 = arith.constant 3 : i32
    %6 = tpu.memref_slice %arg15[%c3_i32] : memref<6x!tpu.dma_semaphore, #tpu.memory_space<semaphore_mem>> -> memref<1x!tpu.dma_semaphore, #tpu.memory_space<semaphore_mem>>
    %7 = tpu.memref_squeeze %6 : memref<1x!tpu.dma_semaphore, #tpu.memory_space<semaphore_mem>> -> memref<!tpu.dma_semaphore, #tpu.memory_space<semaphore_mem>>
    tpu.enqueue_dma source(%arg5 : memref<384x256xbf16, #tpu.memory_space<any>>) target(%arg12 : memref<384x256xbf16, #tpu.memory_space<vmem>>) target_semaphore(%7 : memref<!tpu.dma_semaphore, #tpu.memory_space<semaphore_mem>>)
    %c4_i32 = arith.constant 4 : i32
    %8 = tpu.memref_slice %arg15[%c4_i32] : memref<6x!tpu.dma_semaphore, #tpu.memory_space<semaphore_mem>> -> memref<1x!tpu.dma_semaphore, #tpu.memory_space<semaphore_mem>>
    %9 = tpu.memref_squeeze %8 : memref<1x!tpu.dma_semaphore, #tpu.memory_space<semaphore_mem>> -> memref<!tpu.dma_semaphore, #tpu.memory_space<semaphore_mem>>
    tpu.enqueue_dma source(%arg6 : memref<256x128xbf16, #tpu.memory_space<any>>) target(%arg13 : memref<256x128xbf16, #tpu.memory_space<vmem>>) target_semaphore(%9 : memref<!tpu.dma_semaphore, #tpu.memory_space<semaphore_mem>>)
    %c5_i32 = arith.constant 5 : i32
    %10 = tpu.memref_slice %arg15[%c5_i32] : memref<6x!tpu.dma_semaphore, #tpu.memory_space<semaphore_mem>> -> memref<1x!tpu.dma_semaphore, #tpu.memory_space<semaphore_mem>>
    %11 = tpu.memref_squeeze %10 : memref<1x!tpu.dma_semaphore, #tpu.memory_space<semaphore_mem>> -> memref<!tpu.dma_semaphore, #tpu.memory_space<semaphore_mem>>
    tpu.enqueue_dma source(%arg7 : memref<8x384xf32, #tpu.memory_space<any>>) target(%arg14 : memref<8x384xf32, #tpu.memory_space<vmem>>) target_semaphore(%11 : memref<!tpu.dma_semaphore, #tpu.memory_space<semaphore_mem>>)
    %c0 = arith.constant 0 : index
    %c0_0 = arith.constant 0 : index
    %12 = vector.load %arg0[%c0, %c0_0] : memref<16x4xi32, #tpu.memory_space<vmem>>, vector<16x4xi32>
    %13 = tpu.iota {dimensions = array<i32: 1>} : vector<16x128xi32>
    %14 = vector.extract_strided_slice %12 {offsets = [0, 0], sizes = [16, 1], strides = [1, 1]} : vector<16x4xi32> to vector<16x1xi32>
    %15 = vector.broadcast %14 : vector<16x1xi32> to vector<16x128xi32>
    %16 = arith.cmpi eq, %15, %13 : vector<16x128xi32>
    %17 = vector.extract_strided_slice %12 {offsets = [0, 1], sizes = [16, 1], strides = [1, 1]} : vector<16x4xi32> to vector<16x1xi32>
    %18 = vector.broadcast %17 : vector<16x1xi32> to vector<16x128xi32>
    %19 = arith.cmpi eq, %18, %13 : vector<16x128xi32>
    %20 = arith.ori %16, %19 : vector<16x128xi1>
    %cst = arith.constant 1.000000e+00 : f32
    %cst_1 = arith.constant 0.000000e+00 : f32
    %21 = vector.broadcast %cst : f32 to vector<16x128xf32>
    %22 = vector.broadcast %cst_1 : f32 to vector<16x128xf32>
    %23 = arith.select %20, %21, %22 : vector<16x128xi1>, vector<16x128xf32>
    %c0_2 = arith.constant 0 : index
    %c0_3 = arith.constant 0 : index
    %24 = vector.load %arg1[%c0_2, %c0_3] : memref<192x256xf32, #tpu.memory_space<vmem>>, vector<128x256xf32>
    %c128 = arith.constant 128 : index
    %c0_4 = arith.constant 0 : index
    %25 = vector.load %arg1[%c128, %c0_4] : memref<192x256xf32, #tpu.memory_space<vmem>>, vector<64x256xf32>
    %cst_5 = arith.constant dense<0.000000e+00> : vector<16x256xf32>
    %26 = tpu.matmul %23, %24, %cst_5 {dimension_numbers = #tpu.dot_dimension_numbers<[1], [0], [0], [1], [0, 0, 1, 1], [], []>} : vector<16x128xf32>, vector<128x256xf32>, vector<16x256xf32> -> vector<16x256xf32>
    %27 = vector.extract_strided_slice %12 {offsets = [0, 2], sizes = [2, 1], strides = [1, 1]} : vector<16x4xi32> to vector<2x1xi32>
    %28 = tpu.iota {dimensions = array<i32: 1>} : vector<2x64xi32>
    %c32_i32 = arith.constant 32 : i32
    %29 = vector.broadcast %c32_i32 : i32 to vector<2x64xi32>
    %30 = arith.cmpi slt, %28, %29 : vector<2x64xi32>
    %cst_6 = arith.constant 0.000000e+00 : f32
    %31 = vector.broadcast %cst_6 : f32 to vector<2x64xf32>
    %cst_7 = arith.constant 0.000000e+00 : f32
    %32 = vector.broadcast %cst_7 : f32 to vector<2x64xf32>
    %33 = vector.extract_strided_slice %26 {offsets = [0, 0], sizes = [2, 256], strides = [1, 1]} : vector<16x256xf32> to vector<2x256xf32>
    %cst_8 = arith.constant dense<0.000000e+00> : vector<2x256xf32>
    %34 = tpu.matmul %31, %25, %cst_8 {dimension_numbers = #tpu.dot_dimension_numbers<[1], [0], [0], [1], [0, 0, 1, 1], [], []>} : vector<2x64xf32>, vector<64x256xf32>, vector<2x256xf32> -> vector<2x256xf32>
    %35 = arith.addf %33, %34 : vector<2x256xf32>
    %36 = vector.extract_strided_slice %35 {offsets = [0, 0], sizes = [2, 192], strides = [1, 1]} : vector<2x256xf32> to vector<2x192xf32>
    %37 = arith.negf %36 : vector<2x192xf32>
    %38 = math.exp %37 : vector<2x192xf32>
    %cst_9 = arith.constant 1.000000e+00 : f32
    %39 = vector.broadcast %cst_9 : f32 to vector<2x192xf32>
    %40 = arith.addf %39, %38 : vector<2x192xf32>
    %41 = arith.divf %39, %40 : vector<2x192xf32>
    %42 = vector.extract_strided_slice %41 {offsets = [0, 0], sizes = [2, 64], strides = [1, 1]} : vector<2x192xf32> to vector<2x64xf32>
    %43 = vector.extract_strided_slice %41 {offsets = [0, 64], sizes = [2, 64], strides = [1, 1]} : vector<2x192xf32> to vector<2x64xf32>
    %44 = vector.extract_strided_slice %41 {offsets = [0, 128], sizes = [2, 64], strides = [1, 1]} : vector<2x192xf32> to vector<2x64xf32>
    %45 = vector.extract_strided_slice %35 {offsets = [0, 192], sizes = [2, 64], strides = [1, 1]} : vector<2x256xf32> to vector<2x64xf32>
    %46 = math.tanh %45 : vector<2x64xf32>
    %47 = arith.mulf %43, %32 : vector<2x64xf32>
    %48 = arith.mulf %42, %46 : vector<2x64xf32>
    %49 = arith.addf %47, %48 : vector<2x64xf32>
    %50 = math.tanh %49 : vector<2x64xf32>
    %51 = arith.mulf %44, %50 : vector<2x64xf32>
    %c0_i32_10 = arith.constant 0 : i32
    %c7_i32 = arith.constant 7 : i32
    %52 = vector.broadcast %c0_i32_10 : i32 to vector<2x64xi32>
    %53 = vector.broadcast %c7_i32 : i32 to vector<2x64xi32>
    %54 = arith.select %30, %52, %53 : vector<2x64xi1>, vector<2x64xi32>
    %55 = vector.broadcast %27 : vector<2x1xi32> to vector<2x64xi32>
    %56 = arith.cmpi slt, %54, %55 : vector<2x64xi32>
    %57 = arith.select %56, %51, %31 : vector<2x64xi1>, vector<2x64xf32>
    %58 = arith.select %56, %49, %32 : vector<2x64xi1>, vector<2x64xf32>
    %59 = vector.extract_strided_slice %26 {offsets = [2, 0], sizes = [2, 256], strides = [1, 1]} : vector<16x256xf32> to vector<2x256xf32>
    %cst_11 = arith.constant dense<0.000000e+00> : vector<2x256xf32>
    %60 = tpu.matmul %57, %25, %cst_11 {dimension_numbers = #tpu.dot_dimension_numbers<[1], [0], [0], [1], [0, 0, 1, 1], [], []>} : vector<2x64xf32>, vector<64x256xf32>, vector<2x256xf32> -> vector<2x256xf32>
    %61 = arith.addf %59, %60 : vector<2x256xf32>
    %62 = vector.extract_strided_slice %61 {offsets = [0, 0], sizes = [2, 192], strides = [1, 1]} : vector<2x256xf32> to vector<2x192xf32>
    %63 = arith.negf %62 : vector<2x192xf32>
    %64 = math.exp %63 : vector<2x192xf32>
    %cst_12 = arith.constant 1.000000e+00 : f32
    %65 = vector.broadcast %cst_12 : f32 to vector<2x192xf32>
    %66 = arith.addf %65, %64 : vector<2x192xf32>
    %67 = arith.divf %65, %66 : vector<2x192xf32>
    %68 = vector.extract_strided_slice %67 {offsets = [0, 0], sizes = [2, 64], strides = [1, 1]} : vector<2x192xf32> to vector<2x64xf32>
    %69 = vector.extract_strided_slice %67 {offsets = [0, 64], sizes = [2, 64], strides = [1, 1]} : vector<2x192xf32> to vector<2x64xf32>
    %70 = vector.extract_strided_slice %67 {offsets = [0, 128], sizes = [2, 64], strides = [1, 1]} : vector<2x192xf32> to vector<2x64xf32>
    %71 = vector.extract_strided_slice %61 {offsets = [0, 192], sizes = [2, 64], strides = [1, 1]} : vector<2x256xf32> to vector<2x64xf32>
    %72 = math.tanh %71 : vector<2x64xf32>
    %73 = arith.mulf %69, %58 : vector<2x64xf32>
    %74 = arith.mulf %68, %72 : vector<2x64xf32>
    %75 = arith.addf %73, %74 : vector<2x64xf32>
    %76 = math.tanh %75 : vector<2x64xf32>
    %77 = arith.mulf %70, %76 : vector<2x64xf32>
    %c1_i32_13 = arith.constant 1 : i32
    %c6_i32 = arith.constant 6 : i32
    %78 = vector.broadcast %c1_i32_13 : i32 to vector<2x64xi32>
    %79 = vector.broadcast %c6_i32 : i32 to vector<2x64xi32>
    %80 = arith.select %30, %78, %79 : vector<2x64xi1>, vector<2x64xi32>
    %81 = vector.broadcast %27 : vector<2x1xi32> to vector<2x64xi32>
    %82 = arith.cmpi slt, %80, %81 : vector<2x64xi32>
    %83 = arith.select %82, %77, %57 : vector<2x64xi1>, vector<2x64xf32>
    %84 = arith.select %82, %75, %58 : vector<2x64xi1>, vector<2x64xf32>
    %85 = vector.extract_strided_slice %26 {offsets = [4, 0], sizes = [2, 256], strides = [1, 1]} : vector<16x256xf32> to vector<2x256xf32>
    %cst_14 = arith.constant dense<0.000000e+00> : vector<2x256xf32>
    %86 = tpu.matmul %83, %25, %cst_14 {dimension_numbers = #tpu.dot_dimension_numbers<[1], [0], [0], [1], [0, 0, 1, 1], [], []>} : vector<2x64xf32>, vector<64x256xf32>, vector<2x256xf32> -> vector<2x256xf32>
    %87 = arith.addf %85, %86 : vector<2x256xf32>
    %88 = vector.extract_strided_slice %87 {offsets = [0, 0], sizes = [2, 192], strides = [1, 1]} : vector<2x256xf32> to vector<2x192xf32>
    %89 = arith.negf %88 : vector<2x192xf32>
    %90 = math.exp %89 : vector<2x192xf32>
    %cst_15 = arith.constant 1.000000e+00 : f32
    %91 = vector.broadcast %cst_15 : f32 to vector<2x192xf32>
    %92 = arith.addf %91, %90 : vector<2x192xf32>
    %93 = arith.divf %91, %92 : vector<2x192xf32>
    %94 = vector.extract_strided_slice %93 {offsets = [0, 0], sizes = [2, 64], strides = [1, 1]} : vector<2x192xf32> to vector<2x64xf32>
    %95 = vector.extract_strided_slice %93 {offsets = [0, 64], sizes = [2, 64], strides = [1, 1]} : vector<2x192xf32> to vector<2x64xf32>
    %96 = vector.extract_strided_slice %93 {offsets = [0, 128], sizes = [2, 64], strides = [1, 1]} : vector<2x192xf32> to vector<2x64xf32>
    %97 = vector.extract_strided_slice %87 {offsets = [0, 192], sizes = [2, 64], strides = [1, 1]} : vector<2x256xf32> to vector<2x64xf32>
    %98 = math.tanh %97 : vector<2x64xf32>
    %99 = arith.mulf %95, %84 : vector<2x64xf32>
    %100 = arith.mulf %94, %98 : vector<2x64xf32>
    %101 = arith.addf %99, %100 : vector<2x64xf32>
    %102 = math.tanh %101 : vector<2x64xf32>
    %103 = arith.mulf %96, %102 : vector<2x64xf32>
    %c2_i32_16 = arith.constant 2 : i32
    %c5_i32_17 = arith.constant 5 : i32
    %104 = vector.broadcast %c2_i32_16 : i32 to vector<2x64xi32>
    %105 = vector.broadcast %c5_i32_17 : i32 to vector<2x64xi32>
    %106 = arith.select %30, %104, %105 : vector<2x64xi1>, vector<2x64xi32>
    %107 = vector.broadcast %27 : vector<2x1xi32> to vector<2x64xi32>
    %108 = arith.cmpi slt, %106, %107 : vector<2x64xi32>
    %109 = arith.select %108, %103, %83 : vector<2x64xi1>, vector<2x64xf32>
    %110 = arith.select %108, %101, %84 : vector<2x64xi1>, vector<2x64xf32>
    %111 = vector.extract_strided_slice %26 {offsets = [6, 0], sizes = [2, 256], strides = [1, 1]} : vector<16x256xf32> to vector<2x256xf32>
    %cst_18 = arith.constant dense<0.000000e+00> : vector<2x256xf32>
    %112 = tpu.matmul %109, %25, %cst_18 {dimension_numbers = #tpu.dot_dimension_numbers<[1], [0], [0], [1], [0, 0, 1, 1], [], []>} : vector<2x64xf32>, vector<64x256xf32>, vector<2x256xf32> -> vector<2x256xf32>
    %113 = arith.addf %111, %112 : vector<2x256xf32>
    %114 = vector.extract_strided_slice %113 {offsets = [0, 0], sizes = [2, 192], strides = [1, 1]} : vector<2x256xf32> to vector<2x192xf32>
    %115 = arith.negf %114 : vector<2x192xf32>
    %116 = math.exp %115 : vector<2x192xf32>
    %cst_19 = arith.constant 1.000000e+00 : f32
    %117 = vector.broadcast %cst_19 : f32 to vector<2x192xf32>
    %118 = arith.addf %117, %116 : vector<2x192xf32>
    %119 = arith.divf %117, %118 : vector<2x192xf32>
    %120 = vector.extract_strided_slice %119 {offsets = [0, 0], sizes = [2, 64], strides = [1, 1]} : vector<2x192xf32> to vector<2x64xf32>
    %121 = vector.extract_strided_slice %119 {offsets = [0, 64], sizes = [2, 64], strides = [1, 1]} : vector<2x192xf32> to vector<2x64xf32>
    %122 = vector.extract_strided_slice %119 {offsets = [0, 128], sizes = [2, 64], strides = [1, 1]} : vector<2x192xf32> to vector<2x64xf32>
    %123 = vector.extract_strided_slice %113 {offsets = [0, 192], sizes = [2, 64], strides = [1, 1]} : vector<2x256xf32> to vector<2x64xf32>
    %124 = math.tanh %123 : vector<2x64xf32>
    %125 = arith.mulf %121, %110 : vector<2x64xf32>
    %126 = arith.mulf %120, %124 : vector<2x64xf32>
    %127 = arith.addf %125, %126 : vector<2x64xf32>
    %128 = math.tanh %127 : vector<2x64xf32>
    %129 = arith.mulf %122, %128 : vector<2x64xf32>
    %c3_i32_20 = arith.constant 3 : i32
    %c4_i32_21 = arith.constant 4 : i32
    %130 = vector.broadcast %c3_i32_20 : i32 to vector<2x64xi32>
    %131 = vector.broadcast %c4_i32_21 : i32 to vector<2x64xi32>
    %132 = arith.select %30, %130, %131 : vector<2x64xi1>, vector<2x64xi32>
    %133 = vector.broadcast %27 : vector<2x1xi32> to vector<2x64xi32>
    %134 = arith.cmpi slt, %132, %133 : vector<2x64xi32>
    %135 = arith.select %134, %129, %109 : vector<2x64xi1>, vector<2x64xf32>
    %136 = arith.select %134, %127, %110 : vector<2x64xi1>, vector<2x64xf32>
    %137 = vector.extract_strided_slice %26 {offsets = [8, 0], sizes = [2, 256], strides = [1, 1]} : vector<16x256xf32> to vector<2x256xf32>
    %cst_22 = arith.constant dense<0.000000e+00> : vector<2x256xf32>
    %138 = tpu.matmul %135, %25, %cst_22 {dimension_numbers = #tpu.dot_dimension_numbers<[1], [0], [0], [1], [0, 0, 1, 1], [], []>} : vector<2x64xf32>, vector<64x256xf32>, vector<2x256xf32> -> vector<2x256xf32>
    %139 = arith.addf %137, %138 : vector<2x256xf32>
    %140 = vector.extract_strided_slice %139 {offsets = [0, 0], sizes = [2, 192], strides = [1, 1]} : vector<2x256xf32> to vector<2x192xf32>
    %141 = arith.negf %140 : vector<2x192xf32>
    %142 = math.exp %141 : vector<2x192xf32>
    %cst_23 = arith.constant 1.000000e+00 : f32
    %143 = vector.broadcast %cst_23 : f32 to vector<2x192xf32>
    %144 = arith.addf %143, %142 : vector<2x192xf32>
    %145 = arith.divf %143, %144 : vector<2x192xf32>
    %146 = vector.extract_strided_slice %145 {offsets = [0, 0], sizes = [2, 64], strides = [1, 1]} : vector<2x192xf32> to vector<2x64xf32>
    %147 = vector.extract_strided_slice %145 {offsets = [0, 64], sizes = [2, 64], strides = [1, 1]} : vector<2x192xf32> to vector<2x64xf32>
    %148 = vector.extract_strided_slice %145 {offsets = [0, 128], sizes = [2, 64], strides = [1, 1]} : vector<2x192xf32> to vector<2x64xf32>
    %149 = vector.extract_strided_slice %139 {offsets = [0, 192], sizes = [2, 64], strides = [1, 1]} : vector<2x256xf32> to vector<2x64xf32>
    %150 = math.tanh %149 : vector<2x64xf32>
    %151 = arith.mulf %147, %136 : vector<2x64xf32>
    %152 = arith.mulf %146, %150 : vector<2x64xf32>
    %153 = arith.addf %151, %152 : vector<2x64xf32>
    %154 = math.tanh %153 : vector<2x64xf32>
    %155 = arith.mulf %148, %154 : vector<2x64xf32>
    %c4_i32_24 = arith.constant 4 : i32
    %c3_i32_25 = arith.constant 3 : i32
    %156 = vector.broadcast %c4_i32_24 : i32 to vector<2x64xi32>
    %157 = vector.broadcast %c3_i32_25 : i32 to vector<2x64xi32>
    %158 = arith.select %30, %156, %157 : vector<2x64xi1>, vector<2x64xi32>
    %159 = vector.broadcast %27 : vector<2x1xi32> to vector<2x64xi32>
    %160 = arith.cmpi slt, %158, %159 : vector<2x64xi32>
    %161 = arith.select %160, %155, %135 : vector<2x64xi1>, vector<2x64xf32>
    %162 = arith.select %160, %153, %136 : vector<2x64xi1>, vector<2x64xf32>
    %163 = vector.extract_strided_slice %26 {offsets = [10, 0], sizes = [2, 256], strides = [1, 1]} : vector<16x256xf32> to vector<2x256xf32>
    %cst_26 = arith.constant dense<0.000000e+00> : vector<2x256xf32>
    %164 = tpu.matmul %161, %25, %cst_26 {dimension_numbers = #tpu.dot_dimension_numbers<[1], [0], [0], [1], [0, 0, 1, 1], [], []>} : vector<2x64xf32>, vector<64x256xf32>, vector<2x256xf32> -> vector<2x256xf32>
    %165 = arith.addf %163, %164 : vector<2x256xf32>
    %166 = vector.extract_strided_slice %165 {offsets = [0, 0], sizes = [2, 192], strides = [1, 1]} : vector<2x256xf32> to vector<2x192xf32>
    %167 = arith.negf %166 : vector<2x192xf32>
    %168 = math.exp %167 : vector<2x192xf32>
    %cst_27 = arith.constant 1.000000e+00 : f32
    %169 = vector.broadcast %cst_27 : f32 to vector<2x192xf32>
    %170 = arith.addf %169, %168 : vector<2x192xf32>
    %171 = arith.divf %169, %170 : vector<2x192xf32>
    %172 = vector.extract_strided_slice %171 {offsets = [0, 0], sizes = [2, 64], strides = [1, 1]} : vector<2x192xf32> to vector<2x64xf32>
    %173 = vector.extract_strided_slice %171 {offsets = [0, 64], sizes = [2, 64], strides = [1, 1]} : vector<2x192xf32> to vector<2x64xf32>
    %174 = vector.extract_strided_slice %171 {offsets = [0, 128], sizes = [2, 64], strides = [1, 1]} : vector<2x192xf32> to vector<2x64xf32>
    %175 = vector.extract_strided_slice %165 {offsets = [0, 192], sizes = [2, 64], strides = [1, 1]} : vector<2x256xf32> to vector<2x64xf32>
    %176 = math.tanh %175 : vector<2x64xf32>
    %177 = arith.mulf %173, %162 : vector<2x64xf32>
    %178 = arith.mulf %172, %176 : vector<2x64xf32>
    %179 = arith.addf %177, %178 : vector<2x64xf32>
    %180 = math.tanh %179 : vector<2x64xf32>
    %181 = arith.mulf %174, %180 : vector<2x64xf32>
    %c5_i32_28 = arith.constant 5 : i32
    %c2_i32_29 = arith.constant 2 : i32
    %182 = vector.broadcast %c5_i32_28 : i32 to vector<2x64xi32>
    %183 = vector.broadcast %c2_i32_29 : i32 to vector<2x64xi32>
    %184 = arith.select %30, %182, %183 : vector<2x64xi1>, vector<2x64xi32>
    %185 = vector.broadcast %27 : vector<2x1xi32> to vector<2x64xi32>
    %186 = arith.cmpi slt, %184, %185 : vector<2x64xi32>
    %187 = arith.select %186, %181, %161 : vector<2x64xi1>, vector<2x64xf32>
    %188 = arith.select %186, %179, %162 : vector<2x64xi1>, vector<2x64xf32>
    %189 = vector.extract_strided_slice %26 {offsets = [12, 0], sizes = [2, 256], strides = [1, 1]} : vector<16x256xf32> to vector<2x256xf32>
    %cst_30 = arith.constant dense<0.000000e+00> : vector<2x256xf32>
    %190 = tpu.matmul %187, %25, %cst_30 {dimension_numbers = #tpu.dot_dimension_numbers<[1], [0], [0], [1], [0, 0, 1, 1], [], []>} : vector<2x64xf32>, vector<64x256xf32>, vector<2x256xf32> -> vector<2x256xf32>
    %191 = arith.addf %189, %190 : vector<2x256xf32>
    %192 = vector.extract_strided_slice %191 {offsets = [0, 0], sizes = [2, 192], strides = [1, 1]} : vector<2x256xf32> to vector<2x192xf32>
    %193 = arith.negf %192 : vector<2x192xf32>
    %194 = math.exp %193 : vector<2x192xf32>
    %cst_31 = arith.constant 1.000000e+00 : f32
    %195 = vector.broadcast %cst_31 : f32 to vector<2x192xf32>
    %196 = arith.addf %195, %194 : vector<2x192xf32>
    %197 = arith.divf %195, %196 : vector<2x192xf32>
    %198 = vector.extract_strided_slice %197 {offsets = [0, 0], sizes = [2, 64], strides = [1, 1]} : vector<2x192xf32> to vector<2x64xf32>
    %199 = vector.extract_strided_slice %197 {offsets = [0, 64], sizes = [2, 64], strides = [1, 1]} : vector<2x192xf32> to vector<2x64xf32>
    %200 = vector.extract_strided_slice %197 {offsets = [0, 128], sizes = [2, 64], strides = [1, 1]} : vector<2x192xf32> to vector<2x64xf32>
    %201 = vector.extract_strided_slice %191 {offsets = [0, 192], sizes = [2, 64], strides = [1, 1]} : vector<2x256xf32> to vector<2x64xf32>
    %202 = math.tanh %201 : vector<2x64xf32>
    %203 = arith.mulf %199, %188 : vector<2x64xf32>
    %204 = arith.mulf %198, %202 : vector<2x64xf32>
    %205 = arith.addf %203, %204 : vector<2x64xf32>
    %206 = math.tanh %205 : vector<2x64xf32>
    %207 = arith.mulf %200, %206 : vector<2x64xf32>
    %c6_i32_32 = arith.constant 6 : i32
    %c1_i32_33 = arith.constant 1 : i32
    %208 = vector.broadcast %c6_i32_32 : i32 to vector<2x64xi32>
    %209 = vector.broadcast %c1_i32_33 : i32 to vector<2x64xi32>
    %210 = arith.select %30, %208, %209 : vector<2x64xi1>, vector<2x64xi32>
    %211 = vector.broadcast %27 : vector<2x1xi32> to vector<2x64xi32>
    %212 = arith.cmpi slt, %210, %211 : vector<2x64xi32>
    %213 = arith.select %212, %207, %187 : vector<2x64xi1>, vector<2x64xf32>
    %214 = arith.select %212, %205, %188 : vector<2x64xi1>, vector<2x64xf32>
    %215 = vector.extract_strided_slice %26 {offsets = [14, 0], sizes = [2, 256], strides = [1, 1]} : vector<16x256xf32> to vector<2x256xf32>
    %cst_34 = arith.constant dense<0.000000e+00> : vector<2x256xf32>
    %216 = tpu.matmul %213, %25, %cst_34 {dimension_numbers = #tpu.dot_dimension_numbers<[1], [0], [0], [1], [0, 0, 1, 1], [], []>} : vector<2x64xf32>, vector<64x256xf32>, vector<2x256xf32> -> vector<2x256xf32>
    %217 = arith.addf %215, %216 : vector<2x256xf32>
    %218 = vector.extract_strided_slice %217 {offsets = [0, 0], sizes = [2, 192], strides = [1, 1]} : vector<2x256xf32> to vector<2x192xf32>
    %219 = arith.negf %218 : vector<2x192xf32>
    %220 = math.exp %219 : vector<2x192xf32>
    %cst_35 = arith.constant 1.000000e+00 : f32
    %221 = vector.broadcast %cst_35 : f32 to vector<2x192xf32>
    %222 = arith.addf %221, %220 : vector<2x192xf32>
    %223 = arith.divf %221, %222 : vector<2x192xf32>
    %224 = vector.extract_strided_slice %223 {offsets = [0, 0], sizes = [2, 64], strides = [1, 1]} : vector<2x192xf32> to vector<2x64xf32>
    %225 = vector.extract_strided_slice %223 {offsets = [0, 64], sizes = [2, 64], strides = [1, 1]} : vector<2x192xf32> to vector<2x64xf32>
    %226 = vector.extract_strided_slice %223 {offsets = [0, 128], sizes = [2, 64], strides = [1, 1]} : vector<2x192xf32> to vector<2x64xf32>
    %227 = vector.extract_strided_slice %217 {offsets = [0, 192], sizes = [2, 64], strides = [1, 1]} : vector<2x256xf32> to vector<2x64xf32>
    %228 = math.tanh %227 : vector<2x64xf32>
    %229 = arith.mulf %225, %214 : vector<2x64xf32>
    %230 = arith.mulf %224, %228 : vector<2x64xf32>
    %231 = arith.addf %229, %230 : vector<2x64xf32>
    %232 = math.tanh %231 : vector<2x64xf32>
    %233 = arith.mulf %226, %232 : vector<2x64xf32>
    %c7_i32_36 = arith.constant 7 : i32
    %c0_i32_37 = arith.constant 0 : i32
    %234 = vector.broadcast %c7_i32_36 : i32 to vector<2x64xi32>
    %235 = vector.broadcast %c0_i32_37 : i32 to vector<2x64xi32>
    %236 = arith.select %30, %234, %235 : vector<2x64xi1>, vector<2x64xi32>
    %237 = vector.broadcast %27 : vector<2x1xi32> to vector<2x64xi32>
    %238 = arith.cmpi slt, %236, %237 : vector<2x64xi32>
    %239 = arith.select %238, %233, %213 : vector<2x64xi1>, vector<2x64xf32>
    %c0_i32_38 = arith.constant 0 : i32
    %240 = tpu.memref_slice %arg15[%c0_i32_38] : memref<6x!tpu.dma_semaphore, #tpu.memory_space<semaphore_mem>> -> memref<1x!tpu.dma_semaphore, #tpu.memory_space<semaphore_mem>>
    %241 = tpu.memref_squeeze %240 : memref<1x!tpu.dma_semaphore, #tpu.memory_space<semaphore_mem>> -> memref<!tpu.dma_semaphore, #tpu.memory_space<semaphore_mem>>
    tpu.wait_dma2 semaphore(%241 : memref<!tpu.dma_semaphore, #tpu.memory_space<semaphore_mem>>) src(%arg2 : memref<64x6912xbf16, #tpu.memory_space<any>>) dst(%arg9 : memref<64x6912xbf16, #tpu.memory_space<vmem>>)
    %c1_i32_39 = arith.constant 1 : i32
    %242 = tpu.memref_slice %arg15[%c1_i32_39] : memref<6x!tpu.dma_semaphore, #tpu.memory_space<semaphore_mem>> -> memref<1x!tpu.dma_semaphore, #tpu.memory_space<semaphore_mem>>
    %243 = tpu.memref_squeeze %242 : memref<1x!tpu.dma_semaphore, #tpu.memory_space<semaphore_mem>> -> memref<!tpu.dma_semaphore, #tpu.memory_space<semaphore_mem>>
    tpu.wait_dma2 semaphore(%243 : memref<!tpu.dma_semaphore, #tpu.memory_space<semaphore_mem>>) src(%arg3 : memref<1152x32xbf16, #tpu.memory_space<any>>) dst(%arg10 : memref<1152x32xbf16, #tpu.memory_space<vmem>>)
    %244 = arith.truncf %239 : vector<2x64xf32> to vector<2x64xbf16>
    %c0_40 = arith.constant 0 : index
    %c0_41 = arith.constant 0 : index
    %245 = vector.load %arg9[%c0_40, %c0_41] : memref<64x6912xbf16, #tpu.memory_space<vmem>>, vector<64x6912xbf16>
    %cst_42 = arith.constant dense<0.000000e+00> : vector<2x6912xf32>
    %246 = tpu.matmul %244, %245, %cst_42 {dimension_numbers = #tpu.dot_dimension_numbers<[1], [0], [0], [1], [0, 0, 1, 1], [], []>} : vector<2x64xbf16>, vector<64x6912xbf16>, vector<2x6912xf32> -> vector<2x6912xf32>
    %cst_43 = arith.constant 0.000000e+00 : f32
    %247 = vector.broadcast %cst_43 : f32 to vector<2x6912xf32>
    %248 = arith.maximumf %246, %247 : vector<2x6912xf32>
    %249 = arith.truncf %248 : vector<2x6912xf32> to vector<2x6912xbf16>
    %c0_44 = arith.constant 0 : index
    %c0_45 = arith.constant 0 : index
    %250 = vector.load %arg10[%c0_44, %c0_45] : memref<1152x32xbf16, #tpu.memory_space<vmem>>, vector<1152x32xbf16>
    %251 = vector.extract_strided_slice %249 {offsets = [0, 0], sizes = [2, 1152], strides = [1, 1]} : vector<2x6912xbf16> to vector<2x1152xbf16>
    %cst_46 = arith.constant dense<0.000000e+00> : vector<2x32xf32>
    %252 = tpu.matmul %251, %250, %cst_46 {dimension_numbers = #tpu.dot_dimension_numbers<[1], [0], [0], [1], [0, 0, 1, 1], [], []>} : vector<2x1152xbf16>, vector<1152x32xbf16>, vector<2x32xf32> -> vector<2x32xf32>
    %253 = vector.extract_strided_slice %249 {offsets = [0, 1152], sizes = [2, 1152], strides = [1, 1]} : vector<2x6912xbf16> to vector<2x1152xbf16>
    %cst_47 = arith.constant dense<0.000000e+00> : vector<2x32xf32>
    %254 = tpu.matmul %253, %250, %cst_47 {dimension_numbers = #tpu.dot_dimension_numbers<[1], [0], [0], [1], [0, 0, 1, 1], [], []>} : vector<2x1152xbf16>, vector<1152x32xbf16>, vector<2x32xf32> -> vector<2x32xf32>
    %255 = vector.extract_strided_slice %249 {offsets = [0, 2304], sizes = [2, 1152], strides = [1, 1]} : vector<2x6912xbf16> to vector<2x1152xbf16>
    %cst_48 = arith.constant dense<0.000000e+00> : vector<2x32xf32>
    %256 = tpu.matmul %255, %250, %cst_48 {dimension_numbers = #tpu.dot_dimension_numbers<[1], [0], [0], [1], [0, 0, 1, 1], [], []>} : vector<2x1152xbf16>, vector<1152x32xbf16>, vector<2x32xf32> -> vector<2x32xf32>
    %257 = vector.extract_strided_slice %249 {offsets = [0, 3456], sizes = [2, 1152], strides = [1, 1]} : vector<2x6912xbf16> to vector<2x1152xbf16>
    %cst_49 = arith.constant dense<0.000000e+00> : vector<2x32xf32>
    %258 = tpu.matmul %257, %250, %cst_49 {dimension_numbers = #tpu.dot_dimension_numbers<[1], [0], [0], [1], [0, 0, 1, 1], [], []>} : vector<2x1152xbf16>, vector<1152x32xbf16>, vector<2x32xf32> -> vector<2x32xf32>
    %259 = vector.extract_strided_slice %249 {offsets = [0, 4608], sizes = [2, 1152], strides = [1, 1]} : vector<2x6912xbf16> to vector<2x1152xbf16>
    %cst_50 = arith.constant dense<0.000000e+00> : vector<2x32xf32>
    %260 = tpu.matmul %259, %250, %cst_50 {dimension_numbers = #tpu.dot_dimension_numbers<[1], [0], [0], [1], [0, 0, 1, 1], [], []>} : vector<2x1152xbf16>, vector<1152x32xbf16>, vector<2x32xf32> -> vector<2x32xf32>
    %261 = vector.extract_strided_slice %249 {offsets = [0, 5760], sizes = [2, 1152], strides = [1, 1]} : vector<2x6912xbf16> to vector<2x1152xbf16>
    %cst_51 = arith.constant dense<0.000000e+00> : vector<2x32xf32>
    %262 = tpu.matmul %261, %250, %cst_51 {dimension_numbers = #tpu.dot_dimension_numbers<[1], [0], [0], [1], [0, 0, 1, 1], [], []>} : vector<2x1152xbf16>, vector<1152x32xbf16>, vector<2x32xf32> -> vector<2x32xf32>
    %263 = arith.maximumf %252, %254 : vector<2x32xf32>
    %264 = arith.maximumf %258, %260 : vector<2x32xf32>
    %265 = tpu.concatenate %263, %256, %264, %262 in 1 : vector<2x32xf32>, vector<2x32xf32>, vector<2x32xf32>, vector<2x32xf32> -> vector<2x128xf32>
    %c2_i32_52 = arith.constant 2 : i32
    %266 = tpu.memref_slice %arg15[%c2_i32_52] : memref<6x!tpu.dma_semaphore, #tpu.memory_space<semaphore_mem>> -> memref<1x!tpu.dma_semaphore, #tpu.memory_space<semaphore_mem>>
    %267 = tpu.memref_squeeze %266 : memref<1x!tpu.dma_semaphore, #tpu.memory_space<semaphore_mem>> -> memref<!tpu.dma_semaphore, #tpu.memory_space<semaphore_mem>>
    tpu.wait_dma2 semaphore(%267 : memref<!tpu.dma_semaphore, #tpu.memory_space<semaphore_mem>>) src(%arg4 : memref<128x384xbf16, #tpu.memory_space<any>>) dst(%arg11 : memref<128x384xbf16, #tpu.memory_space<vmem>>)
    %c3_i32_53 = arith.constant 3 : i32
    %268 = tpu.memref_slice %arg15[%c3_i32_53] : memref<6x!tpu.dma_semaphore, #tpu.memory_space<semaphore_mem>> -> memref<1x!tpu.dma_semaphore, #tpu.memory_space<semaphore_mem>>
    %269 = tpu.memref_squeeze %268 : memref<1x!tpu.dma_semaphore, #tpu.memory_space<semaphore_mem>> -> memref<!tpu.dma_semaphore, #tpu.memory_space<semaphore_mem>>
    tpu.wait_dma2 semaphore(%269 : memref<!tpu.dma_semaphore, #tpu.memory_space<semaphore_mem>>) src(%arg5 : memref<384x256xbf16, #tpu.memory_space<any>>) dst(%arg12 : memref<384x256xbf16, #tpu.memory_space<vmem>>)
    %c4_i32_54 = arith.constant 4 : i32
    %270 = tpu.memref_slice %arg15[%c4_i32_54] : memref<6x!tpu.dma_semaphore, #tpu.memory_space<semaphore_mem>> -> memref<1x!tpu.dma_semaphore, #tpu.memory_space<semaphore_mem>>
    %271 = tpu.memref_squeeze %270 : memref<1x!tpu.dma_semaphore, #tpu.memory_space<semaphore_mem>> -> memref<!tpu.dma_semaphore, #tpu.memory_space<semaphore_mem>>
    tpu.wait_dma2 semaphore(%271 : memref<!tpu.dma_semaphore, #tpu.memory_space<semaphore_mem>>) src(%arg6 : memref<256x128xbf16, #tpu.memory_space<any>>) dst(%arg13 : memref<256x128xbf16, #tpu.memory_space<vmem>>)
    %c5_i32_55 = arith.constant 5 : i32
    %272 = tpu.memref_slice %arg15[%c5_i32_55] : memref<6x!tpu.dma_semaphore, #tpu.memory_space<semaphore_mem>> -> memref<1x!tpu.dma_semaphore, #tpu.memory_space<semaphore_mem>>
    %273 = tpu.memref_squeeze %272 : memref<1x!tpu.dma_semaphore, #tpu.memory_space<semaphore_mem>> -> memref<!tpu.dma_semaphore, #tpu.memory_space<semaphore_mem>>
    tpu.wait_dma2 semaphore(%273 : memref<!tpu.dma_semaphore, #tpu.memory_space<semaphore_mem>>) src(%arg7 : memref<8x384xf32, #tpu.memory_space<any>>) dst(%arg14 : memref<8x384xf32, #tpu.memory_space<vmem>>)
    %c0_56 = arith.constant 0 : index
    %c0_57 = arith.constant 0 : index
    %274 = vector.load %arg14[%c0_56, %c0_57] : memref<8x384xf32, #tpu.memory_space<vmem>>, vector<8x384xf32>
    %275 = vector.extract_strided_slice %274 {offsets = [0, 0], sizes = [1, 384], strides = [1, 1]} : vector<8x384xf32> to vector<1x384xf32>
    %276 = vector.extract_strided_slice %274 {offsets = [1, 0], sizes = [1, 256], strides = [1, 1]} : vector<8x384xf32> to vector<1x256xf32>
    %277 = vector.extract_strided_slice %274 {offsets = [2, 0], sizes = [1, 128], strides = [1, 1]} : vector<8x384xf32> to vector<1x128xf32>
    %278 = vector.extract_strided_slice %274 {offsets = [3, 0], sizes = [1, 1], strides = [1, 1]} : vector<8x384xf32> to vector<1x1xf32>
    %279 = vector.extract_strided_slice %274 {offsets = [4, 0], sizes = [1, 128], strides = [1, 1]} : vector<8x384xf32> to vector<1x128xf32>
    %280 = arith.truncf %265 : vector<2x128xf32> to vector<2x128xbf16>
    %c0_58 = arith.constant 0 : index
    %c0_59 = arith.constant 0 : index
    %281 = vector.load %arg11[%c0_58, %c0_59] : memref<128x384xbf16, #tpu.memory_space<vmem>>, vector<128x384xbf16>
    %cst_60 = arith.constant dense<0.000000e+00> : vector<2x384xf32>
    %282 = tpu.matmul %280, %281, %cst_60 {dimension_numbers = #tpu.dot_dimension_numbers<[1], [0], [0], [1], [0, 0, 1, 1], [], []>} : vector<2x128xbf16>, vector<128x384xbf16>, vector<2x384xf32> -> vector<2x384xf32>
    %283 = vector.broadcast %275 : vector<1x384xf32> to vector<2x384xf32>
    %284 = arith.addf %282, %283 : vector<2x384xf32>
    %cst_61 = arith.constant 0.000000e+00 : f32
    %285 = vector.broadcast %cst_61 : f32 to vector<2x384xf32>
    %286 = arith.maximumf %284, %285 : vector<2x384xf32>
    %287 = arith.truncf %286 : vector<2x384xf32> to vector<2x384xbf16>
    %c0_62 = arith.constant 0 : index
    %c0_63 = arith.constant 0 : index
    %288 = vector.load %arg12[%c0_62, %c0_63] : memref<384x256xbf16, #tpu.memory_space<vmem>>, vector<384x256xbf16>
    %cst_64 = arith.constant dense<0.000000e+00> : vector<2x256xf32>
    %289 = tpu.matmul %287, %288, %cst_64 {dimension_numbers = #tpu.dot_dimension_numbers<[1], [0], [0], [1], [0, 0, 1, 1], [], []>} : vector<2x384xbf16>, vector<384x256xbf16>, vector<2x256xf32> -> vector<2x256xf32>
    %290 = vector.broadcast %276 : vector<1x256xf32> to vector<2x256xf32>
    %291 = arith.addf %289, %290 : vector<2x256xf32>
    %cst_65 = arith.constant 0.000000e+00 : f32
    %292 = vector.broadcast %cst_65 : f32 to vector<2x256xf32>
    %293 = arith.maximumf %291, %292 : vector<2x256xf32>
    %294 = arith.truncf %293 : vector<2x256xf32> to vector<2x256xbf16>
    %c0_66 = arith.constant 0 : index
    %c0_67 = arith.constant 0 : index
    %295 = vector.load %arg13[%c0_66, %c0_67] : memref<256x128xbf16, #tpu.memory_space<vmem>>, vector<256x128xbf16>
    %cst_68 = arith.constant dense<0.000000e+00> : vector<2x128xf32>
    %296 = tpu.matmul %294, %295, %cst_68 {dimension_numbers = #tpu.dot_dimension_numbers<[1], [0], [0], [1], [0, 0, 1, 1], [], []>} : vector<2x256xbf16>, vector<256x128xbf16>, vector<2x128xf32> -> vector<2x128xf32>
    %297 = vector.broadcast %277 : vector<1x128xf32> to vector<2x128xf32>
    %298 = arith.addf %296, %297 : vector<2x128xf32>
    %cst_69 = arith.constant 0.000000e+00 : f32
    %299 = vector.broadcast %cst_69 : f32 to vector<2x128xf32>
    %300 = arith.maximumf %298, %299 : vector<2x128xf32>
    %301 = vector.broadcast %279 : vector<1x128xf32> to vector<2x128xf32>
    %302 = arith.mulf %300, %301 : vector<2x128xf32>
    %cst_70 = arith.constant dense<0.000000e+00> : vector<2xf32>
    %303 = vector.multi_reduction <add>, %302, %cst_70 [1] : vector<2x128xf32> to vector<2xf32>
    %304 = vector.shape_cast %303 : vector<2xf32> to vector<2x1xf32>
    %305 = vector.broadcast %278 : vector<1x1xf32> to vector<2x1xf32>
    %306 = arith.addf %304, %305 : vector<2x1xf32>
    %c0_71 = arith.constant 0 : index
    %c0_72 = arith.constant 0 : index
    %307 = vector.load %arg8[%c0_71, %c0_72] : memref<2x1xf32, #tpu.memory_space<vmem>>, vector<2x1xf32>
    tpu.vector_store %arg8[%c0_71, %c0_72], %306 {strides = array<i32>} : memref<2x1xf32, #tpu.memory_space<vmem>>, vector<2x1xf32>,
    return
  }
}

</mosaic_0001>

<bundles_post_ra>
// kernel: birnn_pallas.1
= control target key start
LH: loop header
LB: loop body
LE: loop exit
PB: predicated region body
PF: predicated region fallthrough
CT: control target
= control target key end

     0   :  { %s8709_s27 = smov [#allocation2]   ;;  %s10880_s0 = inlined_call_operand.vmem [shape: s32[16,4], index: 0, kind: input, shape index: {}]   ;;  %s10881_s1 = inlined_call_operand.vmem [shape: f32[192,256], index: 1, kind: input, shape index: {}]   ;;  %s10882_s2 = inlined_call_operand.hbm [shape: bf16[64,6912], index: 2, kind: input, shape index: {}]   ;;  %s10883_s4 = inlined_call_operand.hbm [shape: bf16[128,384], index: 4, kind: input, shape index: {}]   ;;  %s10884_s5 = inlined_call_operand.vmem [shape: bf16[384,256], index: 5, kind: input, shape index: {}]   ;;  %s10885_s6 = inlined_call_operand.hbm [shape: bf16[256,128], index: 6, kind: input, shape index: {}]   ;;  %s10886_s7 = inlined_call_operand.vmem [shape: f32[8,384], index: 7, kind: input, shape index: {}]   ;;  %s10887_s8 = inlined_call_operand.vmem [shape: f32[2,1], index: 8, kind: output, shape index: {}]   ;;  %s10888_s3 = inlined_call_operand.vmem [shape: bf16[1152,32], index: 3, kind: input, shape index: {}]  }
   0x1   :  { %s25_s28 = sshll.u32 %s8709_s27, 4  ;;  %v63_v0 = vld [vmem:[%s10888_s3] sm:$0xff]  ;;  %v65_v1 = vld [vmem:[%s10888_s3 + $0x8] sm:$0xff]  ;;  %v67_v2 = vld [vmem:[%s10888_s3 + $0x10] sm:$0xff]  ;;  %s26_s28 = int_to_ptr.vmem [resolvable:$true] %s25_s28 }
   0x2   :  { %64 = vst [vmem:[#allocation3] sm:$0xff] %v63_v0  ;;  %66 = vst [vmem:[#allocation3 + $0x8] sm:$0xff] %v65_v1  ;;  %v69_v3 = vld [vmem:[%s10888_s3 + $0x18] sm:$0xff]  ;;  %v71_v4 = vld [vmem:[%s10888_s3 + $0x20] sm:$0xff]  ;;  %s8645_s19 = scalar_lea.vmem %s26_s28, 27648  ;;  %p8650_p1 = scmp.lt.s32.totalorder %s26_s28, %s26_s28 }
   0x3   :  { %68 = vst [vmem:[#allocation3 + $0x10] sm:$0xff] %v67_v2  ;;  %v73_v5 = vld [vmem:[%s10888_s3 + $0x28] sm:$0xff]  ;;  %p8646_p0 = scmp.ne.s32.totalorder %s26_s28, %s8645_s19  ;;  %p8651_p2 = scmp.lt.s32.totalorder %s8645_s19, %s8645_s19 }
   0x5   :  { %p8652_p3 = por %p8651_p2, %p8650_p1 }
   0x7   :  { %p8653_p4 = pnand %p8652_p3, %p8646_p0 }
   0x9   :  { %8656 = shalt.err (!%p8653_p4)  }
   0xa   :  { %28 = dma.hbm_to_vmem [thread:$0]  %s10882_s2, 27648, %s26_s28, [#allocation8]  ;;  %70 = vst [vmem:[#allocation3 + $0x18] sm:$0xff] %v69_v3  ;;  %72 = vst [vmem:[#allocation3 + $0x20] sm:$0xff] %v71_v4  ;;  %v75_v6 = vld [vmem:[%s10888_s3 + $0x30] sm:$0xff]  ;;  %v77_v7 = vld [vmem:[%s10888_s3 + $0x38] sm:$0xff] }
   0xb   :  { %74 = vst [vmem:[#allocation3 + $0x28] sm:$0xff] %v73_v5  ;;  %v79_v8 = vld [vmem:[%s10888_s3 + $0x40] sm:$0xff]  ;;  %76 = vst [vmem:[#allocation3 + $0x30] sm:$0xff] %v75_v6  ;;  %v81_v9 = vld [vmem:[%s10888_s3 + $0x48] sm:$0xff] }
   0xc   :  { %78 = vst [vmem:[#allocation3 + $0x38] sm:$0xff] %v77_v7  ;;  %80 = vst [vmem:[#allocation3 + $0x40] sm:$0xff] %v79_v8  ;;  %v83_v10 = vld [vmem:[%s10888_s3 + $0x50] sm:$0xff]  ;;  %v85_v11 = vld [vmem:[%s10888_s3 + $0x58] sm:$0xff] }
   0xd   :  { %82 = vst [vmem:[#allocation3 + $0x48] sm:$0xff] %v81_v9  ;;  %84 = vst [vmem:[#allocation3 + $0x50] sm:$0xff] %v83_v10  ;;  %v87_v12 = vld [vmem:[%s10888_s3 + $0x60] sm:$0xff]  ;;  %v89_v13 = vld [vmem:[%s10888_s3 + $0x68] sm:$0xff] }
   0xe   :  { %86 = vst [vmem:[#allocation3 + $0x58] sm:$0xff] %v85_v11  ;;  %v91_v14 = vld [vmem:[%s10888_s3 + $0x70] sm:$0xff]  ;;  %88 = vst [vmem:[#allocation3 + $0x60] sm:$0xff] %v87_v12  ;;  %v93_v15 = vld [vmem:[%s10888_s3 + $0x78] sm:$0xff] }
   0xf   :  { %90 = vst [vmem:[#allocation3 + $0x68] sm:$0xff] %v89_v13  ;;  %92 = vst [vmem:[#allocation3 + $0x70] sm:$0xff] %v91_v14  ;;  %v95_v16 = vld [vmem:[%s10888_s3 + $0x80] sm:$0xff]  ;;  %v97_v17 = vld [vmem:[%s10888_s3 + $0x88] sm:$0xff] }
  0x10   :  { %94 = vst [vmem:[#allocation3 + $0x78] sm:$0xff] %v93_v15  ;;  %96 = vst [vmem:[#allocation3 + $0x80] sm:$0xff] %v95_v16  ;;  %v99_v18 = vld [vmem:[%s10888_s3 + $0x90] sm:$0xff]  ;;  %v101_v19 = vld [vmem:[%s10888_s3 + $0x98] sm:$0xff] }
  0x11   :  { %98 = vst [vmem:[#allocation3 + $0x88] sm:$0xff] %v97_v17  ;;  %v103_v20 = vld [vmem:[%s10888_s3 + $0xa0] sm:$0xff]  ;;  %100 = vst [vmem:[#allocation3 + $0x90] sm:$0xff] %v99_v18  ;;  %v105_v21 = vld [vmem:[%s10888_s3 + $0xa8] sm:$0xff] }
  0x12   :  { %102 = vst [vmem:[#allocation3 + $0x98] sm:$0xff] %v101_v19  ;;  %104 = vst [vmem:[#allocation3 + $0xa0] sm:$0xff] %v103_v20  ;;  %v107_v22 = vld [vmem:[%s10888_s3 + $0xb0] sm:$0xff]  ;;  %v109_v23 = vld [vmem:[%s10888_s3 + $0xb8] sm:$0xff] }
  0x13   :  { %106 = vst [vmem:[#allocation3 + $0xa8] sm:$0xff] %v105_v21  ;;  %108 = vst [vmem:[#allocation3 + $0xb0] sm:$0xff] %v107_v22  ;;  %v111_v24 = vld [vmem:[%s10888_s3 + $0xc0] sm:$0xff]  ;;  %v113_v25 = vld [vmem:[%s10888_s3 + $0xc8] sm:$0xff] }
  0x14   :  { %110 = vst [vmem:[#allocation3 + $0xb8] sm:$0xff] %v109_v23  ;;  %v115_v26 = vld [vmem:[%s10888_s3 + $0xd0] sm:$0xff]  ;;  %112 = vst [vmem:[#allocation3 + $0xc0] sm:$0xff] %v111_v24  ;;  %v117_v27 = vld [vmem:[%s10888_s3 + $0xd8] sm:$0xff] }
  0x15   :  { %114 = vst [vmem:[#allocation3 + $0xc8] sm:$0xff] %v113_v25  ;;  %116 = vst [vmem:[#allocation3 + $0xd0] sm:$0xff] %v115_v26  ;;  %v119_v28 = vld [vmem:[%s10888_s3 + $0xe0] sm:$0xff]  ;;  %v121_v29 = vld [vmem:[%s10888_s3 + $0xe8] sm:$0xff] }
  0x16   :  { %118 = vst [vmem:[#allocation3 + $0xd8] sm:$0xff] %v117_v27  ;;  %120 = vst [vmem:[#allocation3 + $0xe0] sm:$0xff] %v119_v28  ;;  %v123_v30 = vld [vmem:[%s10888_s3 + $0xf0] sm:$0xff]  ;;  %v125_v31 = vld [vmem:[%s10888_s3 + $0xf8] sm:$0xff] }
  0x17   :  { %122 = vst [vmem:[#allocation3 + $0xe8] sm:$0xff] %v121_v29  ;;  %v127_v32 = vld [vmem:[%s10888_s3 + $0x100] sm:$0xff]  ;;  %124 = vst [vmem:[#allocation3 + $0xf0] sm:$0xff] %v123_v30  ;;  %v129_v33 = vld [vmem:[%s10888_s3 + $0x108] sm:$0xff] }
  0x18   :  { %126 = vst [vmem:[#allocation3 + $0xf8] sm:$0xff] %v125_v31  ;;  %128 = vst [vmem:[#allocation3 + $0x100] sm:$0xff] %v127_v32  ;;  %v131_v34 = vld [vmem:[%s10888_s3 + $0x110] sm:$0xff]  ;;  %v133_v35 = vld [vmem:[%s10888_s3 + $0x118] sm:$0xff] }
  0x19   :  { %130 = vst [vmem:[#allocation3 + $0x108] sm:$0xff] %v129_v33  ;;  %132 = vst [vmem:[#allocation3 + $0x110] sm:$0xff] %v131_v34  ;;  %v135_v36 = vld [vmem:[%s10888_s3 + $0x120] sm:$0xff]  ;;  %v137_v37 = vld [vmem:[%s10888_s3 + $0x128] sm:$0xff] }
  0x1a   :  { %134 = vst [vmem:[#allocation3 + $0x118] sm:$0xff] %v133_v35  ;;  %v139_v38 = vld [vmem:[%s10888_s3 + $0x130] sm:$0xff]  ;;  %136 = vst [vmem:[#allocation3 + $0x120] sm:$0xff] %v135_v36  ;;  %v141_v39 = vld [vmem:[%s10888_s3 + $0x138] sm:$0xff] }
  0x1b   :  { %138 = vst [vmem:[#allocation3 + $0x128] sm:$0xff] %v137_v37  ;;  %140 = vst [vmem:[#allocation3 + $0x130] sm:$0xff] %v139_v38  ;;  %v143_v40 = vld [vmem:[%s10888_s3 + $0x140] sm:$0xff]  ;;  %v145_v41 = vld [vmem:[%s10888_s3 + $0x148] sm:$0xff] }
  0x1c   :  { %142 = vst [vmem:[#allocation3 + $0x138] sm:$0xff] %v141_v39  ;;  %144 = vst [vmem:[#allocation3 + $0x140] sm:$0xff] %v143_v40  ;;  %v147_v42 = vld [vmem:[%s10888_s3 + $0x150] sm:$0xff]  ;;  %v149_v43 = vld [vmem:[%s10888_s3 + $0x158] sm:$0xff] }
  0x1d   :  { %146 = vst [vmem:[#allocation3 + $0x148] sm:$0xff] %v145_v41  ;;  %v151_v44 = vld [vmem:[%s10888_s3 + $0x160] sm:$0xff]  ;;  %148 = vst [vmem:[#allocation3 + $0x150] sm:$0xff] %v147_v42  ;;  %v153_v45 = vld [vmem:[%s10888_s3 + $0x168] sm:$0xff] }
  0x1e   :  { %150 = vst [vmem:[#allocation3 + $0x158] sm:$0xff] %v149_v43  ;;  %152 = vst [vmem:[#allocation3 + $0x160] sm:$0xff] %v151_v44  ;;  %v155_v46 = vld [vmem:[%s10888_s3 + $0x170] sm:$0xff]  ;;  %v157_v47 = vld [vmem:[%s10888_s3 + $0x178] sm:$0xff] }
  0x1f   :  { %154 = vst [vmem:[#allocation3 + $0x168] sm:$0xff] %v153_v45  ;;  %156 = vst [vmem:[#allocation3 + $0x170] sm:$0xff] %v155_v46  ;;  %v159_v48 = vld [vmem:[%s10888_s3 + $0x180] sm:$0xff]  ;;  %v161_v49 = vld [vmem:[%s10888_s3 + $0x188] sm:$0xff] }
  0x20   :  { %158 = vst [vmem:[#allocation3 + $0x178] sm:$0xff] %v157_v47  ;;  %v163_v50 = vld [vmem:[%s10888_s3 + $0x190] sm:$0xff]  ;;  %160 = vst [vmem:[#allocation3 + $0x180] sm:$0xff] %v159_v48  ;;  %v165_v51 = vld [vmem:[%s10888_s3 + $0x198] sm:$0xff] }
  0x21   :  { %162 = vst [vmem:[#allocation3 + $0x188] sm:$0xff] %v161_v49  ;;  %164 = vst [vmem:[#allocation3 + $0x190] sm:$0xff] %v163_v50  ;;  %v167_v52 = vld [vmem:[%s10888_s3 + $0x1a0] sm:$0xff]  ;;  %v169_v53 = vld [vmem:[%s10888_s3 + $0x1a8] sm:$0xff] }
  0x22   :  { %166 = vst [vmem:[#allocation3 + $0x198] sm:$0xff] %v165_v51  ;;  %168 = vst [vmem:[#allocation3 + $0x1a0] sm:$0xff] %v167_v52  ;;  %v171_v54 = vld [vmem:[%s10888_s3 + $0x1b0] sm:$0xff]  ;;  %v173_v55 = vld [vmem:[%s10888_s3 + $0x1b8] sm:$0xff] }
  0x23   :  { %170 = vst [vmem:[#allocation3 + $0x1a8] sm:$0xff] %v169_v53  ;;  %v175_v56 = vld [vmem:[%s10888_s3 + $0x1c0] sm:$0xff]  ;;  %172 = vst [vmem:[#allocation3 + $0x1b0] sm:$0xff] %v171_v54  ;;  %v177_v57 = vld [vmem:[%s10888_s3 + $0x1c8] sm:$0xff] }
  0x24   :  { %174 = vst [vmem:[#allocation3 + $0x1b8] sm:$0xff] %v173_v55  ;;  %176 = vst [vmem:[#allocation3 + $0x1c0] sm:$0xff] %v175_v56  ;;  %v179_v58 = vld [vmem:[%s10888_s3 + $0x1d0] sm:$0xff]  ;;  %v181_v59 = vld [vmem:[%s10888_s3 + $0x1d8] sm:$0xff] }
  0x25   :  { %178 = vst [vmem:[#allocation3 + $0x1c8] sm:$0xff] %v177_v57  ;;  %180 = vst [vmem:[#allocation3 + $0x1d0] sm:$0xff] %v179_v58  ;;  %v183_v60 = vld [vmem:[%s10888_s3 + $0x1e0] sm:$0xff]  ;;  %v185_v61 = vld [vmem:[%s10888_s3 + $0x1e8] sm:$0xff] }
  0x26   :  { %182 = vst [vmem:[#allocation3 + $0x1d8] sm:$0xff] %v181_v59  ;;  %v187_v62 = vld [vmem:[%s10888_s3 + $0x1f0] sm:$0xff]  ;;  %184 = vst [vmem:[#allocation3 + $0x1e0] sm:$0xff] %v183_v60  ;;  %v189_v63 = vld [vmem:[%s10888_s3 + $0x1f8] sm:$0xff] }
  0x27   :  { %186 = vst [vmem:[#allocation3 + $0x1e8] sm:$0xff] %v185_v61  ;;  %188 = vst [vmem:[#allocation3 + $0x1f0] sm:$0xff] %v187_v62  ;;  %v191_v0 = vld [vmem:[%s10888_s3 + $0x200] sm:$0xff]  ;;  %v193_v1 = vld [vmem:[%s10888_s3 + $0x208] sm:$0xff] }
  0x28   :  { %190 = vst [vmem:[#allocation3 + $0x1f8] sm:$0xff] %v189_v63  ;;  %192 = vst [vmem:[#allocation3 + $0x200] sm:$0xff] %v191_v0  ;;  %v195_v2 = vld [vmem:[%s10888_s3 + $0x210] sm:$0xff]  ;;  %v197_v3 = vld [vmem:[%s10888_s3 + $0x218] sm:$0xff] }
  0x29   :  { %194 = vst [vmem:[#allocation3 + $0x208] sm:$0xff] %v193_v1  ;;  %v199_v4 = vld [vmem:[%s10888_s3 + $0x220] sm:$0xff]  ;;  %196 = vst [vmem:[#allocation3 + $0x210] sm:$0xff] %v195_v2  ;;  %v201_v5 = vld [vmem:[%s10888_s3 + $0x228] sm:$0xff] }
  0x2a   :  { %198 = vst [vmem:[#allocation3 + $0x218] sm:$0xff] %v197_v3  ;;  %200 = vst [vmem:[#allocation3 + $0x220] sm:$0xff] %v199_v4  ;;  %v203_v6 = vld [vmem:[%s10888_s3 + $0x230] sm:$0xff]  ;;  %v205_v7 = vld [vmem:[%s10888_s3 + $0x238] sm:$0xff] }
  0x2b   :  { %202 = vst [vmem:[#allocation3 + $0x228] sm:$0xff] %v201_v5  ;;  %204 = vst [vmem:[#allocation3 + $0x230] sm:$0xff] %v203_v6 }
  0x2c   :  { %206 = vst [vmem:[#allocation3 + $0x238] sm:$0xff] %v205_v7 }
  0x2d   :  { %214 = vsyncadd [#allocation8 + $0x1], 9216  ;;  %v8993_v8 = vld [vmem:[%s10884_s5] sm:$0xff]  ;;  %v8998_v9 = vld [vmem:[%s10884_s5 + $0x8] sm:$0xff]  ;;  %s8710_s20 = smov [#allocation4]  }
  0x2e   :  { %11018 = vst [vmem:[#allocation26_spill] sm:$0xff] %v8993_v8  ;;  %11019 = vst [vmem:[#allocation27_spill] sm:$0xff] %v8998_v9  ;;  %s223_s21 = sshll.u32 %s8710_s20, 4  ;;  %v9003_v10 = vld [vmem:[%s10884_s5 + $0x10] sm:$0xff]  ;;  %v9008_v11 = vld [vmem:[%s10884_s5 + $0x18] sm:$0xff]  ;;  %s224_s21 = int_to_ptr.vmem [resolvable:$true] %s223_s21 }
  0x2f   :  { %11020 = vst [vmem:[#allocation28_spill] sm:$0xff] %v9003_v10  ;;  %11021 = vst [vmem:[#allocation29_spill] sm:$0xff] %v9008_v11  ;;  %v9013_v12 = vld [vmem:[%s10884_s5 + $0x20] sm:$0xff]  ;;  %v9018_v13 = vld [vmem:[%s10884_s5 + $0x28] sm:$0xff]  ;;  %s8665_s10 = scalar_lea.vmem %s224_s21, 3072  ;;  %p8670_p6 = scmp.lt.s32.totalorder %s224_s21, %s224_s21 }
  0x30   :  { %11022 = vst [vmem:[#allocation30_spill] sm:$0xff] %v9013_v12  ;;  %11023 = vst [vmem:[#allocation31_spill] sm:$0xff] %v9018_v13  ;;  %v9023_v14 = vld [vmem:[%s10884_s5 + $0x30] sm:$0xff]  ;;  %v9028_v15 = vld [vmem:[%s10884_s5 + $0x38] sm:$0xff]  ;;  %p8666_p5 = scmp.ne.s32.totalorder %s224_s21, %s8665_s10  ;;  %p8671_p7 = scmp.lt.s32.totalorder %s8665_s10, %s8665_s10 }
  0x31   :  { %11024 = vst [vmem:[#allocation32_spill] sm:$0xff] %v9023_v14  ;;  %11025 = vst [vmem:[#allocation33_spill] sm:$0xff] %v9028_v15 }
  0x32   :  { %p8672_p8 = por %p8671_p7, %p8670_p6 }
  0x34   :  { %p8673_p9 = pnand %p8672_p8, %p8666_p5 }
  0x36   :  { %8676 = shalt.err (!%p8673_p9)  }
  0x37   :  { %226 = dma.hbm_to_vmem [thread:$0]  %s10883_s4, 3072, %s224_s21, [#allocation8 + $0x2]  ;;  %v9036_v16 = vld [vmem:[%s10884_s5 + $0x40] sm:$0xff]  ;;  %v9041_v17 = vld [vmem:[%s10884_s5 + $0x48] sm:$0xff]  ;;  %v9046_v18 = vld [vmem:[%s10884_s5 + $0x50] sm:$0xff] }
  0x38   :  { %11026 = vst [vmem:[#allocation34_spill] sm:$0xff] %v9036_v16  ;;  %11027 = vst [vmem:[#allocation35_spill] sm:$0xff] %v9041_v17  ;;  %v9051_v19 = vld [vmem:[%s10884_s5 + $0x58] sm:$0xff]  ;;  %v9056_v20 = vld [vmem:[%s10884_s5 + $0x60] sm:$0xff] }
  0x39   :  { %11028 = vst [vmem:[#allocation36_spill] sm:$0xff] %v9046_v18  ;;  %11029 = vst [vmem:[#allocation37_spill] sm:$0xff] %v9051_v19  ;;  %v9061_v21 = vld [vmem:[%s10884_s5 + $0x68] sm:$0xff]  ;;  %v9066_v22 = vld [vmem:[%s10884_s5 + $0x70] sm:$0xff] }
  0x3a   :  { %11030 = vst [vmem:[#allocation38_spill] sm:$0xff] %v9056_v20  ;;  %11031 = vst [vmem:[#allocation39_spill] sm:$0xff] %v9061_v21  ;;  %v9071_v23 = vld [vmem:[%s10884_s5 + $0x78] sm:$0xff]  ;;  %v9076_v24 = vld [vmem:[%s10884_s5 + $0x80] sm:$0xff] }
  0x3b   :  { %11032 = vst [vmem:[#allocation40_spill] sm:$0xff] %v9066_v22  ;;  %11033 = vst [vmem:[#allocation41_spill] sm:$0xff] %v9071_v23  ;;  %v9081_v25 = vld [vmem:[%s10884_s5 + $0x88] sm:$0xff]  ;;  %v9086_v26 = vld [vmem:[%s10884_s5 + $0x90] sm:$0xff] }
  0x3c   :  { %11034 = vst [vmem:[#allocation42_spill] sm:$0xff] %v9076_v24  ;;  %11035 = vst [vmem:[#allocation43_spill] sm:$0xff] %v9081_v25  ;;  %v9091_v27 = vld [vmem:[%s10884_s5 + $0x98] sm:$0xff]  ;;  %v9096_v28 = vld [vmem:[%s10884_s5 + $0xa0] sm:$0xff] }
  0x3d   :  { %11036 = vst [vmem:[#allocation44_spill] sm:$0xff] %v9086_v26  ;;  %11037 = vst [vmem:[#allocation45_spill] sm:$0xff] %v9091_v27  ;;  %v9101_v29 = vld [vmem:[%s10884_s5 + $0xa8] sm:$0xff]  ;;  %v9106_v30 = vld [vmem:[%s10884_s5 + $0xb0] sm:$0xff] }
  0x3e   :  { %11038 = vst [vmem:[#allocation46_spill] sm:$0xff] %v9096_v28  ;;  %11039 = vst [vmem:[#allocation47_spill] sm:$0xff] %v9101_v29  ;;  %v9111_v31 = vld [vmem:[%s10884_s5 + $0xb8] sm:$0xff]  ;;  %v9116_v32 = vld [vmem:[%s10884_s5 + $0xc0] sm:$0xff] }
  0x3f   :  { %11040 = vst [vmem:[#allocation48_spill] sm:$0xff] %v9106_v30  ;;  %11041 = vst [vmem:[#allocation49_spill] sm:$0xff] %v9111_v31  ;;  %v9121_v33 = vld [vmem:[%s10884_s5 + $0xc8] sm:$0xff]  ;;  %v9126_v34 = vld [vmem:[%s10884_s5 + $0xd0] sm:$0xff] }
  0x40   :  { %11042 = vst [vmem:[#allocation50_spill] sm:$0xff] %v9116_v32  ;;  %11043 = vst [vmem:[#allocation51_spill] sm:$0xff] %v9121_v33  ;;  %v9131_v35 = vld [vmem:[%s10884_s5 + $0xd8] sm:$0xff]  ;;  %v9136_v36 = vld [vmem:[%s10884_s5 + $0xe0] sm:$0xff] }
  0x41   :  { %11044 = vst [vmem:[#allocation52_spill] sm:$0xff] %v9126_v34  ;;  %11045 = vst [vmem:[#allocation53_spill] sm:$0xff] %v9131_v35  ;;  %v9141_v37 = vld [vmem:[%s10884_s5 + $0xe8] sm:$0xff]  ;;  %v9146_v38 = vld [vmem:[%s10884_s5 + $0xf0] sm:$0xff] }
  0x42   :  { %11046 = vst [vmem:[#allocation54_spill] sm:$0xff] %v9136_v36  ;;  %11047 = vst [vmem:[#allocation55_spill] sm:$0xff] %v9141_v37  ;;  %v9151_v39 = vld [vmem:[%s10884_s5 + $0xf8] sm:$0xff]  ;;  %v9156_v40 = vld [vmem:[%s10884_s5 + $0x100] sm:$0xff] }
  0x43   :  { %11048 = vst [vmem:[#allocation56_spill] sm:$0xff] %v9146_v38  ;;  %11049 = vst [vmem:[#allocation57_spill] sm:$0xff] %v9151_v39  ;;  %v9161_v41 = vld [vmem:[%s10884_s5 + $0x108] sm:$0xff]  ;;  %v9166_v42 = vld [vmem:[%s10884_s5 + $0x110] sm:$0xff] }
  0x44   :  { %11050 = vst [vmem:[#allocation58_spill] sm:$0xff] %v9156_v40  ;;  %11051 = vst [vmem:[#allocation59_spill] sm:$0xff] %v9161_v41  ;;  %v9171_v43 = vld [vmem:[%s10884_s5 + $0x118] sm:$0xff]  ;;  %v9176_v44 = vld [vmem:[%s10884_s5 + $0x120] sm:$0xff] }
  0x45   :  { %11052 = vst [vmem:[#allocation60_spill] sm:$0xff] %v9166_v42  ;;  %11053 = vst [vmem:[#allocation61_spill] sm:$0xff] %v9171_v43  ;;  %v9181_v45 = vld [vmem:[%s10884_s5 + $0x128] sm:$0xff]  ;;  %v9186_v46 = vld [vmem:[%s10884_s5 + $0x130] sm:$0xff] }
  0x46   :  { %11054 = vst [vmem:[#allocation62_spill] sm:$0xff] %v9176_v44  ;;  %11055 = vst [vmem:[#allocation63_spill] sm:$0xff] %v9181_v45  ;;  %v9191_v47 = vld [vmem:[%s10884_s5 + $0x138] sm:$0xff]  ;;  %v9196_v48 = vld [vmem:[%s10884_s5 + $0x140] sm:$0xff] }
  0x47   :  { %11056 = vst [vmem:[#allocation64_spill] sm:$0xff] %v9186_v46  ;;  %11057 = vst [vmem:[#allocation65_spill] sm:$0xff] %v9191_v47  ;;  %v9201_v49 = vld [vmem:[%s10884_s5 + $0x148] sm:$0xff]  ;;  %v9206_v50 = vld [vmem:[%s10884_s5 + $0x150] sm:$0xff] }
  0x48   :  { %11058 = vst [vmem:[#allocation66_spill] sm:$0xff] %v9196_v48  ;;  %11059 = vst [vmem:[#allocation67_spill] sm:$0xff] %v9201_v49  ;;  %v9211_v51 = vld [vmem:[%s10884_s5 + $0x158] sm:$0xff]  ;;  %v9216_v52 = vld [vmem:[%s10884_s5 + $0x160] sm:$0xff] }
  0x49   :  { %11060 = vst [vmem:[#allocation68_spill] sm:$0xff] %v9206_v50  ;;  %11061 = vst [vmem:[#allocation69_spill] sm:$0xff] %v9211_v51  ;;  %v9221_v53 = vld [vmem:[%s10884_s5 + $0x168] sm:$0xff]  ;;  %v9226_v54 = vld [vmem:[%s10884_s5 + $0x170] sm:$0xff] }
  0x4a   :  { %11062 = vst [vmem:[#allocation70_spill] sm:$0xff] %v9216_v52  ;;  %11063 = vst [vmem:[#allocation71_spill] sm:$0xff] %v9221_v53  ;;  %v9231_v55 = vld [vmem:[%s10884_s5 + $0x178] sm:$0xff] }
  0x4b   :  { %11064 = vst [vmem:[#allocation72_spill] sm:$0xff] %v9226_v54  ;;  %11065 = vst [vmem:[#allocation73_spill] sm:$0xff] %v9231_v55 }
  0x4c   :  { %364 = vsyncadd [#allocation8 + $0x3], 6144  ;;  %v9236_v56 = vld [vmem:[%s10886_s7] sm:$0xff]  ;;  %v9241_v57 = vld [vmem:[%s10886_s7 + $0x8] sm:$0xff]  ;;  %s8711_s21 = smov [#allocation6]  }
  0x4d   :  { %11066 = vst [vmem:[#allocation74_spill] sm:$0xff] %v9236_v56  ;;  %11067 = vst [vmem:[#allocation75_spill] sm:$0xff] %v9241_v57  ;;  %s373_s22 = sshll.u32 %s8711_s21, 4  ;;  %v9246_v58 = vld [vmem:[%s10886_s7 + $0x10] sm:$0xff]  ;;  %s374_s22 = int_to_ptr.vmem [resolvable:$true] %s373_s22 }
  0x4e   :  { %11068 = vst [vmem:[#allocation76_spill] sm:$0xff] %v9246_v58  ;;  %s8685_s5 = scalar_lea.vmem %s374_s22, 2048  ;;  %p8690_p11 = scmp.lt.s32.totalorder %s374_s22, %s374_s22 }
  0x4f   :  { %p8686_p10 = scmp.ne.s32.totalorder %s374_s22, %s8685_s5  ;;  %p8691_p12 = scmp.lt.s32.totalorder %s8685_s5, %s8685_s5 }
  0x51   :  { %p8692_p13 = por %p8691_p12, %p8690_p11 }
  0x53   :  { %p8693_p0 = pnand %p8692_p13, %p8686_p10 }
  0x55   :  { %8696 = shalt.err (!%p8693_p0)  }
  0x56   :  { %376 = dma.hbm_to_vmem [thread:$0]  %s10885_s6, 2048, %s374_s22, [#allocation8 + $0x4]  ;;  %v9254_v59 = vld [vmem:[%s10880_s0] sm:$0xff] }
  0x57   :  { %424 = vsyncadd [#allocation8 + $0x5], 384  ;;  %v480_v60 = vld [vmem:[%s10881_s1 + $0xf8] sm:$0xff]  ;;  %v10890_v61 = vmov 0   ;;  %v479_v62 = vld [vmem:[%s10881_s1 + $0xf0] sm:$0xff]  ;;  %v10892_v3 = vmov 0.0  }
  0x58   :  { %8020 = vset.pattern.permute.xlu0 %v10890_v61  ;;  %497 = vmatprep.subr.mxu0 %v480_v60  ;;  %v478_v63 = vld [vmem:[%s10881_s1 + $0xe8] sm:$0xff]  ;;  %v477_v0 = vld [vmem:[%s10881_s1 + $0xe0] sm:$0xff]  ;;  %v476_v1 = vld [vmem:[%s10881_s1 + $0xd8] sm:$0xff]  ;;  %v10889_v7 = vmov 1   ;;  %v11069_v29 = vmov 0.0   ;;  %v10915_v30 = vmov 2  }
  0x59   :  { %430 = vperm.xlu0 %8020, %v9254_v59   ;;  %498 = vmatpush1.msra.mxu0 %v479_v62  ;;  %v475_v2 = vld [vmem:[%s10881_s1 + $0xd0] sm:$0xff]  ;;  %v474_v4 = vld [vmem:[%s10881_s1 + $0xc8] sm:$0xff]  ;;  %v473_v5 = vld [vmem:[%s10881_s1 + $0xc0] sm:$0xff]  ;;  %vm575_vm5 = vcmask 523264   ;;  %v11071_v10 = vmov 2  }
  0x5a   :  { %499 = vmatprep.subr.mxu0 %v478_v63  ;;  %643 = vmatprep.mubr.f32.mxu1 %v10892_v3  ;;  %v9287_v6 = vld [vmem:[%s10881_s1 + $0x178] sm:$0xff]  ;;  %v9296_v62 = vld [vmem:[%s10881_s1 + $0x170] sm:$0xff]  ;;  %v465_v57 = vld [vmem:[%s10881_s1 + $0x80] sm:$0xff] }
  0x5b   :  { %500 = vmatpush1.msra.mxu0 %v477_v0  ;;  %561 = vmatprep.mubr.f32.mxu0 %v10892_v3  ;;  %v472_v60 = vld [vmem:[%s10881_s1 + $0xb8] sm:$0xff]  ;;  %v471_v63 = vld [vmem:[%s10881_s1 + $0xb0] sm:$0xff]  ;;  %v9305_v0 = vld [vmem:[%s10881_s1 + $0x168] sm:$0xff] }
  0x5c   :  { %501 = vmatprep.subr.mxu0 %v476_v1  ;;  %v470_v1 = vld [vmem:[%s10881_s1 + $0xa8] sm:$0xff]  ;;  %595 = vmatprep.subr.mxu1 %v9287_v6  ;;  %v467_v61 = vld [vmem:[%s10881_s1 + $0x90] sm:$0xff]  ;;  %v464_v56 = vld [vmem:[%s10881_s1 + $0x78] sm:$0xff] }
  0x5d   :  { %8021 = vset.pattern.permute.xlu0 %v10889_v7  ;;  %502 = vmatpush1.msra.mxu0 %v475_v2  ;;  %v9314_v2 = vld [vmem:[%s10881_s1 + $0x160] sm:$0xff]  ;;  %v468_v7 = vld [vmem:[%s10881_s1 + $0x98] sm:$0xff]  ;;  %v466_v3 = vld [vmem:[%s10881_s1 + $0x88] sm:$0xff] }
  0x5e   :  { %438 = vperm.xlu0 %8021, %v9254_v59   ;;  %503 = vmatprep.subr.mxu0 %v474_v4  ;;  %v469_v4 = vld [vmem:[%s10881_s1 + $0xa0] sm:$0xff]  ;;  %v463_v58 = vld [vmem:[%s10881_s1 + $0x70] sm:$0xff]  ;;  %v462_v24 = vld [vmem:[%s10881_s1 + $0x68] sm:$0xff] }
  0x5f   :  { %504 = vmatpush1.msra.mxu0 %v473_v5  ;;  %596 = vmatpush1.msra.mxu1 %v9296_v62  ;;  %v9323_v5 = vld [vmem:[%s10881_s1 + $0x158] sm:$0xff]  ;;  %v461_v25 = vld [vmem:[%s10881_s1 + $0x60] sm:$0xff]  ;;  %v459_v41 = vld [vmem:[%s10881_s1 + $0x50] sm:$0xff] }
  0x60   :  { %505 = vmatprep.subr.mxu0 %v472_v60  ;;  %597 = vmatprep.subr.mxu1 %v9305_v0  ;;  %v9332_v60 = vld [vmem:[%s10881_s1 + $0x150] sm:$0xff]  ;;  %v460_v40 = vld [vmem:[%s10881_s1 + $0x58] sm:$0xff]  ;;  %v458_v26 = vld [vmem:[%s10881_s1 + $0x48] sm:$0xff] }
  0x61   :  { %506 = vmatpush1.msra.mxu0 %v471_v63  ;;  %598 = vmatpush1.msra.mxu1 %v9314_v2  ;;  %v9341_v63 = vld [vmem:[%s10881_s1 + $0x148] sm:$0xff]  ;;  %v457_v27 = vld [vmem:[%s10881_s1 + $0x40] sm:$0xff]  ;;  %v455_v28 = vld [vmem:[%s10881_s1 + $0x30] sm:$0xff] }
  0x62   :  { %507 = vmatprep.subr.mxu0 %v470_v1  ;;  %599 = vmatprep.subr.mxu1 %v9323_v5  ;;  %v9350_v1 = vld [vmem:[%s10881_s1 + $0x140] sm:$0xff] }
  0x63   :  { %508 = vmatpush1.msra.mxu0 %v469_v4  ;;  %600 = vmatpush1.msra.mxu1 %v9332_v60  ;;  %v9359_v4 = vld [vmem:[%s10881_s1 + $0x138] sm:$0xff] }
  0x64   :  { %509 = vmatprep.subr.mxu0 %v468_v7  ;;  %601 = vmatprep.subr.mxu1 %v9341_v63  ;;  %v9368_v7 = vld [vmem:[%s10881_s1 + $0x130] sm:$0xff] }
  0x65   :  { %510 = vmatpush1.msra.mxu0 %v467_v61  ;;  %602 = vmatpush1.msra.mxu1 %v9350_v1  ;;  %v9377_v61 = vld [vmem:[%s10881_s1 + $0x128] sm:$0xff] }
  0x66   :  { %511 = vmatprep.subr.mxu0 %v466_v3  ;;  %603 = vmatprep.subr.mxu1 %v9359_v4  ;;  %v9386_v3 = vld [vmem:[%s10881_s1 + $0x120] sm:$0xff] }
  0x67   :  { %512 = vmatpush1.msra.mxu0 %v465_v57  ;;  %604 = vmatpush1.msra.mxu1 %v9368_v7  ;;  %v9395_v57 = vld [vmem:[%s10881_s1 + $0x118] sm:$0xff] }
  0x68   :  { %513 = vmatprep.subr.mxu0 %v464_v56  ;;  %605 = vmatprep.subr.mxu1 %v9377_v61  ;;  %v9404_v56 = vld [vmem:[%s10881_s1 + $0x110] sm:$0xff] }
  0x69   :  { %514 = vmatpush1.msra.mxu0 %v463_v58  ;;  %606 = vmatpush1.msra.mxu1 %v9386_v3  ;;  %v9413_v58 = vld [vmem:[%s10881_s1 + $0x108] sm:$0xff] }
  0x6a   :  { %515 = vmatprep.subr.mxu0 %v462_v24  ;;  %607 = vmatprep.subr.mxu1 %v9395_v57  ;;  %v9422_v24 = vld [vmem:[%s10881_s1 + $0x100] sm:$0xff] }
  0x6b   :  { %516 = vmatpush1.msra.mxu0 %v461_v25  ;;  %608 = vmatpush1.msra.mxu1 %v9404_v56  ;;  %v456_v25 = vld [vmem:[%s10881_s1 + $0x38] sm:$0xff] }
  0x6c   :  { %517 = vmatprep.subr.mxu0 %v460_v40  ;;  %609 = vmatprep.subr.mxu1 %v9413_v58  ;;  %v454_v40 = vld [vmem:[%s10881_s1 + $0x28] sm:$0xff] }
  0x6d   :  { %518 = vmatpush1.msra.mxu0 %v459_v41  ;;  %610 = vmatpush1.msra.mxu1 %v9422_v24  ;;  %v453_v41 = vld [vmem:[%s10881_s1 + $0x20] sm:$0xff] }
  0x6e   :  { %519 = vmatprep.subr.mxu0 %v458_v26  ;;  %644 = vmatmul.mubr.f32.vlgmr.msra.gmra.mxu1 %v11069_v29  ;;  %v452_v26 = vld [vmem:[%s10881_s1 + $0x18] sm:$0xff] }
  0x6f   :  { %520 = vmatpush1.msra.mxu0 %v457_v27  ;;  %712 = vmatprep.subr.mxu1 %v9287_v6  ;;  %v451_v27 = vld [vmem:[%s10881_s1 + $0x10] sm:$0xff] }
  0x70   :  { %521 = vmatprep.subr.mxu0 %v456_v25  ;;  %713 = vmatpush1.msra.mxu1 %v9296_v62  ;;  %v450_v25 = vld [vmem:[%s10881_s1 + $0x8] sm:$0xff] }
  0x71   :  { %522 = vmatpush1.msra.mxu0 %v455_v28  ;;  %714 = vmatprep.subr.mxu1 %v9305_v0  ;;  %v449_v28 = vld [vmem:[%s10881_s1] sm:$0xff]  ;;  %s8717_s1 = smov 64  }
  0x72   :  { %523 = vmatprep.subr.mxu0 %v454_v40  ;;  %715 = vmatpush1.msra.mxu1 %v9314_v2  ;;  %v10904_v40 = vlaneseq }
  0x73   :  { %524 = vmatpush1.msra.mxu0 %v453_v41  ;;  %716 = vmatprep.subr.mxu1 %v9323_v5 }
  0x74   :  { %525 = vmatprep.subr.mxu0 %v452_v26  ;;  %717 = vmatpush1.msra.mxu1 %v9332_v60  ;;  %v9475_v26 = vand.u32 127, %v10904_v40 }
  0x75   :  { %526 = vmatpush1.msra.mxu0 %v451_v27  ;;  %718 = vmatprep.subr.mxu1 %v9341_v63 }
  0x76   :  { %527 = vmatprep.subr.mxu0 %v450_v25  ;;  %719 = vmatpush1.msra.mxu1 %v9350_v1  ;;  %v10905_v25 = vmov 1.0   ;;  %vm574_vm3 = vcmp.lt.s32.totalorder %v9475_v26, 32 }
  0x77   :  { %528 = vmatpush1.msra.mxu0 %v449_v28  ;;  %720 = vmatprep.subr.mxu1 %v9359_v4 }
  0x78   :  { %760 = vmatprep.mubr.f32.mxu1 %v11069_v29  ;;  %721 = vmatpush1.msra.mxu1 %v9368_v7 }
  0x79   :  { %841 = vmatprep.subr.mxu0 %v9287_v6  ;;  %722 = vmatprep.subr.mxu1 %v9377_v61 }
  0x7a   :  { %723 = vmatpush1.msra.mxu1 %v9386_v3  ;;  %8022 = vset.pattern.permute.xlu1 %v10915_v30 }
  0x7b   :  { %724 = vmatprep.subr.mxu1 %v9395_v57 }
  0x7c   :  { %725 = vmatpush1.msra.mxu1 %v9404_v56 }
  0x7d   :  { %726 = vmatprep.subr.mxu1 %v9413_v58 }
  0x7e   :  { %727 = vmatpush1.msra.mxu1 %v9422_v24 }
  0x7f   :  { %970 = vmatprep.subr.mxu1 %v9287_v6 }
  0xd4   :  { %v431_v41 = vpop.permute.xlu0 %430 }
  0xd5   :  { %vm435_vm0 = vcmp.eq.s32.totalorder %v431_v41, %v9475_v26 }
  0xd9   :  { %v439_v27 = vpop.permute.xlu0 %438 }
  0xda   :  { %vm443_vm1 = vcmp.eq.s32.totalorder %v439_v27, %v9475_v26 }
  0xdb   :  { %vm445_vm2 = vmor %vm435_vm0, %vm443_vm1 }
  0xdc   :  { %6816 = vmatmul.mubr.msk.f32.vlgmr.msra.gmra.mxu0 %vm445_vm2, %v10905_v25 }
  0xdd   :  { %567 = vmatprep.mubr.f32.mxu0 %v11069_v29  ;;  %842 = vmatpush1.msra.mxu0 %v9296_v62 }
  0xde   :  { %843 = vmatprep.subr.mxu0 %v9305_v0 }
  0xdf   :  { %844 = vmatpush1.msra.mxu0 %v9314_v2 }
  0xe0   :  { %845 = vmatprep.subr.mxu0 %v9323_v5 }
  0xe1   :  { %846 = vmatpush1.msra.mxu0 %v9332_v60 }
  0xe2   :  { %847 = vmatprep.subr.mxu0 %v9341_v63 }
  0xe3   :  { %848 = vmatpush1.msra.mxu0 %v9350_v1 }
  0xe4   :  { %849 = vmatprep.subr.mxu0 %v9359_v4 }
  0xe5   :  { %850 = vmatpush1.msra.mxu0 %v9368_v7 }
  0xe6   :  { %851 = vmatprep.subr.mxu0 %v9377_v61 }
  0xe7   :  { %852 = vmatpush1.msra.mxu0 %v9386_v3 }
  0xe8   :  { %853 = vmatprep.subr.mxu0 %v9395_v57 }
  0xe9   :  { %854 = vmatpush1.msra.mxu0 %v9404_v56 }
  0xea   :  { %855 = vmatprep.subr.mxu0 %v9413_v58 }
  0xeb   :  { %856 = vmatpush1.msra.mxu0 %v9422_v24 }
  0xec   :  { %1099 = vmatprep.subr.mxu0 %v9287_v6 }
 0x12e   :  { %v645_v28 = vpop.f32.mrf.mxu1 }
 0x130   :  { %v647_v27 = vpop.f32.mrf.mxu1 }
 0x19c   :  { %v9497_v41 = vpop.f32.mrf.mxu0 }
 0x19d   :  { %v650_v32 = vadd.f32 %v645_v28, %v9497_v41 }
 0x19e   :  { %v9499_v40 = vpop.f32.mrf.mxu0 }
 0x19f   :  { %v651_v25 = vadd.f32 %v647_v27, %v9499_v40  ;;  %v6818_v33 = vmul.f32 -1.442695, %v650_v32  ;;  %v11070_v27 = vmov 0  }
 0x1a1   :  { %8025 = vtanh.f32 %v651_v25  ;;  %v6819_v32 = vmul.f32 -1.442695, %v651_v25 }
 0x1a2   :  { %8027 = vpow2.f32 %v6818_v33 }
 0x1ae   :  { %v8026_v31 = vpop.eup %8025 }
 0x1af   :  { %667 = vrot.lane.b32.xlu1 %v8026_v31, %s8717_s1  ;;  %v8028_v34 = vpop.eup %8027 }
 0x1b0   :  { %v658_v35 = vadd.f32 1.0, %v8028_v34 }
 0x1b2   :  { %8029 = vrcp.f32 %v658_v35  ;;  %v8718_v35 = vmov 7  }
 0x1bf   :  { %v8030_v36 = vpop.eup %8029 }
 0x1c0   :  { %v665_v30 = vmul.f32 0.0, %v8030_v36 }
 0x221   :  { %v668_v37 = vpop.permute.xlu1 %667 }
 0x222   :  { %v670_v38 = vmul.f32 %v8030_v36, %v668_v37  ;;  %v682_v37 = vsel %vm574_vm3, 0, %v8718_v35 }
 0x224   :  { %672 = vrot.lane.b32.xlu1 %v670_v38, %s8717_s1 }
 0x228   :  { %684 = vperm.xlu1 %8022, %v9254_v59  }
 0x22c   :  { %8023 = vset.pattern.permute.xlu1 %v11070_v27 }
 0x296   :  { %v673_v39 = vpop.permute.xlu1 %672 }
 0x297   :  { %v675_v8 = vadd.f32 %v673_v39, %v665_v30 }
 0x299   :  { %8031 = vtanh.f32 %v675_v8  ;;  %689 = vrot.lane.b32.xlu1 %v675_v8, %s8717_s1 }
 0x29a   :  { %8033 = vpow2.f32 %v6819_v32 }
 0x2a3   :  { %v9511_v34 = vpop.permute.xlu1 %684 }
 0x2a4   :  { %vm686_vm4 = vcmp.lt.s32.totalorder %v682_v37, %v9511_v34  ;;  %v426_v37 = vld [vmem:[%s10880_s0 + $0x8] sm:$0xff] }
 0x2a6   :  { %v8032_v31 = vpop.eup %8031 }
 0x2a7   :  { %678 = vrot.lane.b32.xlu0 %v8032_v31, %s8717_s1  ;;  %v8034_v33 = vpop.eup %8033 }
 0x2a8   :  { %v659_v36 = vadd.f32 1.0, %v8034_v33 }
 0x2aa   :  { %8035 = vrcp.f32 %v659_v36 }
 0x2b7   :  { %v8036_v39 = vpop.eup %8035 }
 0x30b   :  { %v690_v30 = vpop.permute.xlu1 %689 }
 0x30c   :  { %v9516_v8 = vsel %vm686_vm4, %v690_v30, 0.0 }
 0x30d   :  { %v789_v38 = vrot.slane %v9516_v8, 6 }
 0x30f   :  { %790 = vrot.lane.b32.xlu1 %v789_v38, %s8717_s1 }
 0x313   :  { %433 = vperm.xlu1 %8023, %v426_v37  }
 0x319   :  { %v679_v59 = vpop.permute.xlu0 %678 }
 0x31a   :  { %v681_v25 = vmul.f32 %v8036_v39, %v679_v59 }
 0x31c   :  { %v9520_v28 = vsel %vm686_vm4, %v681_v25, 0.0 }
 0x31d   :  { %6820 = vmatmul.mubr.msk.f32.vlgmr.msra.gmra.mxu1 %vm575_vm5, %v9520_v28 }
 0x31e   :  { %971 = vmatpush1.msra.mxu1 %v9296_v62  ;;  %1018 = vmatprep.mubr.f32.mxu1 %v11069_v29 }
 0x31f   :  { %972 = vmatprep.subr.mxu1 %v9305_v0 }
 0x320   :  { %973 = vmatpush1.msra.mxu1 %v9314_v2 }
 0x321   :  { %974 = vmatprep.subr.mxu1 %v9323_v5 }
 0x322   :  { %975 = vmatpush1.msra.mxu1 %v9332_v60 }
 0x323   :  { %976 = vmatprep.subr.mxu1 %v9341_v63 }
 0x324   :  { %977 = vmatpush1.msra.mxu1 %v9350_v1 }
 0x325   :  { %978 = vmatprep.subr.mxu1 %v9359_v4 }
 0x326   :  { %979 = vmatpush1.msra.mxu1 %v9368_v7 }
 0x327   :  { %980 = vmatprep.subr.mxu1 %v9377_v61 }
 0x328   :  { %981 = vmatpush1.msra.mxu1 %v9386_v3 }
 0x329   :  { %982 = vmatprep.subr.mxu1 %v9395_v57 }
 0x32a   :  { %983 = vmatpush1.msra.mxu1 %v9404_v56 }
 0x32b   :  { %984 = vmatprep.subr.mxu1 %v9413_v58 }
 0x32c   :  { %985 = vmatpush1.msra.mxu1 %v9422_v24 }
 0x32d   :  { %1217 = vmatprep.subr.mxu1 %v9287_v6 }
 0x381   :  { %v791_v11 = vpop.permute.xlu1 %790 }
 0x3dd   :  { %v762_v31 = vpop.f32.mrf.mxu1 }
 0x3de   :  { %v769_v30 = vrot.slane %v762_v31, 6 }
 0x3df   :  { %v764_v32 = vpop.f32.mrf.mxu1 }
 0x3e0   :  { %v770_v33 = vrot.slane %v764_v32, 6  ;;  %v773_v38 = vadd.f32 %v769_v30, %v9497_v41  ;;  %v434_v30 = vpop.permute.xlu1 %433 }
 0x3e1   :  { %vm436_vm6 = vcmp.eq.s32.totalorder %v434_v30, %v9475_v26 }
 0x3e2   :  { %v774_v35 = vadd.f32 %v770_v33, %v9499_v40  ;;  %v6821_v39 = vmul.f32 -1.442695, %v773_v38 }
 0x3e4   :  { %8037 = vtanh.f32 %v774_v35 }
 0x3e5   :  { %8039 = vpow2.f32 %v6821_v39  ;;  %v11072_v39 = vmov 1.0  }
 0x3f1   :  { %v8038_v36 = vpop.eup %8037 }
 0x3f2   :  { %795 = vrot.lane.b32.xlu0 %v8038_v36, %s8717_s1  ;;  %v8040_v59 = vpop.eup %8039 }
 0x3f3   :  { %v781_v25 = vadd.f32 1.0, %v8040_v59 }
 0x3f5   :  { %8041 = vrcp.f32 %v781_v25 }
 0x402   :  { %v8042_v32 = vpop.eup %8041 }
 0x403   :  { %v793_v42 = vmul.f32 %v8042_v32, %v791_v11  ;;  %v6822_v11 = vmul.f32 -1.442695, %v774_v35 }
 0x464   :  { %v796_v9 = vpop.permute.xlu0 %795 }
 0x465   :  { %v798_v33 = vmul.f32 %v8042_v32, %v796_v9 }
 0x467   :  { %800 = vrot.lane.b32.xlu0 %v798_v33, %s8717_s1 }
 0x46b   :  { %441 = vperm.xlu0 %8021, %v426_v37   ;;  %v8719_v37 = vmov 6  }
 0x46c   :  { %v810_v59 = vsel %vm574_vm3, 1, %v8719_v37 }
 0x46d   :  { %vm811_vm9 = vcmp.lt.s32.totalorder %v810_v59, %v9511_v34 }
 0x46f   :  { %8024 = vset.pattern.permute.xlu0 %v11071_v10 }
 0x4d9   :  { %v801_v43 = vpop.permute.xlu0 %800 }
 0x4da   :  { %v803_v36 = vadd.f32 %v801_v43, %v793_v42 }
 0x4dc   :  { %8043 = vtanh.f32 %v803_v36  ;;  %v817_v31 = vrot.slane %v803_v36, 2 }
 0x4dd   :  { %8045 = vpow2.f32 %v6822_v11 }
 0x4de   :  { %818 = vrot.lane.b32.xlu0 %v817_v31, %s8717_s1 }
 0x4e6   :  { %v442_v38 = vpop.permute.xlu0 %441 }
 0x4e7   :  { %vm444_vm7 = vcmp.eq.s32.totalorder %v442_v38, %v9475_v26 }
 0x4e8   :  { %vm446_vm8 = vmor %vm436_vm6, %vm444_vm7 }
 0x4e9   :  { %v8044_v9 = vpop.eup %8043  ;;  %6817 = vmatmul.mubr.msk.f32.gmra.mxu0 %vm446_vm8, %v11072_v39 }
 0x4ea   :  { %806 = vrot.lane.b32.xlu1 %v8044_v9, %s8717_s1  ;;  %889 = vmatprep.mubr.f32.mxu0 %v11069_v29  ;;  %v8046_v42 = vpop.eup %8045 }
 0x4eb   :  { %v782_v43 = vadd.f32 1.0, %v8046_v42 }
 0x4ed   :  { %8047 = vrcp.f32 %v782_v43 }
 0x4fa   :  { %v8048_v36 = vpop.eup %8047 }
 0x550   :  { %v819_v25 = vpop.permute.xlu0 %818 }
 0x551   :  { %v9559_v32 = vsel %vm811_vm9, %v819_v25, %v9516_v8 }
 0x552   :  { %v918_v33 = vrot.slane %v9559_v32, 4 }
 0x554   :  { %919 = vrot.lane.b32.xlu0 %v918_v33, %s8717_s1 }
 0x55c   :  { %v807_v35 = vpop.permute.xlu1 %806 }
 0x55d   :  { %v809_v31 = vmul.f32 %v8048_v36, %v807_v35 }
 0x55f   :  { %v813_v30 = vrot.slane %v809_v31, 2 }
 0x561   :  { %v9564_v38 = vsel %vm811_vm9, %v813_v30, %v9520_v28 }
 0x562   :  { %6823 = vmatmul.mubr.msk.f32.vlgmr.msra.gmra.mxu0 %vm575_vm5, %v9564_v38 }
 0x563   :  { %1100 = vmatpush1.msra.mxu0 %v9296_v62  ;;  %1147 = vmatprep.mubr.f32.mxu0 %v11069_v29 }
 0x564   :  { %1101 = vmatprep.subr.mxu0 %v9305_v0 }
 0x565   :  { %1102 = vmatpush1.msra.mxu0 %v9314_v2 }
 0x566   :  { %1103 = vmatprep.subr.mxu0 %v9323_v5 }
 0x567   :  { %1104 = vmatpush1.msra.mxu0 %v9332_v60 }
 0x568   :  { %1105 = vmatprep.subr.mxu0 %v9341_v63 }
 0x569   :  { %1106 = vmatpush1.msra.mxu0 %v9350_v1 }
 0x56a   :  { %1107 = vmatprep.subr.mxu0 %v9359_v4 }
 0x56b   :  { %1108 = vmatpush1.msra.mxu0 %v9368_v7 }
 0x56c   :  { %1109 = vmatprep.subr.mxu0 %v9377_v61 }
 0x56d   :  { %1110 = vmatpush1.msra.mxu0 %v9386_v3 }
 0x56e   :  { %1111 = vmatprep.subr.mxu0 %v9395_v57 }
 0x56f   :  { %1112 = vmatpush1.msra.mxu0 %v9404_v56 }
 0x570   :  { %1113 = vmatprep.subr.mxu0 %v9413_v58 }
 0x571   :  { %1114 = vmatpush1.msra.mxu0 %v9422_v24 }
 0x572   :  { %1346 = vmatprep.subr.mxu0 %v9287_v6 }
 0x5a9   :  { %v9585_v8 = vpop.f32.mrf.mxu0 }
 0x5ab   :  { %v9587_v28 = vpop.f32.mrf.mxu0 }
 0x622   :  { %v891_v9 = vpop.f32.mrf.mxu0 }
 0x623   :  { %v898_v37 = vrot.slane %v891_v9, 4 }
 0x624   :  { %v893_v39 = vpop.f32.mrf.mxu0 }
 0x625   :  { %v899_v11 = vrot.slane %v893_v39, 4  ;;  %v902_v59 = vadd.f32 %v898_v37, %v9497_v41  ;;  %v920_v39 = vpop.permute.xlu0 %919 }
 0x627   :  { %v903_v42 = vadd.f32 %v899_v11, %v9499_v40  ;;  %v6824_v25 = vmul.f32 -1.442695, %v902_v59 }
 0x629   :  { %8049 = vtanh.f32 %v903_v42 }
 0x62a   :  { %8051 = vpow2.f32 %v6824_v25  ;;  %v8720_v25 = vmov 5  }
 0x636   :  { %v8050_v43 = vpop.eup %8049 }
 0x637   :  { %924 = vrot.lane.b32.xlu1 %v8050_v43, %s8717_s1  ;;  %v8052_v33 = vpop.eup %8051  ;;  %v6825_v43 = vmul.f32 -1.442695, %v903_v42 }
 0x638   :  { %v910_v36 = vadd.f32 1.0, %v8052_v33  ;;  %v939_v33 = vsel %vm574_vm3, 2, %v8720_v25 }
 0x639   :  { %vm940_vm10 = vcmp.lt.s32.totalorder %v939_v33, %v9511_v34 }
 0x63a   :  { %8053 = vrcp.f32 %v910_v36 }
 0x647   :  { %v8054_v35 = vpop.eup %8053 }
 0x648   :  { %v922_v12 = vmul.f32 %v8054_v35, %v920_v39 }
 0x6a9   :  { %v925_v31 = vpop.permute.xlu1 %924 }
 0x6aa   :  { %v927_v30 = vmul.f32 %v8054_v35, %v925_v31 }
 0x6ac   :  { %929 = vrot.lane.b32.xlu1 %v927_v30, %s8717_s1 }
 0x71e   :  { %v930_v11 = vpop.permute.xlu1 %929 }
 0x71f   :  { %v932_v13 = vadd.f32 %v930_v11, %v922_v12 }
 0x721   :  { %8055 = vtanh.f32 %v932_v13  ;;  %v946_v44 = vrot.slane %v932_v13, 4 }
 0x722   :  { %8057 = vpow2.f32 %v6825_v43 }
 0x723   :  { %947 = vrot.lane.b32.xlu1 %v946_v44, %s8717_s1 }
 0x72e   :  { %v8056_v9 = vpop.eup %8055 }
 0x72f   :  { %935 = vrot.lane.b32.xlu0 %v8056_v9, %s8717_s1  ;;  %v8058_v37 = vpop.eup %8057 }
 0x730   :  { %v911_v59 = vadd.f32 1.0, %v8058_v37 }
 0x732   :  { %8059 = vrcp.f32 %v911_v59 }
 0x73f   :  { %v8060_v44 = vpop.eup %8059 }
 0x795   :  { %v948_v36 = vpop.permute.xlu1 %947 }
 0x796   :  { %v9599_v12 = vsel %vm940_vm10, %v948_v36, %v9559_v32 }
 0x797   :  { %v1047_v13 = vrot.slane %v9599_v12, 2 }
 0x799   :  { %1048 = vrot.lane.b32.xlu1 %v1047_v13, %s8717_s1 }
 0x7a1   :  { %v936_v42 = vpop.permute.xlu0 %935 }
 0x7a2   :  { %v938_v35 = vmul.f32 %v8060_v44, %v936_v42 }
 0x7a4   :  { %v942_v31 = vrot.slane %v938_v35, 4 }
 0x7a6   :  { %v944_v30 = vsel %vm940_vm10, %v942_v31, %v9564_v38 }
 0x7a7   :  { %6826 = vmatmul.mubr.msk.f32.vlgmr.msra.gmra.mxu1 %vm575_vm5, %v944_v30 }
 0x7a8   :  { %1218 = vmatpush1.msra.mxu1 %v9296_v62  ;;  %1265 = vmatprep.mubr.f32.mxu1 %v11069_v29 }
 0x7a9   :  { %1219 = vmatprep.subr.mxu1 %v9305_v0 }
 0x7aa   :  { %1220 = vmatpush1.msra.mxu1 %v9314_v2 }
 0x7ab   :  { %1221 = vmatprep.subr.mxu1 %v9323_v5 }
 0x7ac   :  { %1222 = vmatpush1.msra.mxu1 %v9332_v60 }
 0x7ad   :  { %1223 = vmatprep.subr.mxu1 %v9341_v63 }
 0x7ae   :  { %1224 = vmatpush1.msra.mxu1 %v9350_v1 }
 0x7af   :  { %1225 = vmatprep.subr.mxu1 %v9359_v4 }
 0x7b0   :  { %1226 = vmatpush1.msra.mxu1 %v9368_v7 }
 0x7b1   :  { %1227 = vmatprep.subr.mxu1 %v9377_v61 }
 0x7b2   :  { %1228 = vmatpush1.msra.mxu1 %v9386_v3 }
 0x7b3   :  { %1229 = vmatprep.subr.mxu1 %v9395_v57 }
 0x7b4   :  { %1230 = vmatpush1.msra.mxu1 %v9404_v56 }
 0x7b5   :  { %1231 = vmatprep.subr.mxu1 %v9413_v58 }
 0x7b6   :  { %1232 = vmatpush1.msra.mxu1 %v9422_v24 }
 0x7b7   :  { %1475 = vmatprep.subr.mxu1 %v9287_v6 }
 0x80b   :  { %v1049_v44 = vpop.permute.xlu1 %1048 }
 0x867   :  { %v1020_v32 = vpop.f32.mrf.mxu1 }
 0x868   :  { %v1027_v43 = vrot.slane %v1020_v32, 2 }
 0x869   :  { %v1022_v38 = vpop.f32.mrf.mxu1 }
 0x86a   :  { %v1028_v39 = vrot.slane %v1022_v38, 2  ;;  %v1031_v37 = vadd.f32 %v1027_v43, %v9497_v41 }
 0x86c   :  { %v1032_v11 = vadd.f32 %v1028_v39, %v9499_v40  ;;  %v6827_v59 = vmul.f32 -1.442695, %v1031_v37 }
 0x86e   :  { %8061 = vtanh.f32 %v1032_v11  ;;  %v6828_v41 = vmul.f32 -1.442695, %v1032_v11 }
 0x86f   :  { %8063 = vpow2.f32 %v6827_v59 }
 0x87b   :  { %v8062_v9 = vpop.eup %8061 }
 0x87c   :  { %1053 = vrot.lane.b32.xlu0 %v8062_v9, %s8717_s1  ;;  %v8064_v25 = vpop.eup %8063  ;;  %v8721_v9 = vmov 4  }
 0x87d   :  { %v1039_v33 = vadd.f32 1.0, %v8064_v25  ;;  %v1068_v43 = vsel %vm574_vm3, 3, %v8721_v9 }
 0x87e   :  { %vm1069_vm11 = vcmp.lt.s32.totalorder %v1068_v43, %v9511_v34 }
 0x87f   :  { %8065 = vrcp.f32 %v1039_v33 }
 0x88c   :  { %v8066_v36 = vpop.eup %8065 }
 0x88d   :  { %v1051_v42 = vmul.f32 %v8066_v36, %v1049_v44 }
 0x8ee   :  { %v1054_v13 = vpop.permute.xlu0 %1053 }
 0x8ef   :  { %v1056_v6 = vmul.f32 %v8066_v36, %v1054_v13 }
 0x8f1   :  { %1058 = vrot.lane.b32.xlu0 %v1056_v6, %s8717_s1 }
 0x963   :  { %v1059_v40 = vpop.permute.xlu0 %1058 }
 0x964   :  { %v1061_v35 = vadd.f32 %v1059_v40, %v1051_v42 }
 0x966   :  { %8067 = vtanh.f32 %v1061_v35  ;;  %v1075_v31 = vrot.slane %v1061_v35, 6 }
 0x967   :  { %8069 = vpow2.f32 %v6828_v41 }
 0x968   :  { %1076 = vrot.lane.b32.xlu0 %v1075_v31, %s8717_s1 }
 0x973   :  { %v8068_v32 = vpop.eup %8067 }
 0x974   :  { %1064 = vrot.lane.b32.xlu1 %v8068_v32, %s8717_s1  ;;  %v8070_v38 = vpop.eup %8069 }
 0x975   :  { %v1040_v39 = vadd.f32 1.0, %v8070_v38 }
 0x977   :  { %8071 = vrcp.f32 %v1040_v39 }
 0x984   :  { %v8072_v25 = vpop.eup %8071 }
 0x9da   :  { %v1077_v37 = vpop.permute.xlu0 %1076 }
 0x9db   :  { %v1079_v59 = vsel %vm1069_vm11, %v1077_v37, %v9599_v12 }
 0x9dc   :  { %1170 = vrot.lane.b32.xlu0 %v1079_v59, %s8717_s1 }
 0x9e6   :  { %v1065_v33 = vpop.permute.xlu1 %1064 }
 0x9e7   :  { %v1067_v36 = vmul.f32 %v8072_v25, %v1065_v33 }
 0x9e9   :  { %v1071_v13 = vrot.slane %v1067_v36, 6 }
 0x9eb   :  { %v1073_v11 = vsel %vm1069_vm11, %v1071_v13, %v944_v30 }
 0x9ec   :  { %6829 = vmatmul.mubr.msk.f32.vlgmr.msra.gmra.mxu0 %vm575_vm5, %v1073_v11 }
 0x9ed   :  { %1347 = vmatpush1.msra.mxu0 %v9296_v62  ;;  %1394 = vmatprep.mubr.f32.mxu0 %v11069_v29 }
 0x9ee   :  { %1348 = vmatprep.subr.mxu0 %v9305_v0 }
 0x9ef   :  { %1349 = vmatpush1.msra.mxu0 %v9314_v2 }
 0x9f0   :  { %1350 = vmatprep.subr.mxu0 %v9323_v5 }
 0x9f1   :  { %1351 = vmatpush1.msra.mxu0 %v9332_v60 }
 0x9f2   :  { %1352 = vmatprep.subr.mxu0 %v9341_v63 }
 0x9f3   :  { %1353 = vmatpush1.msra.mxu0 %v9350_v1 }
 0x9f4   :  { %1354 = vmatprep.subr.mxu0 %v9359_v4 }
 0x9f5   :  { %1355 = vmatpush1.msra.mxu0 %v9368_v7 }
 0x9f6   :  { %1356 = vmatprep.subr.mxu0 %v9377_v61 }
 0x9f7   :  { %1357 = vmatpush1.msra.mxu0 %v9386_v3 }
 0x9f8   :  { %1358 = vmatprep.subr.mxu0 %v9395_v57 }
 0x9f9   :  { %1359 = vmatpush1.msra.mxu0 %v9404_v56 }
 0x9fa   :  { %1360 = vmatprep.subr.mxu0 %v9413_v58 }
 0x9fb   :  { %1361 = vmatpush1.msra.mxu0 %v9422_v24 }
 0xa4e   :  { %v1171_v39 = vpop.permute.xlu0 %1170 }
 0xaac   :  { %v1149_v12 = vpop.f32.mrf.mxu0 }
 0xaad   :  { %v1154_v42 = vadd.f32 %v1149_v12, %v9585_v8  ;;  %v8722_v12 = vmov 3  }
 0xaae   :  { %v1151_v30 = vpop.f32.mrf.mxu0 }
 0xaaf   :  { %v1155_v6 = vadd.f32 %v1151_v30, %v9587_v28  ;;  %v6830_v40 = vmul.f32 -1.442695, %v1154_v42  ;;  %v1190_v30 = vsel %vm574_vm3, 4, %v8722_v12 }
 0xab0   :  { %vm1191_vm12 = vcmp.lt.s32.totalorder %v1190_v30, %v9511_v34 }
 0xab1   :  { %8073 = vtanh.f32 %v1155_v6  ;;  %v6831_v33 = vmul.f32 -1.442695, %v1155_v6 }
 0xab2   :  { %8075 = vpow2.f32 %v6830_v40 }
 0xabe   :  { %v8074_v44 = vpop.eup %8073 }
 0xabf   :  { %1175 = vrot.lane.b32.xlu1 %v8074_v44, %s8717_s1  ;;  %v8076_v35 = vpop.eup %8075 }
 0xac0   :  { %v1162_v31 = vadd.f32 1.0, %v8076_v35 }
 0xac2   :  { %8077 = vrcp.f32 %v1162_v31 }
 0xacf   :  { %v8078_v32 = vpop.eup %8077 }
 0xad0   :  { %v1173_v9 = vmul.f32 %v8078_v32, %v1171_v39 }
 0xb31   :  { %v1176_v41 = vpop.permute.xlu1 %1175 }
 0xb32   :  { %v1178_v38 = vmul.f32 %v8078_v32, %v1176_v41 }
 0xb34   :  { %1180 = vrot.lane.b32.xlu1 %v1178_v38, %s8717_s1 }
 0xba6   :  { %v1181_v43 = vpop.permute.xlu1 %1180 }
 0xba7   :  { %v1183_v37 = vadd.f32 %v1181_v43, %v1173_v9 }
 0xba9   :  { %8079 = vtanh.f32 %v1183_v37  ;;  %1194 = vrot.lane.b32.xlu1 %v1183_v37, %s8717_s1  ;;  %v1315_v37 = vsel %vm574_vm3, 5, %v11071_v10 }
 0xbaa   :  { %8081 = vpow2.f32 %v6831_v33  ;;  %vm1316_vm13 = vcmp.lt.s32.totalorder %v1315_v37, %v9511_v34 }
 0xbb6   :  { %v8080_v25 = vpop.eup %8079 }
 0xbb7   :  { %1186 = vrot.lane.b32.xlu0 %v8080_v25, %s8717_s1  ;;  %v8082_v36 = vpop.eup %8081 }
 0xbb8   :  { %v1163_v13 = vadd.f32 1.0, %v8082_v36 }
 0xbba   :  { %8083 = vrcp.f32 %v1163_v13 }
 0xbc7   :  { %v8084_v35 = vpop.eup %8083 }
 0xc1b   :  { %v1195_v44 = vpop.permute.xlu1 %1194 }
 0xc1c   :  { %v1197_v42 = vsel %vm1191_vm12, %v1195_v44, %v1079_v59 }
 0xc1d   :  { %v1294_v40 = vrot.slane %v1197_v42, 6 }
 0xc1f   :  { %1295 = vrot.lane.b32.xlu1 %v1294_v40, %s8717_s1 }
 0xc29   :  { %v1187_v31 = vpop.permute.xlu0 %1186 }
 0xc2a   :  { %v1189_v32 = vmul.f32 %v8084_v35, %v1187_v31 }
 0xc2c   :  { %v1192_v41 = vsel %vm1191_vm12, %v1189_v32, %v1073_v11 }
 0xc2d   :  { %6832 = vmatmul.mubr.msk.f32.vlgmr.msra.gmra.mxu1 %vm575_vm5, %v1192_v41 }
 0xc2e   :  { %1476 = vmatpush1.msra.mxu1 %v9296_v62  ;;  %1523 = vmatprep.mubr.f32.mxu1 %v11069_v29 }
 0xc2f   :  { %1477 = vmatprep.subr.mxu1 %v9305_v0 }
 0xc30   :  { %1478 = vmatpush1.msra.mxu1 %v9314_v2 }
 0xc31   :  { %1479 = vmatprep.subr.mxu1 %v9323_v5 }
 0xc32   :  { %1480 = vmatpush1.msra.mxu1 %v9332_v60 }
 0xc33   :  { %1481 = vmatprep.subr.mxu1 %v9341_v63 }
 0xc34   :  { %1482 = vmatpush1.msra.mxu1 %v9350_v1 }
 0xc35   :  { %1483 = vmatprep.subr.mxu1 %v9359_v4 }
 0xc36   :  { %1484 = vmatpush1.msra.mxu1 %v9368_v7 }
 0xc37   :  { %1485 = vmatprep.subr.mxu1 %v9377_v61 }
 0xc38   :  { %1486 = vmatpush1.msra.mxu1 %v9386_v3 }
 0xc39   :  { %1487 = vmatprep.subr.mxu1 %v9395_v57 }
 0xc3a   :  { %1488 = vmatpush1.msra.mxu1 %v9404_v56 }
 0xc3b   :  { %1489 = vmatprep.subr.mxu1 %v9413_v58 }
 0xc3c   :  { %1490 = vmatpush1.msra.mxu1 %v9422_v24 }
 0xc91   :  { %v1296_v58 = vpop.permute.xlu1 %1295 }
 0xced   :  { %v1267_v62 = vpop.f32.mrf.mxu1 }
 0xcee   :  { %v1274_v63 = vrot.slane %v1267_v62, 6 }
 0xcef   :  { %v1269_v0 = vpop.f32.mrf.mxu1 }
 0xcf0   :  { %v1275_v2 = vrot.slane %v1269_v0, 6  ;;  %v1278_v1 = vadd.f32 %v1274_v63, %v9585_v8 }
 0xcf2   :  { %v1279_v5 = vadd.f32 %v1275_v2, %v9587_v28  ;;  %v6833_v4 = vmul.f32 -1.442695, %v1278_v1 }
 0xcf4   :  { %8085 = vtanh.f32 %v1279_v5  ;;  %v6834_v39 = vmul.f32 -1.442695, %v1279_v5 }
 0xcf5   :  { %8087 = vpow2.f32 %v6833_v4 }
 0xd01   :  { %v8086_v60 = vpop.eup %8085 }
 0xd02   :  { %1300 = vrot.lane.b32.xlu0 %v8086_v60, %s8717_s1  ;;  %v8088_v7 = vpop.eup %8087 }
 0xd03   :  { %v1286_v61 = vadd.f32 1.0, %v8088_v7 }
 0xd05   :  { %8089 = vrcp.f32 %v1286_v61 }
 0xd12   :  { %v8090_v3 = vpop.eup %8089 }
 0xd13   :  { %v1298_v24 = vmul.f32 %v8090_v3, %v1296_v58 }
 0xd74   :  { %v1301_v57 = vpop.permute.xlu0 %1300 }
 0xd75   :  { %v1303_v56 = vmul.f32 %v8090_v3, %v1301_v57 }
 0xd77   :  { %1305 = vrot.lane.b32.xlu0 %v1303_v56, %s8717_s1 }
 0xde9   :  { %v1306_v59 = vpop.permute.xlu0 %1305 }
 0xdea   :  { %v1308_v11 = vadd.f32 %v1306_v59, %v1298_v24 }
 0xdec   :  { %8091 = vtanh.f32 %v1308_v11  ;;  %v1322_v6 = vrot.slane %v1308_v11, 2  ;;  %v11073_v11 = vmov 1  }
 0xded   :  { %8093 = vpow2.f32 %v6834_v39 }
 0xdee   :  { %1323 = vrot.lane.b32.xlu0 %v1322_v6, %s8717_s1  ;;  %v1444_v6 = vsel %vm574_vm3, 6, %v11073_v11 }
 0xdef   :  { %vm1445_vm14 = vcmp.lt.s32.totalorder %v1444_v6, %v9511_v34 }
 0xdf9   :  { %v8092_v38 = vpop.eup %8091 }
 0xdfa   :  { %1311 = vrot.lane.b32.xlu1 %v8092_v38, %s8717_s1  ;;  %v8094_v9 = vpop.eup %8093 }
 0xdfb   :  { %v1287_v43 = vadd.f32 1.0, %v8094_v9 }
 0xdfd   :  { %8095 = vrcp.f32 %v1287_v43 }
 0xe0a   :  { %v8096_v13 = vpop.eup %8095 }
 0xe60   :  { %v1324_v25 = vpop.permute.xlu0 %1323 }
 0xe61   :  { %v1326_v33 = vsel %vm1316_vm13, %v1324_v25, %v1197_v42 }
 0xe62   :  { %v1423_v36 = vrot.slane %v1326_v33, 4 }
 0xe64   :  { %1424 = vrot.lane.b32.xlu0 %v1423_v36, %s8717_s1 }
 0xe6c   :  { %v1312_v12 = vpop.permute.xlu1 %1311 }
 0xe6d   :  { %v1314_v30 = vmul.f32 %v8096_v13, %v1312_v12 }
 0xe6f   :  { %v1318_v44 = vrot.slane %v1314_v30, 2 }
 0xe71   :  { %v1320_v40 = vsel %vm1316_vm13, %v1318_v44, %v1192_v41 }
 0xe72   :  { %6835 = vmatmul.mubr.msk.f32.vlgmr.msra.gmra.mxu0 %vm575_vm5, %v1320_v40 }
 0xed6   :  { %v1425_v4 = vpop.permute.xlu0 %1424 }
 0xf32   :  { %v1396_v35 = vpop.f32.mrf.mxu0 }
 0xf33   :  { %v1403_v42 = vrot.slane %v1396_v35, 4 }
 0xf34   :  { %v1398_v31 = vpop.f32.mrf.mxu0 }
 0xf35   :  { %v1404_v32 = vrot.slane %v1398_v31, 4  ;;  %v1407_v0 = vadd.f32 %v1403_v42, %v9585_v8 }
 0xf37   :  { %v1408_v10 = vadd.f32 %v1404_v32, %v9587_v28  ;;  %v6836_v2 = vmul.f32 -1.442695, %v1407_v0 }
 0xf39   :  { %8097 = vtanh.f32 %v1408_v10  ;;  %v6837_v58 = vmul.f32 -1.442695, %v1408_v10 }
 0xf3a   :  { %8099 = vpow2.f32 %v6836_v2 }
 0xf46   :  { %v8098_v62 = vpop.eup %8097 }
 0xf47   :  { %1429 = vrot.lane.b32.xlu1 %v8098_v62, %s8717_s1  ;;  %v8100_v5 = vpop.eup %8099 }
 0xf48   :  { %v1415_v60 = vadd.f32 1.0, %v8100_v5 }
 0xf4a   :  { %8101 = vrcp.f32 %v1415_v60 }
 0xf57   :  { %v8102_v41 = vpop.eup %8101 }
 0xf58   :  { %v1427_v7 = vmul.f32 %v8102_v41, %v1425_v4 }
 0xfb9   :  { %v1430_v63 = vpop.permute.xlu1 %1429 }
 0xfba   :  { %v1432_v1 = vmul.f32 %v8102_v41, %v1430_v63 }
 0xfbc   :  { %1434 = vrot.lane.b32.xlu1 %v1432_v1, %s8717_s1 }
0x102e   :  { %v1435_v61 = vpop.permute.xlu1 %1434 }
0x102f   :  { %v1437_v3 = vadd.f32 %v1435_v61, %v1427_v7 }
0x1031   :  { %8103 = vtanh.f32 %v1437_v3  ;;  %v1451_v57 = vrot.slane %v1437_v3, 4  ;;  %v1573_v3 = vsel %vm574_vm3, 7, %v11070_v27 }
0x1032   :  { %8105 = vpow2.f32 %v6837_v58  ;;  %vm1574_vm15 = vcmp.lt.s32.totalorder %v1573_v3, %v9511_v34 }
0x1033   :  { %1452 = vrot.lane.b32.xlu1 %v1451_v57, %s8717_s1 }
0x103e   :  { %v8104_v56 = vpop.eup %8103 }
0x103f   :  { %1440 = vrot.lane.b32.xlu0 %v8104_v56, %s8717_s1  ;;  %v8106_v24 = vpop.eup %8105 }
0x1040   :  { %v1416_v59 = vadd.f32 1.0, %v8106_v24 }
0x1042   :  { %8107 = vrcp.f32 %v1416_v59 }
0x104f   :  { %v8108_v43 = vpop.eup %8107 }
0x10a5   :  { %v1453_v38 = vpop.permute.xlu1 %1452 }
0x10a6   :  { %v1455_v39 = vsel %vm1445_vm14, %v1453_v38, %v1326_v33 }
0x10a7   :  { %v1552_v9 = vrot.slane %v1455_v39, 2 }
0x10a9   :  { %1553 = vrot.lane.b32.xlu1 %v1552_v9, %s8717_s1 }
0x10b1   :  { %v1441_v37 = vpop.permute.xlu0 %1440 }
0x10b2   :  { %v1443_v25 = vmul.f32 %v8108_v43, %v1441_v37 }
0x10b4   :  { %v1447_v36 = vrot.slane %v1443_v25, 4 }
0x10b6   :  { %v1449_v13 = vsel %vm1445_vm14, %v1447_v36, %v1320_v40 }
0x10b7   :  { %6838 = vmatmul.mubr.msk.f32.vlgmr.msra.gmra.mxu1 %vm575_vm5, %v1449_v13 }
0x111b   :  { %v1554_v5 = vpop.permute.xlu1 %1553 }
0x1177   :  { %v1525_v12 = vpop.f32.mrf.mxu1 }
0x1178   :  { %v1532_v33 = vrot.slane %v1525_v12, 2 }
0x1179   :  { %v1527_v30 = vpop.f32.mrf.mxu1 }
0x117a   :  { %v1533_v44 = vrot.slane %v1527_v30, 2  ;;  %v1536_v32 = vadd.f32 %v1532_v33, %v9585_v8 }
0x117c   :  { %v1537_v35 = vadd.f32 %v1533_v44, %v9587_v28  ;;  %v6839_v10 = vmul.f32 -1.442695, %v1536_v32 }
0x117e   :  { %8109 = vtanh.f32 %v1537_v35  ;;  %v6840_v1 = vmul.f32 -1.442695, %v1537_v35 }
0x117f   :  { %8111 = vpow2.f32 %v6839_v10 }
0x118b   :  { %v8110_v31 = vpop.eup %8109 }
0x118c   :  { %1558 = vrot.lane.b32.xlu0 %v8110_v31, %s8717_s1  ;;  %v8112_v62 = vpop.eup %8111 }
0x118d   :  { %v1544_v42 = vadd.f32 1.0, %v8112_v62 }
0x118f   :  { %8113 = vrcp.f32 %v1544_v42 }
0x119c   :  { %v8114_v40 = vpop.eup %8113 }
0x119d   :  { %v1556_v60 = vmul.f32 %v8114_v40, %v1554_v5 }
0x11fe   :  { %v1559_v0 = vpop.permute.xlu0 %1558 }
0x11ff   :  { %v1561_v2 = vmul.f32 %v8114_v40, %v1559_v0 }
0x1201   :  { %1563 = vrot.lane.b32.xlu0 %v1561_v2, %s8717_s1 }
0x1273   :  { %v1564_v28 = vpop.permute.xlu0 %1563 }
0x1274   :  { %v1566_v41 = vadd.f32 %v1564_v28, %v1556_v60 }
0x1276   :  { %8115 = vtanh.f32 %v1566_v41 }
0x1277   :  { %8117 = vpow2.f32 %v6840_v1 }
0x1283   :  { %v8116_v63 = vpop.eup %8115 }
0x1284   :  { %1569 = vrot.lane.b32.xlu1 %v8116_v63, %s8717_s1  ;;  %v8118_v8 = vpop.eup %8117 }
0x1285   :  { %v1545_v4 = vadd.f32 1.0, %v8118_v8 }
0x1287   :  { %8119 = vrcp.f32 %v1545_v4 }
0x1294   :  { %v8120_v7 = vpop.eup %8119 }
0x12f6   :  { %v1570_v61 = vpop.permute.xlu1 %1569 }
0x12f7   :  { %v1572_v57 = vmul.f32 %v8120_v7, %v1570_v61 }
0x12f9   :  { %v1576_v56 = vrot.slane %v1572_v57, 6 }
0x12fb   :  { %v1578_v58 = vsel %vm1574_vm15, %v1576_v56, %v1449_v13 }
0x12fc   :  { %8697 = dma.done.wait [#allocation8], 27648 }
0x12fd   :  { %8698 = vsyncadd [#allocation8], 4294939648 }
0x12fe   :  { %8699 = dma.done.wait [#allocation8 + $0x1], 9216 }
0x12ff   :  { %8700 = vsyncadd [#allocation8 + $0x1], 4294958080  ;;  %2919 = vmatprep.mubr.bf16.mxu0 %v11070_v27  ;;  %2960 = vmatprep.mubr.bf16.mxu1 %v11070_v27  ;;  %v8121_v24 = vld [vmem:[#allocation2 + $0x514] ss:$216 sps:$4 sm:$0xff]   ;;  %v8125_v11 = vld [vmem:[#allocation2 + $0x510] ss:$216 sps:$4 sm:$0xff]   ;;  %v9712_v31 = vpack.c.bf16 %v1578_v58, %v1578_v58 }
0x1300   :  { %v8123_v59 = vld [vmem:[#allocation2 + $0x51c] ss:$216 sps:$4 sm:$0xff]   ;;  %2895 = vmatprep.subr.bf16.mxu0 %v8121_v24  ;;  %v8126_v6 = vld [vmem:[#allocation2 + $0x518] ss:$216 sps:$4 sm:$0xff]   ;;  %v8129_v38 = vld [vmem:[#allocation2 + $0x36c] ss:$216 sps:$4 sm:$0xff]  }
0x1301   :  { %2936 = vmatprep.subr.bf16.mxu1 %v8123_v59  ;;  %v8127_v26 = vld [vmem:[#allocation2 + $0x364] ss:$216 sps:$4 sm:$0xff]   ;;  %2896 = vmatpush1.bf16.msra.mxu0 %v8125_v11  ;;  %v8131_v34 = vld [vmem:[#allocation2 + $0x360] ss:$216 sps:$4 sm:$0xff]   ;;  %v8133_v9 = vld [vmem:[#allocation2 + $0x1b4] ss:$216 sps:$4 sm:$0xff]  }
0x1302   :  { %2937 = vmatpush1.bf16.msra.mxu1 %v8126_v6  ;;  %2897 = vmatprep.subr.bf16.mxu0 %v8127_v26  ;;  %v8132_v39 = vld [vmem:[#allocation2 + $0x368] ss:$216 sps:$4 sm:$0xff]   ;;  %v8135_v43 = vld [vmem:[#allocation2 + $0x1bc] ss:$216 sps:$4 sm:$0xff]   ;;  %v8138_v25 = vld [vmem:[#allocation2 + $0x1b8] ss:$216 sps:$4 sm:$0xff]  }
0x1303   :  { %2938 = vmatprep.subr.bf16.mxu1 %v8129_v38  ;;  %v8137_v37 = vld [vmem:[#allocation2 + $0x1b0] ss:$216 sps:$4 sm:$0xff]   ;;  %v8139_v36 = vld [vmem:[#allocation2 + $0x4] ss:$216 sps:$4 sm:$0xff]   ;;  %v8143_v12 = vld [vmem:[#allocation2] ss:$216 sps:$4 sm:$0xff]  }
0x1304   :  { %v8141_v13 = vld [vmem:[#allocation2 + $0xc] ss:$216 sps:$4 sm:$0xff]   ;;  %v8144_v30 = vld [vmem:[#allocation2 + $0x8] ss:$216 sps:$4 sm:$0xff]   ;;  %v8156_v62 = vld [vmem:[#allocation2 + $0x37c] ss:$216 sps:$4 sm:$0xff]  }
0x1305   :  { %2898 = vmatpush1.bf16.msra.mxu0 %v8131_v34  ;;  %v8147_v44 = vld [vmem:[#allocation2 + $0x524] ss:$216 sps:$4 sm:$0xff]   ;;  %v8145_v33 = vld [vmem:[#allocation2 + $0x520] ss:$216 sps:$4 sm:$0xff]   ;;  %v8153_v10 = vld [vmem:[#allocation2 + $0x374] ss:$216 sps:$4 sm:$0xff]  }
0x1306   :  { %2939 = vmatpush1.bf16.msra.mxu1 %v8132_v39  ;;  %2899 = vmatprep.subr.bf16.mxu0 %v8133_v9  ;;  %v8150_v35 = vld [vmem:[#allocation2 + $0x52c] ss:$216 sps:$4 sm:$0xff]   ;;  %v8148_v32 = vld [vmem:[#allocation2 + $0x528] ss:$216 sps:$4 sm:$0xff]   ;;  %v8154_v40 = vld [vmem:[#allocation2 + $0x378] ss:$216 sps:$4 sm:$0xff]  }
0x1307   :  { %2940 = vmatprep.subr.bf16.mxu1 %v8135_v43  ;;  %v8151_v42 = vld [vmem:[#allocation2 + $0x370] ss:$216 sps:$4 sm:$0xff]   ;;  %v8159_v0 = vld [vmem:[#allocation2 + $0x1c4] ss:$216 sps:$4 sm:$0xff]   ;;  %v8157_v5 = vld [vmem:[#allocation2 + $0x1c0] ss:$216 sps:$4 sm:$0xff]  }
0x1308   :  { %v8162_v2 = vld [vmem:[#allocation2 + $0x1cc] ss:$216 sps:$4 sm:$0xff]   ;;  %v8160_v60 = vld [vmem:[#allocation2 + $0x1c8] ss:$216 sps:$4 sm:$0xff]   ;;  %v8168_v41 = vld [vmem:[#allocation2 + $0x1c] ss:$216 sps:$4 sm:$0xff]  }
0x1309   :  { %2900 = vmatpush1.bf16.msra.mxu0 %v8137_v37  ;;  %v8165_v28 = vld [vmem:[#allocation2 + $0x14] ss:$216 sps:$4 sm:$0xff]   ;;  %v8163_v63 = vld [vmem:[#allocation2 + $0x10] ss:$216 sps:$4 sm:$0xff]   ;;  %v8177_v3 = vld [vmem:[#allocation2 + $0x384] ss:$216 sps:$4 sm:$0xff]  }
0x130a   :  { %2941 = vmatpush1.bf16.msra.mxu1 %v8138_v25  ;;  %2901 = vmatprep.subr.bf16.mxu0 %v8139_v36  ;;  %v8166_v1 = vld [vmem:[#allocation2 + $0x18] ss:$216 sps:$4 sm:$0xff]   ;;  %v8171_v8 = vld [vmem:[#allocation2 + $0x534] ss:$216 sps:$4 sm:$0xff]   ;;  %v8178_v58 = vld [vmem:[#allocation2 + $0x388] ss:$216 sps:$4 sm:$0xff]  }
0x130b   :  { %2942 = vmatprep.subr.bf16.mxu1 %v8141_v13  ;;  %v8174_v4 = vld [vmem:[#allocation2 + $0x53c] ss:$216 sps:$4 sm:$0xff]   ;;  %v8169_v7 = vld [vmem:[#allocation2 + $0x530] ss:$216 sps:$4 sm:$0xff]   ;;  %v8180_v57 = vld [vmem:[#allocation2 + $0x38c] ss:$216 sps:$4 sm:$0xff]  }
0x130c   :  { %v8172_v61 = vld [vmem:[#allocation2 + $0x538] ss:$216 sps:$4 sm:$0xff]   ;;  %v8183_v24 = vld [vmem:[#allocation2 + $0x1d4] ss:$216 sps:$4 sm:$0xff]   ;;  %v8189_v26 = vld [vmem:[#allocation2 + $0x24] ss:$216 sps:$4 sm:$0xff]  }
0x130d   :  { %2902 = vmatpush1.bf16.msra.mxu0 %v8143_v12  ;;  %v8175_v56 = vld [vmem:[#allocation2 + $0x380] ss:$216 sps:$4 sm:$0xff]   ;;  %v8186_v59 = vld [vmem:[#allocation2 + $0x1dc] ss:$216 sps:$4 sm:$0xff]   ;;  %v8181_v11 = vld [vmem:[#allocation2 + $0x1d0] ss:$216 sps:$4 sm:$0xff]  }
0x130e   :  { %2943 = vmatpush1.bf16.msra.mxu1 %v8144_v30  ;;  %2977 = vmatprep.subr.bf16.mxu0 %v8147_v44  ;;  %v8184_v6 = vld [vmem:[#allocation2 + $0x1d8] ss:$216 sps:$4 sm:$0xff]   ;;  %v8192_v38 = vld [vmem:[#allocation2 + $0x2c] ss:$216 sps:$4 sm:$0xff]   ;;  %v8190_v39 = vld [vmem:[#allocation2 + $0x28] ss:$216 sps:$4 sm:$0xff]  }
0x130f   :  { %3018 = vmatprep.subr.bf16.mxu1 %v8150_v35  ;;  %v8187_v34 = vld [vmem:[#allocation2 + $0x20] ss:$216 sps:$4 sm:$0xff]   ;;  %v8195_v9 = vld [vmem:[#allocation2 + $0x544] ss:$216 sps:$4 sm:$0xff]   ;;  %v8201_v36 = vld [vmem:[#allocation2 + $0x394] ss:$216 sps:$4 sm:$0xff]  }
0x1310   :  { %7057 = vmatmul.mubr.msk.bf16.vlgmr.msra.gmra.mxu0 %vm575_vm5, %v9712_v31  ;;  %v8198_v43 = vld [vmem:[#allocation2 + $0x54c] ss:$216 sps:$4 sm:$0xff]   ;;  %v8193_v37 = vld [vmem:[#allocation2 + $0x540] ss:$216 sps:$4 sm:$0xff]   ;;  %v8204_v13 = vld [vmem:[#allocation2 + $0x39c] ss:$216 sps:$4 sm:$0xff]  }
0x1311   :  { %7058 = vmatmul.mubr.msk.bf16.vlgmr.msra.gmra.mxu1 %vm575_vm5, %v9712_v31  ;;  %2978 = vmatpush1.bf16.msra.mxu0 %v8145_v33  ;;  %v8196_v25 = vld [vmem:[#allocation2 + $0x548] ss:$216 sps:$4 sm:$0xff]   ;;  %v8202_v30 = vld [vmem:[#allocation2 + $0x398] ss:$216 sps:$4 sm:$0xff]   ;;  %v8207_v44 = vld [vmem:[#allocation2 + $0x1e4] ss:$216 sps:$4 sm:$0xff]  }
0x1312   :  { %3019 = vmatpush1.bf16.msra.mxu1 %v8148_v32  ;;  %2979 = vmatprep.subr.bf16.mxu0 %v8153_v10  ;;  %v8199_v12 = vld [vmem:[#allocation2 + $0x390] ss:$216 sps:$4 sm:$0xff]   ;;  %v8210_v35 = vld [vmem:[#allocation2 + $0x1ec] ss:$216 sps:$4 sm:$0xff]   ;;  %v8205_v33 = vld [vmem:[#allocation2 + $0x1e0] ss:$216 sps:$4 sm:$0xff]  }
0x1313   :  { %3020 = vmatprep.subr.bf16.mxu1 %v8156_v62  ;;  %3001 = vmatprep.mubr.bf16.mxu0 %v11070_v27  ;;  %v8208_v32 = vld [vmem:[#allocation2 + $0x1e8] ss:$216 sps:$4 sm:$0xff]   ;;  %v8213_v10 = vld [vmem:[#allocation2 + $0x34] ss:$216 sps:$4 sm:$0xff]   ;;  %v9938_v50 = vld [vmem:[#allocation3 + $0x118] sm:$0xff]   ;;  %vm8723_vm0 = vmmov 0  }
0x1314   :  { %3042 = vmatprep.mubr.bf16.mxu1 %v11070_v27  ;;  %v8216_v62 = vld [vmem:[#allocation2 + $0x3c] ss:$216 sps:$4 sm:$0xff]   ;;  %v9912_v47 = vld [vmem:[#allocation3 + $0x88] sm:$0xff]   ;;  %v9918_v48 = vld [vmem:[#allocation3 + $0xc0] sm:$0xff]   ;;  %11075 = vst [vmem:[#allocation78_spill] sm:$0xff] %v9938_v50  ;;  %s8724_s0 = smov 32  }
0x1315   :  { %2980 = vmatpush1.bf16.msra.mxu0 %v8151_v42  ;;  %v8211_v42 = vld [vmem:[#allocation2 + $0x30] ss:$216 sps:$4 sm:$0xff]   ;;  %v9920_v49 = vld [vmem:[#allocation3 + $0x160] sm:$0xff]   ;;  %v9940_v51 = vld [vmem:[#allocation3 + $0x1b8] sm:$0xff]   ;;  %s8725_s17 = smov 96   ;;  %vm5892_vm1 = vcmask 261120  }
0x1316   :  { %3021 = vmatpush1.bf16.msra.mxu1 %v8154_v40  ;;  %2981 = vmatprep.subr.bf16.mxu0 %v8159_v0  ;;  %v8214_v40 = vld [vmem:[#allocation2 + $0x38] ss:$216 sps:$4 sm:$0xff]   ;;  %v8219_v0 = vld [vmem:[#allocation2 + $0x554] ss:$216 sps:$4 sm:$0xff]   ;;  %11076 = vst [vmem:[#allocation79_spill] sm:$0xff] %v9940_v51  ;;  %vm5895_vm2 = vcmask 785408  }
0x1317   :  { %3022 = vmatprep.subr.bf16.mxu1 %v8162_v2  ;;  %v8222_v2 = vld [vmem:[#allocation2 + $0x55c] ss:$216 sps:$4 sm:$0xff]  }
0x1318   :  { %v9946_v21 = vld [vmem:[#allocation3 + $0x1f0] sm:$0xff]  }
0x1319   :  { %2982 = vmatpush1.bf16.msra.mxu0 %v8157_v5  ;;  %v8217_v5 = vld [vmem:[#allocation2 + $0x550] ss:$216 sps:$4 sm:$0xff]  }
0x131a   :  { %3023 = vmatpush1.bf16.msra.mxu1 %v8160_v60  ;;  %2983 = vmatprep.subr.bf16.mxu0 %v8165_v28  ;;  %v8220_v60 = vld [vmem:[#allocation2 + $0x558] ss:$216 sps:$4 sm:$0xff]   ;;  %v8225_v28 = vld [vmem:[#allocation2 + $0x3a4] ss:$216 sps:$4 sm:$0xff]  }
0x131b   :  { %3024 = vmatprep.subr.bf16.mxu1 %v8168_v41  ;;  %v8228_v41 = vld [vmem:[#allocation2 + $0x3ac] ss:$216 sps:$4 sm:$0xff]   ;;  %v9954_v22 = vld [vmem:[#allocation3 + $0x110] sm:$0xff]  }
0x131c   :  { %11078 = vst [vmem:[#allocation81_spill] sm:$0xff] %v9954_v22 }
0x131d   :  { %2984 = vmatpush1.bf16.msra.mxu0 %v8163_v63  ;;  %v8223_v63 = vld [vmem:[#allocation2 + $0x3a0] ss:$216 sps:$4 sm:$0xff]  }
0x131e   :  { %3025 = vmatpush1.bf16.msra.mxu1 %v8166_v1  ;;  %3059 = vmatprep.subr.bf16.mxu0 %v8171_v8  ;;  %v8226_v1 = vld [vmem:[#allocation2 + $0x3a8] ss:$216 sps:$4 sm:$0xff]   ;;  %v8231_v8 = vld [vmem:[#allocation2 + $0x1f4] ss:$216 sps:$4 sm:$0xff]  }
0x131f   :  { %3100 = vmatprep.subr.bf16.mxu1 %v8174_v4  ;;  %v8234_v4 = vld [vmem:[#allocation2 + $0x1fc] ss:$216 sps:$4 sm:$0xff]  }
0x1320   :  { %7059 = vmatmul.mubr.msk.bf16.vlgmr.msra.gmra.mxu0 %vm575_vm5, %v9712_v31 }
0x1321   :  { %7060 = vmatmul.mubr.msk.bf16.vlgmr.msra.gmra.mxu1 %vm575_vm5, %v9712_v31  ;;  %3060 = vmatpush1.bf16.msra.mxu0 %v8169_v7  ;;  %v8229_v7 = vld [vmem:[#allocation2 + $0x1f0] ss:$216 sps:$4 sm:$0xff]  }
0x1322   :  { %3101 = vmatpush1.bf16.msra.mxu1 %v8172_v61  ;;  %3061 = vmatprep.subr.bf16.mxu0 %v8177_v3  ;;  %v8232_v61 = vld [vmem:[#allocation2 + $0x1f8] ss:$216 sps:$4 sm:$0xff]   ;;  %v8237_v3 = vld [vmem:[#allocation2 + $0x44] ss:$216 sps:$4 sm:$0xff]  }
0x1323   :  { %3102 = vmatprep.subr.bf16.mxu1 %v8180_v57  ;;  %3083 = vmatprep.mubr.bf16.mxu0 %v11070_v27  ;;  %v8240_v57 = vld [vmem:[#allocation2 + $0x4c] ss:$216 sps:$4 sm:$0xff]  }
0x1324   :  { %3124 = vmatprep.mubr.bf16.mxu1 %v11070_v27 }
0x1325   :  { %3062 = vmatpush1.bf16.msra.mxu0 %v8175_v56  ;;  %v8235_v56 = vld [vmem:[#allocation2 + $0x40] ss:$216 sps:$4 sm:$0xff]  }
0x1326   :  { %3103 = vmatpush1.bf16.msra.mxu1 %v8178_v58  ;;  %3063 = vmatprep.subr.bf16.mxu0 %v8183_v24  ;;  %v8238_v58 = vld [vmem:[#allocation2 + $0x48] ss:$216 sps:$4 sm:$0xff]   ;;  %v8243_v24 = vld [vmem:[#allocation2 + $0x564] ss:$216 sps:$4 sm:$0xff]  }
0x1327   :  { %3104 = vmatprep.subr.bf16.mxu1 %v8186_v59  ;;  %v8246_v59 = vld [vmem:[#allocation2 + $0x56c] ss:$216 sps:$4 sm:$0xff]  }
0x1329   :  { %3064 = vmatpush1.bf16.msra.mxu0 %v8181_v11  ;;  %v8241_v11 = vld [vmem:[#allocation2 + $0x560] ss:$216 sps:$4 sm:$0xff]  }
0x132a   :  { %3105 = vmatpush1.bf16.msra.mxu1 %v8184_v6  ;;  %3065 = vmatprep.subr.bf16.mxu0 %v8189_v26  ;;  %v8244_v6 = vld [vmem:[#allocation2 + $0x568] ss:$216 sps:$4 sm:$0xff]   ;;  %v8249_v26 = vld [vmem:[#allocation2 + $0x3b4] ss:$216 sps:$4 sm:$0xff]  }
0x132b   :  { %3106 = vmatprep.subr.bf16.mxu1 %v8192_v38  ;;  %v8252_v38 = vld [vmem:[#allocation2 + $0x3bc] ss:$216 sps:$4 sm:$0xff]  }
0x132d   :  { %3066 = vmatpush1.bf16.msra.mxu0 %v8187_v34  ;;  %v8247_v34 = vld [vmem:[#allocation2 + $0x3b0] ss:$216 sps:$4 sm:$0xff]  }
0x132e   :  { %3107 = vmatpush1.bf16.msra.mxu1 %v8190_v39  ;;  %3141 = vmatprep.subr.bf16.mxu0 %v8195_v9  ;;  %v8250_v39 = vld [vmem:[#allocation2 + $0x3b8] ss:$216 sps:$4 sm:$0xff]   ;;  %v8255_v9 = vld [vmem:[#allocation2 + $0x204] ss:$216 sps:$4 sm:$0xff]  }
0x132f   :  { %3182 = vmatprep.subr.bf16.mxu1 %v8198_v43  ;;  %v8258_v43 = vld [vmem:[#allocation2 + $0x20c] ss:$216 sps:$4 sm:$0xff]  }
0x1330   :  { %7061 = vmatmul.mubr.msk.bf16.vlgmr.msra.gmra.mxu0 %vm575_vm5, %v9712_v31 }
0x1331   :  { %7062 = vmatmul.mubr.msk.bf16.vlgmr.msra.gmra.mxu1 %vm575_vm5, %v9712_v31  ;;  %3142 = vmatpush1.bf16.msra.mxu0 %v8193_v37  ;;  %v8253_v37 = vld [vmem:[#allocation2 + $0x200] ss:$216 sps:$4 sm:$0xff]  }
0x1332   :  { %3183 = vmatpush1.bf16.msra.mxu1 %v8196_v25  ;;  %3143 = vmatprep.subr.bf16.mxu0 %v8201_v36  ;;  %v8256_v25 = vld [vmem:[#allocation2 + $0x208] ss:$216 sps:$4 sm:$0xff]   ;;  %v8261_v36 = vld [vmem:[#allocation2 + $0x54] ss:$216 sps:$4 sm:$0xff]  }
0x1333   :  { %3184 = vmatprep.subr.bf16.mxu1 %v8204_v13  ;;  %3165 = vmatprep.mubr.bf16.mxu0 %v11070_v27  ;;  %v8264_v13 = vld [vmem:[#allocation2 + $0x5c] ss:$216 sps:$4 sm:$0xff]  }
0x1334   :  { %3206 = vmatprep.mubr.bf16.mxu1 %v11070_v27 }
0x1335   :  { %3144 = vmatpush1.bf16.msra.mxu0 %v8199_v12  ;;  %v8259_v12 = vld [vmem:[#allocation2 + $0x50] ss:$216 sps:$4 sm:$0xff]  }
0x1336   :  { %3185 = vmatpush1.bf16.msra.mxu1 %v8202_v30  ;;  %3145 = vmatprep.subr.bf16.mxu0 %v8207_v44  ;;  %v8262_v30 = vld [vmem:[#allocation2 + $0x58] ss:$216 sps:$4 sm:$0xff]   ;;  %v8267_v44 = vld [vmem:[#allocation2 + $0x574] ss:$216 sps:$4 sm:$0xff]  }
0x1337   :  { %3186 = vmatprep.subr.bf16.mxu1 %v8210_v35  ;;  %v8270_v35 = vld [vmem:[#allocation2 + $0x57c] ss:$216 sps:$4 sm:$0xff]  }
0x1339   :  { %3146 = vmatpush1.bf16.msra.mxu0 %v8205_v33  ;;  %v8265_v33 = vld [vmem:[#allocation2 + $0x570] ss:$216 sps:$4 sm:$0xff]  }
0x133a   :  { %3187 = vmatpush1.bf16.msra.mxu1 %v8208_v32  ;;  %3147 = vmatprep.subr.bf16.mxu0 %v8213_v10  ;;  %v8268_v32 = vld [vmem:[#allocation2 + $0x578] ss:$216 sps:$4 sm:$0xff]   ;;  %v8273_v10 = vld [vmem:[#allocation2 + $0x3c4] ss:$216 sps:$4 sm:$0xff]  }
0x133b   :  { %3188 = vmatprep.subr.bf16.mxu1 %v8216_v62  ;;  %v8276_v62 = vld [vmem:[#allocation2 + $0x3cc] ss:$216 sps:$4 sm:$0xff]  }
0x133d   :  { %3148 = vmatpush1.bf16.msra.mxu0 %v8211_v42  ;;  %v8271_v42 = vld [vmem:[#allocation2 + $0x3c0] ss:$216 sps:$4 sm:$0xff]  }
0x133e   :  { %3189 = vmatpush1.bf16.msra.mxu1 %v8214_v40  ;;  %3223 = vmatprep.subr.bf16.mxu0 %v8219_v0  ;;  %v8274_v40 = vld [vmem:[#allocation2 + $0x3c8] ss:$216 sps:$4 sm:$0xff]   ;;  %v8279_v0 = vld [vmem:[#allocation2 + $0x214] ss:$216 sps:$4 sm:$0xff]  }
0x133f   :  { %3264 = vmatprep.subr.bf16.mxu1 %v8222_v2  ;;  %v8282_v2 = vld [vmem:[#allocation2 + $0x21c] ss:$216 sps:$4 sm:$0xff]  }
0x1340   :  { %7063 = vmatmul.mubr.msk.bf16.vlgmr.msra.gmra.mxu0 %vm575_vm5, %v9712_v31 }
0x1341   :  { %7064 = vmatmul.mubr.msk.bf16.vlgmr.msra.gmra.mxu1 %vm575_vm5, %v9712_v31  ;;  %3224 = vmatpush1.bf16.msra.mxu0 %v8217_v5  ;;  %v8277_v5 = vld [vmem:[#allocation2 + $0x210] ss:$216 sps:$4 sm:$0xff]  }
0x1342   :  { %3265 = vmatpush1.bf16.msra.mxu1 %v8220_v60  ;;  %3225 = vmatprep.subr.bf16.mxu0 %v8225_v28  ;;  %v8280_v60 = vld [vmem:[#allocation2 + $0x218] ss:$216 sps:$4 sm:$0xff]   ;;  %v8285_v28 = vld [vmem:[#allocation2 + $0x64] ss:$216 sps:$4 sm:$0xff]  }
0x1343   :  { %3266 = vmatprep.subr.bf16.mxu1 %v8228_v41  ;;  %3247 = vmatprep.mubr.bf16.mxu0 %v11070_v27  ;;  %v8288_v41 = vld [vmem:[#allocation2 + $0x6c] ss:$216 sps:$4 sm:$0xff]  }
0x1344   :  { %3288 = vmatprep.mubr.bf16.mxu1 %v11070_v27 }
0x1345   :  { %3226 = vmatpush1.bf16.msra.mxu0 %v8223_v63  ;;  %v8283_v63 = vld [vmem:[#allocation2 + $0x60] ss:$216 sps:$4 sm:$0xff]  }
0x1346   :  { %3267 = vmatpush1.bf16.msra.mxu1 %v8226_v1  ;;  %3227 = vmatprep.subr.bf16.mxu0 %v8231_v8  ;;  %v8286_v1 = vld [vmem:[#allocation2 + $0x68] ss:$216 sps:$4 sm:$0xff]   ;;  %v8291_v8 = vld [vmem:[#allocation2 + $0x584] ss:$216 sps:$4 sm:$0xff]  }
0x1347   :  { %3268 = vmatprep.subr.bf16.mxu1 %v8234_v4  ;;  %v8294_v4 = vld [vmem:[#allocation2 + $0x58c] ss:$216 sps:$4 sm:$0xff]  }
0x1349   :  { %3228 = vmatpush1.bf16.msra.mxu0 %v8229_v7  ;;  %v8289_v7 = vld [vmem:[#allocation2 + $0x580] ss:$216 sps:$4 sm:$0xff]  }
0x134a   :  { %3269 = vmatpush1.bf16.msra.mxu1 %v8232_v61  ;;  %3229 = vmatprep.subr.bf16.mxu0 %v8237_v3  ;;  %v8292_v61 = vld [vmem:[#allocation2 + $0x588] ss:$216 sps:$4 sm:$0xff]   ;;  %v8297_v3 = vld [vmem:[#allocation2 + $0x3d4] ss:$216 sps:$4 sm:$0xff]  }
0x134b   :  { %3270 = vmatprep.subr.bf16.mxu1 %v8240_v57  ;;  %v8300_v57 = vld [vmem:[#allocation2 + $0x3dc] ss:$216 sps:$4 sm:$0xff]  }
0x134d   :  { %3230 = vmatpush1.bf16.msra.mxu0 %v8235_v56  ;;  %v8295_v56 = vld [vmem:[#allocation2 + $0x3d0] ss:$216 sps:$4 sm:$0xff]  }
0x134e   :  { %3271 = vmatpush1.bf16.msra.mxu1 %v8238_v58  ;;  %3305 = vmatprep.subr.bf16.mxu0 %v8243_v24  ;;  %v8298_v58 = vld [vmem:[#allocation2 + $0x3d8] ss:$216 sps:$4 sm:$0xff]   ;;  %v8303_v24 = vld [vmem:[#allocation2 + $0x224] ss:$216 sps:$4 sm:$0xff]  }
0x134f   :  { %3346 = vmatprep.subr.bf16.mxu1 %v8246_v59  ;;  %v8306_v59 = vld [vmem:[#allocation2 + $0x22c] ss:$216 sps:$4 sm:$0xff]  }
0x1350   :  { %7065 = vmatmul.mubr.msk.bf16.vlgmr.msra.gmra.mxu0 %vm575_vm5, %v9712_v31 }
0x1351   :  { %7066 = vmatmul.mubr.msk.bf16.vlgmr.msra.gmra.mxu1 %vm575_vm5, %v9712_v31  ;;  %3306 = vmatpush1.bf16.msra.mxu0 %v8241_v11  ;;  %v8301_v11 = vld [vmem:[#allocation2 + $0x220] ss:$216 sps:$4 sm:$0xff]  }
0x1352   :  { %3347 = vmatpush1.bf16.msra.mxu1 %v8244_v6  ;;  %3307 = vmatprep.subr.bf16.mxu0 %v8249_v26  ;;  %v8304_v6 = vld [vmem:[#allocation2 + $0x228] ss:$216 sps:$4 sm:$0xff]   ;;  %v8309_v26 = vld [vmem:[#allocation2 + $0x74] ss:$216 sps:$4 sm:$0xff]  }
0x1353   :  { %3348 = vmatprep.subr.bf16.mxu1 %v8252_v38  ;;  %3329 = vmatprep.mubr.bf16.mxu0 %v11070_v27  ;;  %v8312_v38 = vld [vmem:[#allocation2 + $0x7c] ss:$216 sps:$4 sm:$0xff]  }
0x1354   :  { %3370 = vmatprep.mubr.bf16.mxu1 %v11070_v27 }
0x1355   :  { %3308 = vmatpush1.bf16.msra.mxu0 %v8247_v34  ;;  %v8307_v34 = vld [vmem:[#allocation2 + $0x70] ss:$216 sps:$4 sm:$0xff]  }
0x1356   :  { %3349 = vmatpush1.bf16.msra.mxu1 %v8250_v39  ;;  %3309 = vmatprep.subr.bf16.mxu0 %v8255_v9  ;;  %v8310_v39 = vld [vmem:[#allocation2 + $0x78] ss:$216 sps:$4 sm:$0xff]   ;;  %v8315_v9 = vld [vmem:[#allocation2 + $0x594] ss:$216 sps:$4 sm:$0xff]  }
0x1357   :  { %3350 = vmatprep.subr.bf16.mxu1 %v8258_v43  ;;  %v8318_v43 = vld [vmem:[#allocation2 + $0x59c] ss:$216 sps:$4 sm:$0xff]  }
0x1359   :  { %3310 = vmatpush1.bf16.msra.mxu0 %v8253_v37  ;;  %v8313_v37 = vld [vmem:[#allocation2 + $0x590] ss:$216 sps:$4 sm:$0xff]  }
0x135a   :  { %3351 = vmatpush1.bf16.msra.mxu1 %v8256_v25  ;;  %3311 = vmatprep.subr.bf16.mxu0 %v8261_v36  ;;  %v8316_v25 = vld [vmem:[#allocation2 + $0x598] ss:$216 sps:$4 sm:$0xff]   ;;  %v8321_v36 = vld [vmem:[#allocation2 + $0x3e4] ss:$216 sps:$4 sm:$0xff]  }
0x135b   :  { %3352 = vmatprep.subr.bf16.mxu1 %v8264_v13  ;;  %v8324_v13 = vld [vmem:[#allocation2 + $0x3ec] ss:$216 sps:$4 sm:$0xff]  }
0x135d   :  { %3312 = vmatpush1.bf16.msra.mxu0 %v8259_v12  ;;  %v8319_v12 = vld [vmem:[#allocation2 + $0x3e0] ss:$216 sps:$4 sm:$0xff]  }
0x135e   :  { %3353 = vmatpush1.bf16.msra.mxu1 %v8262_v30  ;;  %3387 = vmatprep.subr.bf16.mxu0 %v8267_v44  ;;  %v8322_v30 = vld [vmem:[#allocation2 + $0x3e8] ss:$216 sps:$4 sm:$0xff]   ;;  %v8327_v44 = vld [vmem:[#allocation2 + $0x234] ss:$216 sps:$4 sm:$0xff]  }
0x135f   :  { %3428 = vmatprep.subr.bf16.mxu1 %v8270_v35  ;;  %v8330_v35 = vld [vmem:[#allocation2 + $0x23c] ss:$216 sps:$4 sm:$0xff]  }
0x1360   :  { %7067 = vmatmul.mubr.msk.bf16.vlgmr.msra.gmra.mxu0 %vm575_vm5, %v9712_v31 }
0x1361   :  { %7068 = vmatmul.mubr.msk.bf16.vlgmr.msra.gmra.mxu1 %vm575_vm5, %v9712_v31  ;;  %3388 = vmatpush1.bf16.msra.mxu0 %v8265_v33  ;;  %v8325_v33 = vld [vmem:[#allocation2 + $0x230] ss:$216 sps:$4 sm:$0xff]  }
0x1362   :  { %3429 = vmatpush1.bf16.msra.mxu1 %v8268_v32  ;;  %3389 = vmatprep.subr.bf16.mxu0 %v8273_v10  ;;  %v8328_v32 = vld [vmem:[#allocation2 + $0x238] ss:$216 sps:$4 sm:$0xff]   ;;  %v8333_v10 = vld [vmem:[#allocation2 + $0x84] ss:$216 sps:$4 sm:$0xff]  }
0x1363   :  { %3430 = vmatprep.subr.bf16.mxu1 %v8276_v62  ;;  %3411 = vmatprep.mubr.bf16.mxu0 %v11070_v27  ;;  %v8336_v62 = vld [vmem:[#allocation2 + $0x8c] ss:$216 sps:$4 sm:$0xff]  }
0x1364   :  { %3452 = vmatprep.mubr.bf16.mxu1 %v11070_v27 }
0x1365   :  { %3390 = vmatpush1.bf16.msra.mxu0 %v8271_v42  ;;  %v8331_v42 = vld [vmem:[#allocation2 + $0x80] ss:$216 sps:$4 sm:$0xff]  }
0x1366   :  { %3431 = vmatpush1.bf16.msra.mxu1 %v8274_v40  ;;  %3391 = vmatprep.subr.bf16.mxu0 %v8279_v0  ;;  %v8334_v40 = vld [vmem:[#allocation2 + $0x88] ss:$216 sps:$4 sm:$0xff]   ;;  %v8339_v0 = vld [vmem:[#allocation2 + $0x5a4] ss:$216 sps:$4 sm:$0xff]  }
0x1367   :  { %3432 = vmatprep.subr.bf16.mxu1 %v8282_v2  ;;  %v8342_v2 = vld [vmem:[#allocation2 + $0x5ac] ss:$216 sps:$4 sm:$0xff]  }
0x1369   :  { %3392 = vmatpush1.bf16.msra.mxu0 %v8277_v5  ;;  %v8337_v5 = vld [vmem:[#allocation2 + $0x5a0] ss:$216 sps:$4 sm:$0xff]  }
0x136a   :  { %3433 = vmatpush1.bf16.msra.mxu1 %v8280_v60  ;;  %3393 = vmatprep.subr.bf16.mxu0 %v8285_v28  ;;  %v8340_v60 = vld [vmem:[#allocation2 + $0x5a8] ss:$216 sps:$4 sm:$0xff]   ;;  %v8345_v28 = vld [vmem:[#allocation2 + $0x3f4] ss:$216 sps:$4 sm:$0xff]  }
0x136b   :  { %3434 = vmatprep.subr.bf16.mxu1 %v8288_v41  ;;  %v8348_v41 = vld [vmem:[#allocation2 + $0x3fc] ss:$216 sps:$4 sm:$0xff]  }
0x136d   :  { %3394 = vmatpush1.bf16.msra.mxu0 %v8283_v63  ;;  %v8343_v63 = vld [vmem:[#allocation2 + $0x3f0] ss:$216 sps:$4 sm:$0xff]  }
0x136e   :  { %3435 = vmatpush1.bf16.msra.mxu1 %v8286_v1  ;;  %3469 = vmatprep.subr.bf16.mxu0 %v8291_v8  ;;  %v8346_v1 = vld [vmem:[#allocation2 + $0x3f8] ss:$216 sps:$4 sm:$0xff]   ;;  %v8351_v8 = vld [vmem:[#allocation2 + $0x244] ss:$216 sps:$4 sm:$0xff]  }
0x136f   :  { %3510 = vmatprep.subr.bf16.mxu1 %v8294_v4  ;;  %v8354_v4 = vld [vmem:[#allocation2 + $0x24c] ss:$216 sps:$4 sm:$0xff]  }
0x1370   :  { %7069 = vmatmul.mubr.msk.bf16.vlgmr.msra.gmra.mxu0 %vm575_vm5, %v9712_v31 }
0x1371   :  { %7070 = vmatmul.mubr.msk.bf16.vlgmr.msra.gmra.mxu1 %vm575_vm5, %v9712_v31  ;;  %3470 = vmatpush1.bf16.msra.mxu0 %v8289_v7  ;;  %v8349_v7 = vld [vmem:[#allocation2 + $0x240] ss:$216 sps:$4 sm:$0xff]  }
0x1372   :  { %3511 = vmatpush1.bf16.msra.mxu1 %v8292_v61  ;;  %3471 = vmatprep.subr.bf16.mxu0 %v8297_v3  ;;  %v8352_v61 = vld [vmem:[#allocation2 + $0x248] ss:$216 sps:$4 sm:$0xff]   ;;  %v8357_v3 = vld [vmem:[#allocation2 + $0x94] ss:$216 sps:$4 sm:$0xff]  }
0x1373   :  { %3512 = vmatprep.subr.bf16.mxu1 %v8300_v57  ;;  %3493 = vmatprep.mubr.bf16.mxu0 %v11070_v27  ;;  %v8360_v57 = vld [vmem:[#allocation2 + $0x9c] ss:$216 sps:$4 sm:$0xff]  }
0x1374   :  { %3534 = vmatprep.mubr.bf16.mxu1 %v11070_v27 }
0x1375   :  { %3472 = vmatpush1.bf16.msra.mxu0 %v8295_v56  ;;  %v8355_v56 = vld [vmem:[#allocation2 + $0x90] ss:$216 sps:$4 sm:$0xff]  }
0x1376   :  { %3513 = vmatpush1.bf16.msra.mxu1 %v8298_v58  ;;  %3473 = vmatprep.subr.bf16.mxu0 %v8303_v24  ;;  %v8358_v58 = vld [vmem:[#allocation2 + $0x98] ss:$216 sps:$4 sm:$0xff]   ;;  %v8363_v24 = vld [vmem:[#allocation2 + $0x5b4] ss:$216 sps:$4 sm:$0xff]  }
0x1377   :  { %3514 = vmatprep.subr.bf16.mxu1 %v8306_v59  ;;  %v8366_v59 = vld [vmem:[#allocation2 + $0x5bc] ss:$216 sps:$4 sm:$0xff]  }
0x1379   :  { %3474 = vmatpush1.bf16.msra.mxu0 %v8301_v11  ;;  %v8361_v11 = vld [vmem:[#allocation2 + $0x5b0] ss:$216 sps:$4 sm:$0xff]  }
0x137a   :  { %3515 = vmatpush1.bf16.msra.mxu1 %v8304_v6  ;;  %3475 = vmatprep.subr.bf16.mxu0 %v8309_v26  ;;  %v8364_v6 = vld [vmem:[#allocation2 + $0x5b8] ss:$216 sps:$4 sm:$0xff]   ;;  %v8369_v26 = vld [vmem:[#allocation2 + $0x404] ss:$216 sps:$4 sm:$0xff]  }
0x137b   :  { %3516 = vmatprep.subr.bf16.mxu1 %v8312_v38  ;;  %v8372_v38 = vld [vmem:[#allocation2 + $0x40c] ss:$216 sps:$4 sm:$0xff]  }
0x137d   :  { %3476 = vmatpush1.bf16.msra.mxu0 %v8307_v34  ;;  %v8367_v34 = vld [vmem:[#allocation2 + $0x400] ss:$216 sps:$4 sm:$0xff]  }
0x137e   :  { %3517 = vmatpush1.bf16.msra.mxu1 %v8310_v39  ;;  %3551 = vmatprep.subr.bf16.mxu0 %v8315_v9  ;;  %v8370_v39 = vld [vmem:[#allocation2 + $0x408] ss:$216 sps:$4 sm:$0xff]   ;;  %v8375_v9 = vld [vmem:[#allocation2 + $0x254] ss:$216 sps:$4 sm:$0xff]  }
0x137f   :  { %3592 = vmatprep.subr.bf16.mxu1 %v8318_v43  ;;  %v8378_v43 = vld [vmem:[#allocation2 + $0x25c] ss:$216 sps:$4 sm:$0xff]  }
0x1380   :  { %7071 = vmatmul.mubr.msk.bf16.vlgmr.msra.gmra.mxu0 %vm575_vm5, %v9712_v31 }
0x1381   :  { %7072 = vmatmul.mubr.msk.bf16.vlgmr.msra.gmra.mxu1 %vm575_vm5, %v9712_v31  ;;  %3552 = vmatpush1.bf16.msra.mxu0 %v8313_v37  ;;  %v8373_v37 = vld [vmem:[#allocation2 + $0x250] ss:$216 sps:$4 sm:$0xff]  }
0x1382   :  { %3593 = vmatpush1.bf16.msra.mxu1 %v8316_v25  ;;  %3553 = vmatprep.subr.bf16.mxu0 %v8321_v36  ;;  %v8376_v25 = vld [vmem:[#allocation2 + $0x258] ss:$216 sps:$4 sm:$0xff]   ;;  %v8381_v36 = vld [vmem:[#allocation2 + $0xa4] ss:$216 sps:$4 sm:$0xff]  }
0x1383   :  { %3594 = vmatprep.subr.bf16.mxu1 %v8324_v13  ;;  %3575 = vmatprep.mubr.bf16.mxu0 %v11070_v27  ;;  %v8384_v13 = vld [vmem:[#allocation2 + $0xac] ss:$216 sps:$4 sm:$0xff]  }
0x1384   :  { %3616 = vmatprep.mubr.bf16.mxu1 %v11070_v27 }
0x1385   :  { %3554 = vmatpush1.bf16.msra.mxu0 %v8319_v12  ;;  %v8379_v12 = vld [vmem:[#allocation2 + $0xa0] ss:$216 sps:$4 sm:$0xff]  }
0x1386   :  { %3595 = vmatpush1.bf16.msra.mxu1 %v8322_v30  ;;  %3555 = vmatprep.subr.bf16.mxu0 %v8327_v44  ;;  %v8382_v30 = vld [vmem:[#allocation2 + $0xa8] ss:$216 sps:$4 sm:$0xff]   ;;  %v8387_v44 = vld [vmem:[#allocation2 + $0x5c4] ss:$216 sps:$4 sm:$0xff]  }
0x1387   :  { %3596 = vmatprep.subr.bf16.mxu1 %v8330_v35  ;;  %v8390_v35 = vld [vmem:[#allocation2 + $0x5cc] ss:$216 sps:$4 sm:$0xff]  }
0x1389   :  { %3556 = vmatpush1.bf16.msra.mxu0 %v8325_v33  ;;  %v8385_v33 = vld [vmem:[#allocation2 + $0x5c0] ss:$216 sps:$4 sm:$0xff]  }
0x138a   :  { %3597 = vmatpush1.bf16.msra.mxu1 %v8328_v32  ;;  %3557 = vmatprep.subr.bf16.mxu0 %v8333_v10  ;;  %v8388_v32 = vld [vmem:[#allocation2 + $0x5c8] ss:$216 sps:$4 sm:$0xff]   ;;  %v8393_v10 = vld [vmem:[#allocation2 + $0x414] ss:$216 sps:$4 sm:$0xff]  }
0x138b   :  { %3598 = vmatprep.subr.bf16.mxu1 %v8336_v62  ;;  %v8396_v62 = vld [vmem:[#allocation2 + $0x41c] ss:$216 sps:$4 sm:$0xff]  }
0x138d   :  { %3558 = vmatpush1.bf16.msra.mxu0 %v8331_v42  ;;  %v8391_v42 = vld [vmem:[#allocation2 + $0x410] ss:$216 sps:$4 sm:$0xff]  }
0x138e   :  { %3599 = vmatpush1.bf16.msra.mxu1 %v8334_v40  ;;  %3633 = vmatprep.subr.bf16.mxu0 %v8339_v0  ;;  %v8394_v40 = vld [vmem:[#allocation2 + $0x418] ss:$216 sps:$4 sm:$0xff]   ;;  %v8399_v0 = vld [vmem:[#allocation2 + $0x264] ss:$216 sps:$4 sm:$0xff]  }
0x138f   :  { %3674 = vmatprep.subr.bf16.mxu1 %v8342_v2  ;;  %v8402_v2 = vld [vmem:[#allocation2 + $0x26c] ss:$216 sps:$4 sm:$0xff]  }
0x1390   :  { %7073 = vmatmul.mubr.msk.bf16.vlgmr.msra.gmra.mxu0 %vm575_vm5, %v9712_v31 }
0x1391   :  { %7074 = vmatmul.mubr.msk.bf16.vlgmr.msra.gmra.mxu1 %vm575_vm5, %v9712_v31  ;;  %3634 = vmatpush1.bf16.msra.mxu0 %v8337_v5  ;;  %v8397_v5 = vld [vmem:[#allocation2 + $0x260] ss:$216 sps:$4 sm:$0xff]  }
0x1392   :  { %3675 = vmatpush1.bf16.msra.mxu1 %v8340_v60  ;;  %3635 = vmatprep.subr.bf16.mxu0 %v8345_v28  ;;  %v8400_v60 = vld [vmem:[#allocation2 + $0x268] ss:$216 sps:$4 sm:$0xff]   ;;  %v8405_v28 = vld [vmem:[#allocation2 + $0xb4] ss:$216 sps:$4 sm:$0xff]  }
0x1393   :  { %3676 = vmatprep.subr.bf16.mxu1 %v8348_v41  ;;  %3657 = vmatprep.mubr.bf16.mxu0 %v11070_v27  ;;  %v8408_v41 = vld [vmem:[#allocation2 + $0xbc] ss:$216 sps:$4 sm:$0xff]  }
0x1394   :  { %3698 = vmatprep.mubr.bf16.mxu1 %v11070_v27 }
0x1395   :  { %3636 = vmatpush1.bf16.msra.mxu0 %v8343_v63  ;;  %v8403_v63 = vld [vmem:[#allocation2 + $0xb0] ss:$216 sps:$4 sm:$0xff]  }
0x1396   :  { %3677 = vmatpush1.bf16.msra.mxu1 %v8346_v1  ;;  %3637 = vmatprep.subr.bf16.mxu0 %v8351_v8  ;;  %v8406_v1 = vld [vmem:[#allocation2 + $0xb8] ss:$216 sps:$4 sm:$0xff]   ;;  %v8411_v8 = vld [vmem:[#allocation2 + $0x5d4] ss:$216 sps:$4 sm:$0xff]  }
0x1397   :  { %3678 = vmatprep.subr.bf16.mxu1 %v8354_v4  ;;  %v8414_v4 = vld [vmem:[#allocation2 + $0x5dc] ss:$216 sps:$4 sm:$0xff]  }
0x1399   :  { %3638 = vmatpush1.bf16.msra.mxu0 %v8349_v7  ;;  %v8409_v7 = vld [vmem:[#allocation2 + $0x5d0] ss:$216 sps:$4 sm:$0xff]  }
0x139a   :  { %3679 = vmatpush1.bf16.msra.mxu1 %v8352_v61  ;;  %3639 = vmatprep.subr.bf16.mxu0 %v8357_v3  ;;  %v8412_v61 = vld [vmem:[#allocation2 + $0x5d8] ss:$216 sps:$4 sm:$0xff]   ;;  %v8417_v3 = vld [vmem:[#allocation2 + $0x424] ss:$216 sps:$4 sm:$0xff]  }
0x139b   :  { %3680 = vmatprep.subr.bf16.mxu1 %v8360_v57  ;;  %v8420_v57 = vld [vmem:[#allocation2 + $0x42c] ss:$216 sps:$4 sm:$0xff]  }
0x139d   :  { %3640 = vmatpush1.bf16.msra.mxu0 %v8355_v56  ;;  %v8415_v56 = vld [vmem:[#allocation2 + $0x420] ss:$216 sps:$4 sm:$0xff]  }
0x139e   :  { %3681 = vmatpush1.bf16.msra.mxu1 %v8358_v58  ;;  %3715 = vmatprep.subr.bf16.mxu0 %v8363_v24  ;;  %v8418_v58 = vld [vmem:[#allocation2 + $0x428] ss:$216 sps:$4 sm:$0xff]   ;;  %v8423_v24 = vld [vmem:[#allocation2 + $0x274] ss:$216 sps:$4 sm:$0xff]  }
0x139f   :  { %3756 = vmatprep.subr.bf16.mxu1 %v8366_v59  ;;  %v8426_v59 = vld [vmem:[#allocation2 + $0x27c] ss:$216 sps:$4 sm:$0xff]  }
0x13a0   :  { %7075 = vmatmul.mubr.msk.bf16.vlgmr.msra.gmra.mxu0 %vm575_vm5, %v9712_v31 }
0x13a1   :  { %7076 = vmatmul.mubr.msk.bf16.vlgmr.msra.gmra.mxu1 %vm575_vm5, %v9712_v31  ;;  %3716 = vmatpush1.bf16.msra.mxu0 %v8361_v11  ;;  %v8421_v11 = vld [vmem:[#allocation2 + $0x270] ss:$216 sps:$4 sm:$0xff]  }
0x13a2   :  { %3757 = vmatpush1.bf16.msra.mxu1 %v8364_v6  ;;  %3717 = vmatprep.subr.bf16.mxu0 %v8369_v26  ;;  %v8424_v6 = vld [vmem:[#allocation2 + $0x278] ss:$216 sps:$4 sm:$0xff]   ;;  %v8429_v26 = vld [vmem:[#allocation2 + $0xc4] ss:$216 sps:$4 sm:$0xff]  }
0x13a3   :  { %3758 = vmatprep.subr.bf16.mxu1 %v8372_v38  ;;  %3739 = vmatprep.mubr.bf16.mxu0 %v11070_v27  ;;  %v8432_v38 = vld [vmem:[#allocation2 + $0xcc] ss:$216 sps:$4 sm:$0xff]  }
0x13a4   :  { %3780 = vmatprep.mubr.bf16.mxu1 %v11070_v27 }
0x13a5   :  { %3718 = vmatpush1.bf16.msra.mxu0 %v8367_v34  ;;  %v8427_v34 = vld [vmem:[#allocation2 + $0xc0] ss:$216 sps:$4 sm:$0xff]  }
0x13a6   :  { %3759 = vmatpush1.bf16.msra.mxu1 %v8370_v39  ;;  %3719 = vmatprep.subr.bf16.mxu0 %v8375_v9  ;;  %v8430_v39 = vld [vmem:[#allocation2 + $0xc8] ss:$216 sps:$4 sm:$0xff]   ;;  %v8435_v9 = vld [vmem:[#allocation2 + $0x5e4] ss:$216 sps:$4 sm:$0xff]  }
0x13a7   :  { %3760 = vmatprep.subr.bf16.mxu1 %v8378_v43  ;;  %v9786_v43 = vld [vmem:[#allocation3 + $0x78] sm:$0xff]  }
0x13a9   :  { %3720 = vmatpush1.bf16.msra.mxu0 %v8373_v37  ;;  %v8433_v37 = vld [vmem:[#allocation2 + $0x5e0] ss:$216 sps:$4 sm:$0xff]  }
0x13aa   :  { %3761 = vmatpush1.bf16.msra.mxu1 %v8376_v25  ;;  %3721 = vmatprep.subr.bf16.mxu0 %v8381_v36  ;;  %v9788_v25 = vld [vmem:[#allocation3 + $0x38] sm:$0xff]   ;;  %v8440_v36 = vld [vmem:[#allocation2 + $0x434] ss:$216 sps:$4 sm:$0xff]  }
0x13ab   :  { %3762 = vmatprep.subr.bf16.mxu1 %v8384_v13  ;;  %v9791_v13 = vld [vmem:[#allocation3 + $0x70] sm:$0xff]  }
0x13ad   :  { %3722 = vmatpush1.bf16.msra.mxu0 %v8379_v12  ;;  %v8438_v12 = vld [vmem:[#allocation2 + $0x430] ss:$216 sps:$4 sm:$0xff]  }
0x13ae   :  { %3763 = vmatpush1.bf16.msra.mxu1 %v8382_v30  ;;  %3797 = vmatprep.subr.bf16.mxu0 %v8387_v44 }
0x13af   :  { %3838 = vmatprep.subr.bf16.mxu1 %v8390_v35  ;;  %v9801_v35 = vld [vmem:[#allocation3 + $0x30] sm:$0xff]  }
0x13b0   :  { %7077 = vmatmul.mubr.msk.bf16.vlgmr.msra.gmra.mxu0 %vm575_vm5, %v9712_v31 }
0x13b1   :  { %7078 = vmatmul.mubr.msk.bf16.vlgmr.msra.gmra.mxu1 %vm575_vm5, %v9712_v31  ;;  %3798 = vmatpush1.bf16.msra.mxu0 %v8385_v33  ;;  %v8445_v33 = vld [vmem:[#allocation2 + $0x284] ss:$216 sps:$4 sm:$0xff]  }
0x13b2   :  { %3839 = vmatpush1.bf16.msra.mxu1 %v8388_v32  ;;  %3799 = vmatprep.subr.bf16.mxu0 %v8393_v10 }
0x13b3   :  { %3840 = vmatprep.subr.bf16.mxu1 %v8396_v62  ;;  %3821 = vmatprep.mubr.bf16.mxu0 %v11070_v27  ;;  %v9805_v62 = vld [vmem:[#allocation3 + $0x68] sm:$0xff]  }
0x13b4   :  { %3862 = vmatprep.mubr.bf16.mxu1 %v11070_v27 }
0x13b5   :  { %3800 = vmatpush1.bf16.msra.mxu0 %v8391_v42 }
0x13b6   :  { %3841 = vmatpush1.bf16.msra.mxu1 %v8394_v40  ;;  %3801 = vmatprep.subr.bf16.mxu0 %v8399_v0 }
0x13b7   :  { %3842 = vmatprep.subr.bf16.mxu1 %v8402_v2 }
0x13b9   :  { %3802 = vmatpush1.bf16.msra.mxu0 %v8397_v5  ;;  %v8443_v5 = vld [vmem:[#allocation2 + $0x280] ss:$216 sps:$4 sm:$0xff]  }
0x13ba   :  { %3843 = vmatpush1.bf16.msra.mxu1 %v8400_v60  ;;  %3803 = vmatprep.subr.bf16.mxu0 %v8405_v28  ;;  %v9809_v60 = vld [vmem:[#allocation3 + $0x28] sm:$0xff]  }
0x13bb   :  { %3844 = vmatprep.subr.bf16.mxu1 %v8408_v41 }
0x13bd   :  { %3804 = vmatpush1.bf16.msra.mxu0 %v8403_v63  ;;  %v8450_v63 = vld [vmem:[#allocation2 + $0xd4] ss:$216 sps:$4 sm:$0xff]  }
0x13be   :  { %3845 = vmatpush1.bf16.msra.mxu1 %v8406_v1  ;;  %3879 = vmatprep.subr.bf16.mxu0 %v8411_v8  ;;  %v9812_v1 = vld [vmem:[#allocation3 + $0x60] sm:$0xff]   ;;  %v8448_v8 = vld [vmem:[#allocation2 + $0xd0] ss:$216 sps:$4 sm:$0xff]  }
0x13bf   :  { %3920 = vmatprep.subr.bf16.mxu1 %v8414_v4  ;;  %v9815_v4 = vld [vmem:[#allocation3 + $0x20] sm:$0xff]  }
0x13c0   :  { %7079 = vmatmul.mubr.msk.bf16.vlgmr.msra.gmra.mxu0 %vm575_vm5, %v9712_v31 }
0x13c1   :  { %7080 = vmatmul.mubr.msk.bf16.vlgmr.msra.gmra.mxu1 %vm575_vm5, %v9712_v31  ;;  %3880 = vmatpush1.bf16.msra.mxu0 %v8409_v7 }
0x13c2   :  { %3921 = vmatpush1.bf16.msra.mxu1 %v8412_v61  ;;  %3881 = vmatprep.subr.bf16.mxu0 %v8417_v3  ;;  %v9818_v61 = vld [vmem:[#allocation3 + $0x58] sm:$0xff]  }
0x13c3   :  { %3922 = vmatprep.subr.bf16.mxu1 %v8420_v57  ;;  %3903 = vmatprep.mubr.bf16.mxu0 %v11070_v27  ;;  %v9820_v3 = vld [vmem:[#allocation3 + $0xf8] sm:$0xff]  }
0x13c4   :  { %3944 = vmatprep.mubr.bf16.mxu1 %v11070_v27  ;;  %11074 = vst [vmem:[#allocation77_spill] sm:$0xff] %v9820_v3  ;;  %v9823_v57 = vld [vmem:[#allocation3 + $0x18] sm:$0xff]  }
0x13c5   :  { %3882 = vmatpush1.bf16.msra.mxu0 %v8415_v56  ;;  %v9825_v56 = vld [vmem:[#allocation3 + $0xb8] sm:$0xff]  }
0x13c6   :  { %3923 = vmatpush1.bf16.msra.mxu1 %v8418_v58  ;;  %3883 = vmatprep.subr.bf16.mxu0 %v8423_v24  ;;  %v9829_v24 = vld [vmem:[#allocation3 + $0x50] sm:$0xff]  }
0x13c7   :  { %3924 = vmatprep.subr.bf16.mxu1 %v8426_v59  ;;  %v9831_v59 = vld [vmem:[#allocation3 + $0xf0] sm:$0xff]  }
0x13c9   :  { %3884 = vmatpush1.bf16.msra.mxu0 %v8421_v11 }
0x13ca   :  { %3925 = vmatpush1.bf16.msra.mxu1 %v8424_v6  ;;  %3885 = vmatprep.subr.bf16.mxu0 %v8429_v26  ;;  %v9841_v26 = vld [vmem:[#allocation3 + $0x10] sm:$0xff]  }
0x13cb   :  { %3926 = vmatprep.subr.bf16.mxu1 %v8432_v38  ;;  %v9843_v38 = vld [vmem:[#allocation3 + $0xb0] sm:$0xff]  }
0x13cd   :  { %3886 = vmatpush1.bf16.msra.mxu0 %v8427_v34 }
0x13ce   :  { %3927 = vmatpush1.bf16.msra.mxu1 %v8430_v39  ;;  %3961 = vmatprep.subr.bf16.mxu0 %v8435_v9  ;;  %v9848_v9 = vld [vmem:[#allocation3 + $0x48] sm:$0xff]  }
0x13cf   :  { %7250 = vmatprep.subr.bf16.mxu1 %v9786_v43 }
0x13d0   :  { %v9793_v30 = vpop.f32.mrf.mxu0  ;;  %7081 = vmatmul.mubr.msk.bf16.vlgmr.msra.gmra.mxu0 %vm575_vm5, %v9712_v31 }
0x13d1   :  { %7082 = vmatmul.mubr.msk.bf16.vlgmr.msra.gmra.mxu1 %vm575_vm5, %v9712_v31  ;;  %v9799_v44 = vpop.f32.mrf.mxu1  ;;  %3962 = vmatpush1.bf16.msra.mxu0 %v8433_v37  ;;  %v9850_v37 = vld [vmem:[#allocation3 + $0xe8] sm:$0xff]  }
0x13d2   :  { %7251 = vmatpush3.bf16.msra.mxu1 %v9788_v25  ;;  %v2923_v32 = vpop.f32.mrf.mxu0  ;;  %3963 = vmatprep.subr.bf16.mxu0 %v8440_v36  ;;  %v3996_v18 = vmax.f32 %v9799_v44, 0.0  ;;  %v9944_v44 = vld [vmem:[#allocation3 + $0x150] sm:$0xff]  }
0x13d3   :  { %7252 = vmatprep.subr.bf16.mxu1 %v9791_v13  ;;  %v2964_v10 = vpop.f32.mrf.mxu1  ;;  %v3995_v42 = vmax.f32 %v2923_v32, 0.0  ;;  %3985 = vmatprep.mubr.bf16.mxu0 %v11070_v27  ;;  %11077 = vst [vmem:[#allocation80_spill] sm:$0xff] %v9944_v44 }
0x13d4   :  { %v2925_v40 = vpop.f32.mrf.mxu0  ;;  %v3997_v7 = vmax.f32 %v2964_v10, 0.0  ;;  %v4050_v20 = vpack.c.bf16 %v3996_v18, %v3996_v18  ;;  %v9956_v18 = vld [vmem:[#allocation3 + $0x1b0] sm:$0xff]  }
0x13d5   :  { %v2966_v0 = vpop.f32.mrf.mxu1  ;;  %v4049_v2 = vpack.c.bf16 %v3995_v42, %v3995_v42  ;;  %3964 = vmatpush1.bf16.msra.mxu0 %v8438_v12  ;;  %v9855_v12 = vld [vmem:[#allocation3 + $0x8] sm:$0xff]   ;;  %v9861_v42 = vld [vmem:[#allocation3 + $0x40] sm:$0xff]   ;;  %11079 = vst [vmem:[#allocation82_spill] sm:$0xff] %v9956_v18 }
0x13d6   :  { %7253 = vmatpush3.bf16.msra.mxu1 %v9801_v35  ;;  %v2926_v28 = vpop.f32.mrf.mxu0  ;;  %3965 = vmatprep.subr.bf16.mxu0 %v8445_v33  ;;  %v4051_v58 = vpack.c.bf16 %v3997_v7, %v3997_v7  ;;  %v9857_v33 = vld [vmem:[#allocation3 + $0xa8] sm:$0xff]   ;;  %v9863_v40 = vld [vmem:[#allocation3 + $0xe0] sm:$0xff]   ;;  %v9882_v7 = vld [vmem:[#allocation3 + $0x138] sm:$0xff]  }
0x13d7   :  { %7254 = vmatprep.subr.bf16.mxu1 %v9805_v62  ;;  %v2967_v41 = vpop.f32.mrf.mxu1  ;;  %4710 = vmatprep.mubr.bf16.mxu1 %v4049_v2  ;;  %v9867_v0 = vld [vmem:[#allocation3] sm:$0xff]   ;;  %v9874_v28 = vld [vmem:[#allocation3 + $0xd8] sm:$0xff]  }
0x13d8   :  { %v9869_v2 = vld [vmem:[#allocation3 + $0xa0] sm:$0xff]   ;;  %v9876_v41 = vld [vmem:[#allocation3 + $0x178] sm:$0xff]  }
0x13d9   :  { %3966 = vmatpush1.bf16.msra.mxu0 %v8443_v5  ;;  %v3994_v5 = vmax.f32 %v9793_v30, 0.0  ;;  %v9886_v30 = vld [vmem:[#allocation3 + $0xd0] sm:$0xff]  }
0x13da   :  { %7255 = vmatpush3.bf16.msra.mxu1 %v9809_v60  ;;  %3967 = vmatprep.subr.bf16.mxu0 %v8450_v63 }
0x13db   :  { %7256 = vmatprep.subr.bf16.mxu1 %v9812_v1 }
0x13dd   :  { %3968 = vmatpush1.bf16.msra.mxu0 %v8448_v8  ;;  %v9880_v8 = vld [vmem:[#allocation3 + $0x98] sm:$0xff]  }
0x13de   :  { %7257 = vmatpush3.bf16.msra.mxu1 %v9815_v4  ;;  %7272 = vmatprep.subr.bf16.mxu0 %v9820_v3 }
0x13df   :  { %7258 = vmatprep.subr.bf16.mxu1 %v9818_v61 }
0x13e0   :  { %v9833_v11 = vpop.f32.mrf.mxu0  ;;  %7083 = vmatmul.mubr.msk.bf16.vlgmr.msra.gmra.mxu0 %vm575_vm5, %v9712_v31 }
0x13e1   :  { %v9837_v6 = vpop.f32.mrf.mxu1  ;;  %7273 = vmatpush3.bf16.msra.mxu0 %v9825_v56  ;;  %4750 = vmatprep.mubr.bf16.mxu0 %v4051_v58  ;;  %v4048_v58 = vpack.c.bf16 %v3994_v5, %v3994_v5  ;;  %v9898_v5 = vld [vmem:[#allocation3 + $0x130] sm:$0xff]  }
0x13e2   :  { %7259 = vmatpush3.bf16.msra.mxu1 %v9823_v57  ;;  %v3005_v34 = vpop.f32.mrf.mxu0  ;;  %7274 = vmatprep.subr.bf16.mxu0 %v9831_v59 }
0x13e3   :  { %7260 = vmatprep.subr.bf16.mxu1 %v9829_v24  ;;  %v9846_v39 = vpop.f32.mrf.mxu1  ;;  %v3999_v63 = vmax.f32 %v3005_v34, 0.0 }
0x13e4   :  { %v3007_v31 = vpop.f32.mrf.mxu0  ;;  %v4001_v19 = vmax.f32 %v9846_v39, 0.0 }
0x13e5   :  { %v3048_v36 = vpop.f32.mrf.mxu1  ;;  %7275 = vmatpush3.bf16.msra.mxu0 %v9843_v38  ;;  %v9888_v31 = vld [vmem:[#allocation3 + $0x170] sm:$0xff]  }
0x13e6   :  { %7261 = vmatpush3.bf16.msra.mxu1 %v9841_v26  ;;  %v3008_v32 = vpop.f32.mrf.mxu0  ;;  %7276 = vmatprep.subr.bf16.mxu0 %v9850_v37  ;;  %v4053_v36 = vpack.c.bf16 %v3999_v63, %v3999_v63  ;;  %v9905_v63 = vld [vmem:[#allocation3 + $0xc8] sm:$0xff]   ;;  %v4055_v52 = vpack.c.bf16 %v4001_v19, %v4001_v19 }
0x13e7   :  { %7262 = vmatprep.subr.bf16.mxu1 %v9848_v9  ;;  %v3049_v10 = vpop.f32.mrf.mxu1  ;;  %v9963_v19 = vld [vmem:[#allocation3 + $0x148] sm:$0xff]  }
0x13e8   :  { %v9896_v10 = vld [vmem:[#allocation3 + $0x90] sm:$0xff]   ;;  %11082 = vst [vmem:[#allocation85_spill] sm:$0xff] %v9963_v19 }
0x13e9   :  { %7277 = vmatpush3.bf16.msra.mxu0 %v9857_v33 }
0x13ea   :  { %7263 = vmatpush3.bf16.msra.mxu1 %v9855_v12  ;;  %7278 = vmatprep.subr.bf16.mxu0 %v9863_v40 }
0x13eb   :  { %7264 = vmatprep.subr.bf16.mxu1 %v9861_v42 }
0x13ed   :  { %7279 = vmatpush3.bf16.msra.mxu0 %v9869_v2 }
0x13ee   :  { %7265 = vmatpush3.bf16.msra.mxu1 %v9867_v0  ;;  %7280 = vmatprep.subr.bf16.mxu0 %v9874_v28 }
0x13ef   :  { %7294 = vmatprep.subr.bf16.mxu1 %v9876_v41 }
0x13f0   :  { %v9890_v32 = vpop.f32.mrf.mxu0 }
0x13f1   :  { %4711 = vmatmul.mubr.bf16.vlgmr.msra.gmra.mxu1 %v4048_v58  ;;  %v9892_v34 = vpop.f32.mrf.mxu1  ;;  %7281 = vmatpush3.bf16.msra.mxu0 %v9880_v8  ;;  %v9907_v58 = vld [vmem:[#allocation3 + $0x168] sm:$0xff]  }
0x13f2   :  { %7295 = vmatpush3.bf16.msra.mxu1 %v9882_v7  ;;  %4790 = vmatprep.mubr.bf16.mxu1 %v4053_v36  ;;  %v9900_v45 = vpop.f32.mrf.mxu0  ;;  %v9914_v36 = vld [vmem:[#allocation3 + $0x128] sm:$0xff]  }
0x13f3   :  { %7282 = vmatprep.subr.bf16.mxu0 %v9886_v30  ;;  %v9903_v14 = vpop.f32.mrf.mxu1  ;;  %7296 = vmatprep.subr.bf16.mxu1 %v9888_v31 }
0x13f4   :  { %v3089_v15 = vpop.f32.mrf.mxu0 }
0x13f5   :  { %v3130_v46 = vpop.f32.mrf.mxu1  ;;  %7283 = vmatpush3.bf16.msra.mxu0 %v9896_v10  ;;  %v9924_v15 = vld [vmem:[#allocation3 + $0x80] sm:$0xff]  }
0x13f6   :  { %7297 = vmatpush3.bf16.msra.mxu1 %v9898_v5  ;;  %v3090_v16 = vpop.f32.mrf.mxu0  ;;  %7284 = vmatprep.subr.bf16.mxu0 %v9905_v63  ;;  %v9926_v46 = vld [vmem:[#allocation3 + $0x120] sm:$0xff]  }
0x13f7   :  { %7298 = vmatprep.subr.bf16.mxu1 %v9907_v58  ;;  %v3131_v17 = vpop.f32.mrf.mxu1  ;;  %v9931_v16 = vld [vmem:[#allocation3 + $0x158] sm:$0xff]  }
0x13f8   :  { %v9933_v17 = vld [vmem:[#allocation3 + $0x1f8] sm:$0xff]  }
0x13f9   :  { %7285 = vmatpush3.bf16.msra.mxu0 %v9912_v47 }
0x13fa   :  { %7299 = vmatpush3.bf16.msra.mxu1 %v9914_v36  ;;  %7286 = vmatprep.subr.bf16.mxu0 %v9918_v48 }
0x13fb   :  { %7300 = vmatprep.subr.bf16.mxu1 %v9920_v49 }
0x13fd   :  { %7287 = vmatpush3.bf16.msra.mxu0 %v9924_v15 }
0x13fe   :  { %7301 = vmatpush3.bf16.msra.mxu1 %v9926_v46  ;;  %7316 = vmatprep.subr.bf16.mxu0 %v9933_v17 }
0x13ff   :  { %7302 = vmatprep.subr.bf16.mxu1 %v9931_v16 }
0x1400   :  { %v9948_v53 = vpop.f32.mrf.mxu0  ;;  %4751 = vmatmul.mubr.bf16.vlgmr.msra.gmra.mxu0 %v4050_v20  ;;  %v9965_v20 = vld [vmem:[#allocation3 + $0x1e8] sm:$0xff]  }
0x1401   :  { %v9950_v39 = vpop.f32.mrf.mxu1  ;;  %7317 = vmatpush3.bf16.msra.mxu0 %v9940_v51  ;;  %4830 = vmatprep.mubr.bf16.mxu0 %v4055_v52  ;;  %11083 = vst [vmem:[#allocation86_spill] sm:$0xff] %v9965_v20  ;;  %v9970_v51 = vld [vmem:[#allocation3 + $0x108] sm:$0xff]  }
0x1402   :  { %7303 = vmatpush3.bf16.msra.mxu1 %v9938_v50  ;;  %v9958_v23 = vpop.f32.mrf.mxu0  ;;  %7318 = vmatprep.subr.bf16.mxu0 %v9946_v21  ;;  %11084 = vst [vmem:[#allocation87_spill] sm:$0xff] %v9970_v51  ;;  %v9972_v52 = vld [vmem:[#allocation3 + $0x1a8] sm:$0xff]   ;;  %v9978_v50 = vld [vmem:[#allocation3 + $0x1e0] sm:$0xff]  }
0x1403   :  { %11080 = vst [vmem:[#allocation83_spill] sm:$0xff] %v9958_v23  ;;  %7304 = vmatprep.subr.bf16.mxu1 %v9944_v44  ;;  %v9961_v54 = vpop.f32.mrf.mxu1  ;;  %11085 = vst [vmem:[#allocation88_spill] sm:$0xff] %v9972_v52  ;;  %v9976_v44 = vld [vmem:[#allocation3 + $0x140] sm:$0xff]  }
0x1404   :  { %11081 = vst [vmem:[#allocation84_spill] sm:$0xff] %v9961_v54  ;;  %v3171_v55 = vpop.f32.mrf.mxu0  ;;  %11086 = vst [vmem:[#allocation89_spill] sm:$0xff] %v9976_v44 }
0x1405   :  { %v3212_v27 = vpop.f32.mrf.mxu1  ;;  %7319 = vmatpush3.bf16.msra.mxu0 %v9956_v18  ;;  %11087 = vst [vmem:[#allocation90_spill] sm:$0xff] %v9978_v50  ;;  %v9982_v55 = vld [vmem:[#allocation3 + $0x100] sm:$0xff]   ;;  %v3998_v18 = vmax.f32 %v9833_v11, 0.0  ;;  %v9999_v11 = vld [vmem:[#allocation3 + $0x1d0] sm:$0xff]  }
0x1406   :  { %7305 = vmatpush3.bf16.msra.mxu1 %v9954_v22  ;;  %v3172_v23 = vpop.f32.mrf.mxu0  ;;  %7320 = vmatprep.subr.bf16.mxu0 %v9965_v20  ;;  %11088 = vst [vmem:[#allocation91_spill] sm:$0xff] %v9982_v55  ;;  %v9984_v27 = vld [vmem:[#allocation3 + $0x1a0] sm:$0xff]   ;;  %11093 = vst [vmem:[#allocation96_spill] sm:$0xff] %v9999_v11  ;;  %v10017_v20 = vld [vmem:[#allocation3 + $0x1c8] sm:$0xff]  }
0x1407   :  { %7306 = vmatprep.subr.bf16.mxu1 %v9963_v19  ;;  %v3213_v54 = vpop.f32.mrf.mxu1  ;;  %11089 = vst [vmem:[#allocation92_spill] sm:$0xff] %v9984_v27  ;;  %v9989_v23 = vld [vmem:[#allocation3 + $0x1d8] sm:$0xff]   ;;  %11098 = vst [vmem:[#allocation101_spill] sm:$0xff] %v10017_v20 }
0x1408   :  { %11090 = vst [vmem:[#allocation93_spill] sm:$0xff] %v9989_v23  ;;  %v9993_v54 = vld [vmem:[#allocation3 + $0x198] sm:$0xff]  }
0x1409   :  { %7321 = vmatpush3.bf16.msra.mxu0 %v9972_v52  ;;  %11091 = vst [vmem:[#allocation94_spill] sm:$0xff] %v9993_v54  ;;  %v4052_v52 = vpack.c.bf16 %v3998_v18, %v3998_v18 }
0x140a   :  { %7307 = vmatpush3.bf16.msra.mxu1 %v9970_v51  ;;  %7322 = vmatprep.subr.bf16.mxu0 %v9978_v50  ;;  %v9995_v51 = vld [vmem:[#allocation3 + $0x238] sm:$0xff]  }
0x140b   :  { %7308 = vmatprep.subr.bf16.mxu1 %v9976_v44  ;;  %11092 = vst [vmem:[#allocation95_spill] sm:$0xff] %v9995_v51 }
0x140d   :  { %7323 = vmatpush3.bf16.msra.mxu0 %v9984_v27  ;;  %v10007_v27 = vld [vmem:[#allocation3 + $0x190] sm:$0xff]  }
0x140e   :  { %7309 = vmatpush3.bf16.msra.mxu1 %v9982_v55  ;;  %7324 = vmatprep.subr.bf16.mxu0 %v9989_v23  ;;  %v10009_v55 = vld [vmem:[#allocation3 + $0x230] sm:$0xff]  }
0x140f   :  { %7863 = vmatprep.subr.bf16.mxu1 %v11069_v29  ;;  %11095 = vst [vmem:[#allocation98_spill] sm:$0xff] %v10009_v55 }
0x1410   :  { %v10001_v44 = vpop.f32.mrf.mxu0 }
0x1411   :  { %4791 = vmatmul.mubr.bf16.vlgmr.msra.gmra.mxu1 %v4052_v52  ;;  %v10003_v50 = vpop.f32.mrf.mxu1  ;;  %7325 = vmatpush3.bf16.msra.mxu0 %v9993_v54  ;;  %v10029_v54 = vld [vmem:[#allocation3 + $0x1c0] sm:$0xff]  }
0x1412   :  { %11094 = vst [vmem:[#allocation97_spill] sm:$0xff] %v10003_v50  ;;  %7864 = vmatpush3.bf16.msra.mxu1 %v9995_v51  ;;  %v10011_v18 = vpop.f32.mrf.mxu0  ;;  %7326 = vmatprep.subr.bf16.mxu0 %v9999_v11  ;;  %v10023_v51 = vld [vmem:[#allocation3 + $0x188] sm:$0xff]  }
0x1413   :  { %11096 = vst [vmem:[#allocation99_spill] sm:$0xff] %v10011_v18  ;;  %7865 = vmatprep.subr.bf16.mxu1 %v11069_v29  ;;  %v10015_v23 = vpop.f32.mrf.mxu1  ;;  %7879 = vmatprep.mubr.msk.bf16.mxu1 %vm8723_vm0, %v11069_v29  ;;  %11099 = vst [vmem:[#allocation102_spill] sm:$0xff] %v10023_v51  ;;  %v10025_v18 = vld [vmem:[#allocation3 + $0x228] sm:$0xff]  }
0x1414   :  { %11097 = vst [vmem:[#allocation100_spill] sm:$0xff] %v10015_v23  ;;  %v3253_v52 = vpop.f32.mrf.mxu0  ;;  %11100 = vst [vmem:[#allocation103_spill] sm:$0xff] %v10025_v18 }
0x1415   :  { %v3294_v50 = vpop.f32.mrf.mxu1  ;;  %7327 = vmatpush3.bf16.msra.mxu0 %v10007_v27  ;;  %v10035_v52 = vld [vmem:[#allocation3 + $0x220] sm:$0xff]  }
0x1416   :  { %7866 = vmatpush3.bf16.msra.mxu1 %v10009_v55  ;;  %v3254_v11 = vpop.f32.mrf.mxu0  ;;  %7328 = vmatprep.subr.bf16.mxu0 %v10017_v20  ;;  %v10033_v50 = vld [vmem:[#allocation3 + $0x180] sm:$0xff]   ;;  %11102 = vst [vmem:[#allocation105_spill] sm:$0xff] %v10035_v52  ;;  %v4000_v55 = vmax.f32 %v9837_v6, 0.0 }
0x1417   :  { %7867 = vmatprep.subr.bf16.mxu1 %v11069_v29  ;;  %v3295_v23 = vpop.f32.mrf.mxu1  ;;  %11101 = vst [vmem:[#allocation104_spill] sm:$0xff] %v10033_v50  ;;  %v4004_v11 = vmax.f32 %v9892_v34, 0.0  ;;  %v10053_v34 = vld [vmem:[#allocation3 + $0x210] sm:$0xff]  }
0x1418   :  { %v10043_v23 = vld [vmem:[#allocation3 + $0x218] sm:$0xff]  }
0x1419   :  { %7329 = vmatpush3.bf16.msra.mxu0 %v10023_v51  ;;  %v4054_v51 = vpack.c.bf16 %v4000_v55, %v4000_v55 }
0x141a   :  { %7868 = vmatpush3.bf16.msra.mxu1 %v10025_v18  ;;  %7330 = vmatprep.subr.bf16.mxu0 %v10029_v54  ;;  %v4058_v18 = vpack.c.bf16 %v4004_v11, %v4004_v11 }
0x141b   :  { %7869 = vmatprep.subr.bf16.mxu1 %v11069_v29 }
0x141d   :  { %7331 = vmatpush3.bf16.msra.mxu0 %v10033_v50 }
0x141e   :  { %7870 = vmatpush3.bf16.msra.mxu1 %v10035_v52  ;;  %7347 = vmatprep.subr.bf16.mxu0 %v9786_v43 }
0x141f   :  { %7871 = vmatprep.subr.bf16.mxu1 %v11069_v29 }
0x1420   :  { %v10047_v20 = vpop.f32.mrf.mxu0  ;;  %4831 = vmatmul.mubr.bf16.vlgmr.msra.gmra.mxu0 %v4054_v51  ;;  %v10063_v51 = vld [vmem:[#allocation3 + $0x208] sm:$0xff]  }
0x1421   :  { %11103 = vst [vmem:[#allocation106_spill] sm:$0xff] %v10047_v20  ;;  %v10049_v6 = vpop.f32.mrf.mxu1  ;;  %7348 = vmatpush3.bf16.msra.mxu0 %v9788_v25  ;;  %4910 = vmatprep.mubr.bf16.mxu0 %v4058_v18  ;;  %11107 = vst [vmem:[#allocation110_spill] sm:$0xff] %v10063_v51 }
0x1422   :  { %11104 = vst [vmem:[#allocation107_spill] sm:$0xff] %v10049_v6  ;;  %7872 = vmatpush3.bf16.msra.mxu1 %v10043_v23  ;;  %v10055_v52 = vpop.f32.mrf.mxu0  ;;  %7349 = vmatprep.subr.bf16.mxu0 %v9791_v13 }
0x1423   :  { %11105 = vst [vmem:[#allocation108_spill] sm:$0xff] %v10055_v52  ;;  %7873 = vmatprep.subr.bf16.mxu1 %v11069_v29  ;;  %v10058_v55 = vpop.f32.mrf.mxu1 }
0x1424   :  { %11106 = vst [vmem:[#allocation109_spill] sm:$0xff] %v10058_v55  ;;  %v3335_v11 = vpop.f32.mrf.mxu0  ;;  %v10069_v55 = vld [vmem:[#allocation3 + $0x200] sm:$0xff]  }
0x1425   :  { %v3376_v20 = vpop.f32.mrf.mxu1  ;;  %7350 = vmatpush3.bf16.msra.mxu0 %v9801_v35  ;;  %v4006_v11 = vmax.f32 %v9948_v53, 0.0 }
0x1426   :  { %7874 = vmatpush3.bf16.msra.mxu1 %v10053_v34  ;;  %v3336_v6 = vpop.f32.mrf.mxu0  ;;  %7351 = vmatprep.subr.bf16.mxu0 %v9805_v62  ;;  %v4002_v20 = vmax.f32 %v9890_v32, 0.0 }
0x1427   :  { %7875 = vmatprep.subr.bf16.mxu1 %v11069_v29  ;;  %v3377_v18 = vpop.f32.mrf.mxu1 }
0x1428   :  { %v4056_v6 = vpack.c.bf16 %v4002_v20, %v4002_v20  ;;  %v4060_v18 = vpack.c.bf16 %v4006_v11, %v4006_v11 }
0x1429   :  { %7352 = vmatpush3.bf16.msra.mxu0 %v9809_v60 }
0x142a   :  { %7876 = vmatpush3.bf16.msra.mxu1 %v10063_v51  ;;  %7353 = vmatprep.subr.bf16.mxu0 %v9812_v1 }
0x142b   :  { %7877 = vmatprep.subr.bf16.mxu1 %v11069_v29 }
0x142d   :  { %7354 = vmatpush3.bf16.msra.mxu0 %v9815_v4 }
0x142e   :  { %7878 = vmatpush3.bf16.msra.mxu1 %v10069_v55  ;;  %7355 = vmatprep.subr.bf16.mxu0 %v9818_v61 }
0x142f   :  { %7369 = vmatprep.subr.bf16.mxu1 %v9820_v3 }
0x1430   :  { %v10079_v52 = vpop.f32.mrf.mxu0 }
0x1431   :  { %11108 = vst [vmem:[#allocation111_spill] sm:$0xff] %v10079_v52  ;;  %7880 = vmatmul.mubr.bf16.vlgmr.msra.gmra.mxu1 %v4056_v6  ;;  %v10081_v32 = vpop.f32.mrf.mxu1  ;;  %7356 = vmatpush3.bf16.msra.mxu0 %v9823_v57 }
0x1432   :  { %11109 = vst [vmem:[#allocation112_spill] sm:$0xff] %v10081_v32  ;;  %7370 = vmatpush3.bf16.msra.mxu1 %v9825_v56  ;;  %4950 = vmatprep.mubr.bf16.mxu1 %v4060_v18  ;;  %v10085_v53 = vpop.f32.mrf.mxu0 }
0x1433   :  { %7357 = vmatprep.subr.bf16.mxu0 %v9829_v24  ;;  %v10088_v20 = vpop.f32.mrf.mxu1  ;;  %7371 = vmatprep.subr.bf16.mxu1 %v9831_v59 }
0x1434   :  { %11110 = vst [vmem:[#allocation113_spill] sm:$0xff] %v10088_v20  ;;  %v3417_v3 = vpop.f32.mrf.mxu0  ;;  %v4003_v20 = vmax.f32 %v9900_v45, 0.0 }
0x1435   :  { %v3458_v11 = vpop.f32.mrf.mxu1  ;;  %7358 = vmatpush3.bf16.msra.mxu0 %v9841_v26  ;;  %v4008_v3 = vmax.f32 %v9950_v39, 0.0 }
0x1436   :  { %7372 = vmatpush3.bf16.msra.mxu1 %v9843_v38  ;;  %v3418_v6 = vpop.f32.mrf.mxu0  ;;  %7359 = vmatprep.subr.bf16.mxu0 %v9848_v9  ;;  %v4057_v11 = vpack.c.bf16 %v4003_v20, %v4003_v20 }
0x1437   :  { %7373 = vmatprep.subr.bf16.mxu1 %v9850_v37  ;;  %v3459_v18 = vpop.f32.mrf.mxu1  ;;  %v4062_v6 = vpack.c.bf16 %v4008_v3, %v4008_v3 }
0x1439   :  { %7360 = vmatpush3.bf16.msra.mxu0 %v9855_v12 }
0x143a   :  { %7374 = vmatpush3.bf16.msra.mxu1 %v9857_v33  ;;  %7361 = vmatprep.subr.bf16.mxu0 %v9861_v42 }
0x143b   :  { %7375 = vmatprep.subr.bf16.mxu1 %v9863_v40 }
0x143d   :  { %7362 = vmatpush3.bf16.msra.mxu0 %v9867_v0 }
0x143e   :  { %7376 = vmatpush3.bf16.msra.mxu1 %v9869_v2  ;;  %7391 = vmatprep.subr.bf16.mxu0 %v9876_v41 }
0x143f   :  { %7377 = vmatprep.subr.bf16.mxu1 %v9874_v28 }
0x1440   :  { %v10105_v18 = vpop.f32.mrf.mxu0  ;;  %4911 = vmatmul.mubr.bf16.vlgmr.msra.gmra.mxu0 %v4057_v11 }
0x1441   :  { %11111 = vst [vmem:[#allocation114_spill] sm:$0xff] %v10105_v18  ;;  %v10107_v45 = vpop.f32.mrf.mxu1  ;;  %7392 = vmatpush3.bf16.msra.mxu0 %v9882_v7  ;;  %4990 = vmatprep.mubr.bf16.mxu0 %v4062_v6  ;;  %v11120_v18 = vld [vmem:[#allocation80_spill] sm:$0xff] }
0x1442   :  { %11112 = vst [vmem:[#allocation115_spill] sm:$0xff] %v10107_v45  ;;  %7378 = vmatpush3.bf16.msra.mxu1 %v9880_v8  ;;  %v10111_v39 = vpop.f32.mrf.mxu0  ;;  %7393 = vmatprep.subr.bf16.mxu0 %v9888_v31  ;;  %v11118_v45 = vld [vmem:[#allocation79_spill] sm:$0xff] }
0x1443   :  { %11113 = vst [vmem:[#allocation116_spill] sm:$0xff] %v10111_v39  ;;  %7379 = vmatprep.subr.bf16.mxu1 %v9886_v30  ;;  %v10114_v20 = vpop.f32.mrf.mxu1  ;;  %v11117_v39 = vld [vmem:[#allocation78_spill] sm:$0xff] }
0x1444   :  { %11114 = vst [vmem:[#allocation117_spill] sm:$0xff] %v10114_v20  ;;  %v3499_v32 = vpop.f32.mrf.mxu0  ;;  %v4005_v20 = vmax.f32 %v9903_v14, 0.0 }
0x1445   :  { %v3540_v3 = vpop.f32.mrf.mxu1  ;;  %7394 = vmatpush3.bf16.msra.mxu0 %v9898_v5  ;;  %v4010_v32 = vmax.f32 %v10001_v44, 0.0 }
0x1446   :  { %7380 = vmatpush3.bf16.msra.mxu1 %v9896_v10  ;;  %v3500_v11 = vpop.f32.mrf.mxu0  ;;  %7395 = vmatprep.subr.bf16.mxu0 %v9907_v58  ;;  %v4059_v3 = vpack.c.bf16 %v4005_v20, %v4005_v20 }
0x1447   :  { %7381 = vmatprep.subr.bf16.mxu1 %v9905_v63  ;;  %v3541_v6 = vpop.f32.mrf.mxu1  ;;  %v4064_v11 = vpack.c.bf16 %v4010_v32, %v4010_v32 }
0x1449   :  { %7396 = vmatpush3.bf16.msra.mxu0 %v9914_v36 }
0x144a   :  { %7382 = vmatpush3.bf16.msra.mxu1 %v9912_v47  ;;  %7397 = vmatprep.subr.bf16.mxu0 %v9920_v49 }
0x144b   :  { %7383 = vmatprep.subr.bf16.mxu1 %v9918_v48 }
0x144d   :  { %7398 = vmatpush3.bf16.msra.mxu0 %v9926_v46 }
0x144e   :  { %7384 = vmatpush3.bf16.msra.mxu1 %v9924_v15  ;;  %7399 = vmatprep.subr.bf16.mxu0 %v9931_v16 }
0x144f   :  { %7413 = vmatprep.subr.bf16.mxu1 %v9933_v17 }
0x1450   :  { %v10131_v6 = vpop.f32.mrf.mxu0 }
0x1451   :  { %11115 = vst [vmem:[#allocation118_spill] sm:$0xff] %v10131_v6  ;;  %4951 = vmatmul.mubr.bf16.vlgmr.msra.gmra.mxu1 %v4059_v3  ;;  %v10133_v14 = vpop.f32.mrf.mxu1  ;;  %7400 = vmatpush3.bf16.msra.mxu0 %v11117_v39  ;;  %v11122_v3 = vld [vmem:[#allocation82_spill] sm:$0xff]  ;;  %v11127_v39 = vld [vmem:[#allocation89_spill] sm:$0xff] }
0x1452   :  { %11116 = vst [vmem:[#allocation119_spill] sm:$0xff] %v10133_v14  ;;  %7414 = vmatpush3.bf16.msra.mxu1 %v11118_v45  ;;  %5030 = vmatprep.mubr.bf16.mxu1 %v4064_v11  ;;  %v10137_v44 = vpop.f32.mrf.mxu0  ;;  %v11123_v6 = vld [vmem:[#allocation86_spill] sm:$0xff]  ;;  %v11124_v45 = vld [vmem:[#allocation87_spill] sm:$0xff] }
0x1453   :  { %11119 = vst [vmem:[#allocation120_spill] sm:$0xff] %v10137_v44  ;;  %7401 = vmatprep.subr.bf16.mxu0 %v11120_v18  ;;  %v10140_v20 = vpop.f32.mrf.mxu1  ;;  %7415 = vmatprep.subr.bf16.mxu1 %v9946_v21  ;;  %v11125_v44 = vld [vmem:[#allocation88_spill] sm:$0xff]  ;;  %v11126_v18 = vld [vmem:[#allocation83_spill] sm:$0xff] }
0x1454   :  { %11121 = vst [vmem:[#allocation121_spill] sm:$0xff] %v10140_v20  ;;  %v3581_v52 = vpop.f32.mrf.mxu0  ;;  %v4007_v20 = vmax.f32 %v11126_v18, 0.0  ;;  %v11135_v18 = vld [vmem:[#allocation95_spill] sm:$0xff] }
0x1455   :  { %v3622_v32 = vpop.f32.mrf.mxu1  ;;  %7402 = vmatpush3.bf16.msra.mxu0 %v9954_v22  ;;  %v11128_v52 = vld [vmem:[#allocation90_spill] sm:$0xff]  ;;  %v11130_v22 = vld [vmem:[#allocation92_spill] sm:$0xff] }
0x1456   :  { %7416 = vmatpush3.bf16.msra.mxu1 %v11122_v3  ;;  %v3582_v14 = vpop.f32.mrf.mxu0  ;;  %7403 = vmatprep.subr.bf16.mxu0 %v9963_v19  ;;  %v11129_v32 = vld [vmem:[#allocation91_spill] sm:$0xff]  ;;  %v11131_v3 = vld [vmem:[#allocation93_spill] sm:$0xff] }
0x1457   :  { %7417 = vmatprep.subr.bf16.mxu1 %v11123_v6  ;;  %v3623_v11 = vpop.f32.mrf.mxu1  ;;  %v4061_v14 = vpack.c.bf16 %v4007_v20, %v4007_v20 }
0x1459   :  { %7404 = vmatpush3.bf16.msra.mxu0 %v11124_v45 }
0x145a   :  { %7418 = vmatpush3.bf16.msra.mxu1 %v11125_v44  ;;  %7405 = vmatprep.subr.bf16.mxu0 %v11127_v39  ;;  %v11134_v44 = vld [vmem:[#allocation94_spill] sm:$0xff] }
0x145b   :  { %7419 = vmatprep.subr.bf16.mxu1 %v11128_v52  ;;  %v11137_v52 = vld [vmem:[#allocation96_spill] sm:$0xff] }
0x145d   :  { %7406 = vmatpush3.bf16.msra.mxu0 %v11129_v32 }
0x145e   :  { %7420 = vmatpush3.bf16.msra.mxu1 %v11130_v22  ;;  %7883 = vmatprep.subr.bf16.mxu0 %v11069_v29 }
0x145f   :  { %7421 = vmatprep.subr.bf16.mxu1 %v11131_v3 }
0x1460   :  { %v10156_v11 = vpop.f32.mrf.mxu0  ;;  %4991 = vmatmul.mubr.bf16.vlgmr.msra.gmra.mxu0 %v4061_v14  ;;  %v11139_v14 = vld [vmem:[#allocation98_spill] sm:$0xff] }
0x1461   :  { %11132 = vst [vmem:[#allocation83_spill] sm:$0xff] %v10156_v11  ;;  %v10158_v45 = vpop.f32.mrf.mxu1  ;;  %7884 = vmatpush3.bf16.msra.mxu0 %v11135_v18  ;;  %7899 = vmatprep.mubr.msk.bf16.mxu0 %vm8723_vm0, %v11069_v29  ;;  %v11142_v18 = vld [vmem:[#allocation103_spill] sm:$0xff] }
0x1462   :  { %11133 = vst [vmem:[#allocation91_spill] sm:$0xff] %v10158_v45  ;;  %7422 = vmatpush3.bf16.msra.mxu1 %v11134_v44  ;;  %v10162_v39 = vpop.f32.mrf.mxu0  ;;  %7885 = vmatprep.subr.bf16.mxu0 %v11069_v29  ;;  %v11140_v44 = vld [vmem:[#allocation101_spill] sm:$0xff] }
0x1463   :  { %11136 = vst [vmem:[#allocation122_spill] sm:$0xff] %v10162_v39  ;;  %7423 = vmatprep.subr.bf16.mxu1 %v11137_v52  ;;  %v10166_v20 = vpop.f32.mrf.mxu1  ;;  %v11141_v52 = vld [vmem:[#allocation102_spill] sm:$0xff] }
0x1464   :  { %11138 = vst [vmem:[#allocation123_spill] sm:$0xff] %v10166_v20  ;;  %v3663_v3 = vpop.f32.mrf.mxu0  ;;  %v11143_v20 = vld [vmem:[#allocation84_spill] sm:$0xff] }
0x1465   :  { %v3704_v11 = vpop.f32.mrf.mxu1  ;;  %7886 = vmatpush3.bf16.msra.mxu0 %v11139_v14  ;;  %v4009_v22 = vmax.f32 %v11143_v20, 0.0  ;;  %v11144_v3 = vld [vmem:[#allocation100_spill] sm:$0xff] }
0x1466   :  { %7424 = vmatpush3.bf16.msra.mxu1 %v10007_v27  ;;  %v3664_v45 = vpop.f32.mrf.mxu0  ;;  %7887 = vmatprep.subr.bf16.mxu0 %v11069_v29  ;;  %v4013_v11 = vmax.f32 %v11144_v3, 0.0 }
0x1467   :  { %7425 = vmatprep.subr.bf16.mxu1 %v11140_v44  ;;  %v3705_v39 = vpop.f32.mrf.mxu1  ;;  %v11145_v45 = vld [vmem:[#allocation105_spill] sm:$0xff]  ;;  %v4063_v44 = vpack.c.bf16 %v4009_v22, %v4009_v22 }
0x1468   :  { %v4067_v39 = vpack.c.bf16 %v4013_v11, %v4013_v11 }
0x1469   :  { %7888 = vmatpush3.bf16.msra.mxu0 %v11142_v18 }
0x146a   :  { %7426 = vmatpush3.bf16.msra.mxu1 %v11141_v52  ;;  %7889 = vmatprep.subr.bf16.mxu0 %v11069_v29 }
0x146b   :  { %7427 = vmatprep.subr.bf16.mxu1 %v10029_v54 }
0x146d   :  { %7890 = vmatpush3.bf16.msra.mxu0 %v11145_v45 }
0x146e   :  { %7428 = vmatpush3.bf16.msra.mxu1 %v10033_v50  ;;  %7891 = vmatprep.subr.bf16.mxu0 %v11069_v29 }
0x146f   :  { %7444 = vmatprep.subr.bf16.mxu1 %v9786_v43 }
0x1470   :  { %v10184_v52 = vpop.f32.mrf.mxu0 }
0x1471   :  { %11146 = vst [vmem:[#allocation98_spill] sm:$0xff] %v10184_v52  ;;  %5031 = vmatmul.mubr.bf16.vlgmr.msra.gmra.mxu1 %v4063_v44  ;;  %v10186_v20 = vpop.f32.mrf.mxu1  ;;  %7892 = vmatpush3.bf16.msra.mxu0 %v10043_v23  ;;  %v11169_v52 = vld [vmem:[#allocation81_spill] sm:$0xff] }
0x1472   :  { %11147 = vst [vmem:[#allocation84_spill] sm:$0xff] %v10186_v20  ;;  %7445 = vmatpush3.bf16.msra.mxu1 %v9788_v25  ;;  %5110 = vmatprep.mubr.bf16.mxu1 %v4067_v39  ;;  %v10190_v3 = vpop.f32.mrf.mxu0  ;;  %v11150_v39 = vld [vmem:[#allocation99_spill] sm:$0xff] }
0x1473   :  { %11148 = vst [vmem:[#allocation100_spill] sm:$0xff] %v10190_v3  ;;  %7893 = vmatprep.subr.bf16.mxu0 %v11069_v29  ;;  %v10193_v22 = vpop.f32.mrf.mxu1  ;;  %7446 = vmatprep.subr.bf16.mxu1 %v9791_v13  ;;  %v4011_v20 = vmax.f32 %v11150_v39, 0.0  ;;  %v11151_v13 = vld [vmem:[#allocation108_spill] sm:$0xff]  ;;  %v11174_v3 = vld [vmem:[#allocation89_spill] sm:$0xff] }
0x1474   :  { %11149 = vst [vmem:[#allocation124_spill] sm:$0xff] %v10193_v22  ;;  %v3745_v43 = vpop.f32.mrf.mxu0  ;;  %v11170_v22 = vld [vmem:[#allocation82_spill] sm:$0xff] }
0x1475   :  { %v3786_v11 = vpop.f32.mrf.mxu1  ;;  %7894 = vmatpush3.bf16.msra.mxu0 %v10053_v34  ;;  %v4015_v43 = vmax.f32 %v11151_v13, 0.0 }
0x1476   :  { %7447 = vmatpush3.bf16.msra.mxu1 %v9801_v35  ;;  %v3746_v44 = vpop.f32.mrf.mxu0  ;;  %7895 = vmatprep.subr.bf16.mxu0 %v11069_v29  ;;  %v4065_v35 = vpack.c.bf16 %v4011_v20, %v4011_v20 }
0x1477   :  { %7448 = vmatprep.subr.bf16.mxu1 %v9805_v62  ;;  %v3787_v25 = vpop.f32.mrf.mxu1  ;;  %v11152_v62 = vld [vmem:[#allocation77_spill] sm:$0xff]  ;;  %v4069_v11 = vpack.c.bf16 %v4015_v43, %v4015_v43 }
0x1479   :  { %7896 = vmatpush3.bf16.msra.mxu0 %v10063_v51 }
0x147a   :  { %7449 = vmatpush3.bf16.msra.mxu1 %v9809_v60  ;;  %7897 = vmatprep.subr.bf16.mxu0 %v11069_v29 }
0x147b   :  { %7450 = vmatprep.subr.bf16.mxu1 %v9812_v1 }
0x147d   :  { %7898 = vmatpush3.bf16.msra.mxu0 %v10069_v55 }
0x147e   :  { %7451 = vmatpush3.bf16.msra.mxu1 %v9815_v4  ;;  %7466 = vmatprep.subr.bf16.mxu0 %v11152_v62 }
0x147f   :  { %7452 = vmatprep.subr.bf16.mxu1 %v9818_v61 }
0x1480   :  { %v10210_v44 = vpop.f32.mrf.mxu0  ;;  %7900 = vmatmul.mubr.bf16.vlgmr.msra.gmra.mxu0 %v4065_v35 }
0x1481   :  { %11153 = vst [vmem:[#allocation99_spill] sm:$0xff] %v10210_v44  ;;  %v10212_v25 = vpop.f32.mrf.mxu1  ;;  %7467 = vmatpush3.bf16.msra.mxu0 %v9825_v56  ;;  %5150 = vmatprep.mubr.bf16.mxu0 %v4069_v11 }
0x1482   :  { %11154 = vst [vmem:[#allocation108_spill] sm:$0xff] %v10212_v25  ;;  %7453 = vmatpush3.bf16.msra.mxu1 %v9823_v57  ;;  %v10216_v39 = vpop.f32.mrf.mxu0  ;;  %7468 = vmatprep.subr.bf16.mxu0 %v9831_v59 }
0x1483   :  { %11155 = vst [vmem:[#allocation77_spill] sm:$0xff] %v10216_v39  ;;  %7454 = vmatprep.subr.bf16.mxu1 %v9829_v24  ;;  %v10219_v20 = vpop.f32.mrf.mxu1  ;;  %v11157_v39 = vld [vmem:[#allocation97_spill] sm:$0xff] }
0x1484   :  { %11156 = vst [vmem:[#allocation125_spill] sm:$0xff] %v10219_v20  ;;  %v3827_v13 = vpop.f32.mrf.mxu0  ;;  %v4012_v20 = vmax.f32 %v11157_v39, 0.0 }
0x1485   :  { %v3868_v43 = vpop.f32.mrf.mxu1  ;;  %7469 = vmatpush3.bf16.msra.mxu0 %v9843_v38  ;;  %v11158_v13 = vld [vmem:[#allocation109_spill] sm:$0xff] }
0x1486   :  { %7455 = vmatpush3.bf16.msra.mxu1 %v9841_v26  ;;  %v3828_v35 = vpop.f32.mrf.mxu0  ;;  %7470 = vmatprep.subr.bf16.mxu0 %v9850_v37  ;;  %v4017_v43 = vmax.f32 %v11158_v13, 0.0 }
0x1487   :  { %7456 = vmatprep.subr.bf16.mxu1 %v9848_v9  ;;  %v3869_v11 = vpop.f32.mrf.mxu1  ;;  %v4066_v35 = vpack.c.bf16 %v4012_v20, %v4012_v20 }
0x1488   :  { %v4071_v11 = vpack.c.bf16 %v4017_v43, %v4017_v43 }
0x1489   :  { %7471 = vmatpush3.bf16.msra.mxu0 %v9857_v33 }
0x148a   :  { %7457 = vmatpush3.bf16.msra.mxu1 %v9855_v12  ;;  %7472 = vmatprep.subr.bf16.mxu0 %v9863_v40 }
0x148b   :  { %7458 = vmatprep.subr.bf16.mxu1 %v9861_v42 }
0x148d   :  { %7473 = vmatpush3.bf16.msra.mxu0 %v9869_v2 }
0x148e   :  { %7459 = vmatpush3.bf16.msra.mxu1 %v9867_v0  ;;  %7474 = vmatprep.subr.bf16.mxu0 %v9874_v28 }
0x148f   :  { %7488 = vmatprep.subr.bf16.mxu1 %v9876_v41 }
0x1490   :  { %v10236_v44 = vpop.f32.mrf.mxu0 }
0x1491   :  { %11159 = vst [vmem:[#allocation97_spill] sm:$0xff] %v10236_v44  ;;  %5111 = vmatmul.mubr.bf16.vlgmr.msra.gmra.mxu1 %v4066_v35  ;;  %v10238_v39 = vpop.f32.mrf.mxu1  ;;  %7475 = vmatpush3.bf16.msra.mxu0 %v9880_v8 }
0x1492   :  { %11160 = vst [vmem:[#allocation109_spill] sm:$0xff] %v10238_v39  ;;  %7489 = vmatpush3.bf16.msra.mxu1 %v9882_v7  ;;  %5190 = vmatprep.mubr.bf16.mxu1 %v4071_v11  ;;  %v10242_v13 = vpop.f32.mrf.mxu0  ;;  %v11166_v39 = vld [vmem:[#allocation79_spill] sm:$0xff] }
0x1493   :  { %11161 = vst [vmem:[#allocation126_spill] sm:$0xff] %v10242_v13  ;;  %7476 = vmatprep.subr.bf16.mxu0 %v9886_v30  ;;  %v10245_v20 = vpop.f32.mrf.mxu1  ;;  %7490 = vmatprep.subr.bf16.mxu1 %v9888_v31  ;;  %v11163_v13 = vld [vmem:[#allocation106_spill] sm:$0xff] }
0x1494   :  { %11162 = vst [vmem:[#allocation127_spill] sm:$0xff] %v10245_v20  ;;  %v3909_v25 = vpop.f32.mrf.mxu0  ;;  %v4014_v20 = vmax.f32 %v11163_v13, 0.0  ;;  %v11165_v13 = vld [vmem:[#allocation78_spill] sm:$0xff] }
0x1495   :  { %v3950_v43 = vpop.f32.mrf.mxu1  ;;  %7477 = vmatpush3.bf16.msra.mxu0 %v9896_v10  ;;  %v4019_v25 = vmax.f32 %v10085_v53, 0.0  ;;  %v11168_v53 = vld [vmem:[#allocation80_spill] sm:$0xff] }
0x1496   :  { %7491 = vmatpush3.bf16.msra.mxu1 %v9898_v5  ;;  %v3910_v35 = vpop.f32.mrf.mxu0  ;;  %7478 = vmatprep.subr.bf16.mxu0 %v9905_v63  ;;  %v4068_v43 = vpack.c.bf16 %v4014_v20, %v4014_v20 }
0x1497   :  { %7492 = vmatprep.subr.bf16.mxu1 %v9907_v58  ;;  %v3951_v11 = vpop.f32.mrf.mxu1  ;;  %v4073_v35 = vpack.c.bf16 %v4019_v25, %v4019_v25 }
0x1499   :  { %7479 = vmatpush3.bf16.msra.mxu0 %v9912_v47 }
0x149a   :  { %7493 = vmatpush3.bf16.msra.mxu1 %v9914_v36  ;;  %7480 = vmatprep.subr.bf16.mxu0 %v9918_v48 }
0x149b   :  { %7494 = vmatprep.subr.bf16.mxu1 %v9920_v49 }
0x149d   :  { %7481 = vmatpush3.bf16.msra.mxu0 %v9924_v15 }
0x149e   :  { %7495 = vmatpush3.bf16.msra.mxu1 %v9926_v46  ;;  %7510 = vmatprep.subr.bf16.mxu0 %v9933_v17 }
0x149f   :  { %7496 = vmatprep.subr.bf16.mxu1 %v9931_v16 }
0x14a0   :  { %v10262_v11 = vpop.f32.mrf.mxu0  ;;  %5151 = vmatmul.mubr.bf16.vlgmr.msra.gmra.mxu0 %v4068_v43  ;;  %v11171_v43 = vld [vmem:[#allocation87_spill] sm:$0xff] }
0x14a1   :  { %11164 = vst [vmem:[#allocation106_spill] sm:$0xff] %v10262_v11  ;;  %7511 = vmatpush3.bf16.msra.mxu0 %v11166_v39  ;;  %5230 = vmatprep.mubr.bf16.mxu0 %v4073_v35  ;;  %v11172_v11 = vld [vmem:[#allocation88_spill] sm:$0xff]  ;;  %v11173_v35 = vld [vmem:[#allocation107_spill] sm:$0xff] }
0x14a2   :  { %7497 = vmatpush3.bf16.msra.mxu1 %v11165_v13  ;;  %v10266_v44 = vpop.f32.mrf.mxu0  ;;  %7512 = vmatprep.subr.bf16.mxu0 %v9946_v21 }
0x14a3   :  { %11167 = vst [vmem:[#allocation78_spill] sm:$0xff] %v10266_v44  ;;  %7498 = vmatprep.subr.bf16.mxu1 %v11168_v53  ;;  %v4016_v44 = vmax.f32 %v11173_v35, 0.0  ;;  %v11175_v53 = vld [vmem:[#allocation90_spill] sm:$0xff] }
0x14a4   :  { %v3991_v20 = vpop.f32.mrf.mxu0 }
0x14a5   :  { %7513 = vmatpush3.bf16.msra.mxu0 %v11170_v22  ;;  %v11176_v20 = vld [vmem:[#allocation92_spill] sm:$0xff]  ;;  %v4070_v22 = vpack.c.bf16 %v4016_v44, %v4016_v44 }
0x14a6   :  { %7499 = vmatpush3.bf16.msra.mxu1 %v11169_v52  ;;  %v3992_v25 = vpop.f32.mrf.mxu0  ;;  %7514 = vmatprep.subr.bf16.mxu0 %v11123_v6 }
0x14a7   :  { %7500 = vmatprep.subr.bf16.mxu1 %v9963_v19  ;;  %v11177_v25 = vld [vmem:[#allocation93_spill] sm:$0xff]  ;;  %v11180_v19 = vld [vmem:[#allocation96_spill] sm:$0xff] }
0x14a9   :  { %7515 = vmatpush3.bf16.msra.mxu0 %v11172_v11  ;;  %v11179_v11 = vld [vmem:[#allocation95_spill] sm:$0xff] }
0x14aa   :  { %7501 = vmatpush3.bf16.msra.mxu1 %v11171_v43  ;;  %7516 = vmatprep.subr.bf16.mxu0 %v11175_v53  ;;  %v11178_v43 = vld [vmem:[#allocation94_spill] sm:$0xff] }
0x14ab   :  { %7502 = vmatprep.subr.bf16.mxu1 %v11174_v3 }
0x14ad   :  { %7517 = vmatpush3.bf16.msra.mxu0 %v11176_v20 }
0x14ae   :  { %7503 = vmatpush3.bf16.msra.mxu1 %v11129_v32  ;;  %7518 = vmatprep.subr.bf16.mxu0 %v11177_v25 }
0x14af   :  { %7903 = vmatprep.subr.bf16.mxu1 %v11069_v29 }
0x14b1   :  { %v7266_v6 = vpop.f32.mrf.mxu1  ;;  %5191 = vmatmul.mubr.bf16.vlgmr.msra.gmra.mxu1 %v4070_v22  ;;  %7519 = vmatpush3.bf16.msra.mxu0 %v11178_v43  ;;  %v11181_v22 = vld [vmem:[#allocation101_spill] sm:$0xff] }
0x14b2   :  { %7904 = vmatpush3.bf16.msra.mxu1 %v11179_v11  ;;  %7520 = vmatprep.subr.bf16.mxu0 %v11180_v19  ;;  %v11182_v11 = vld [vmem:[#allocation102_spill] sm:$0xff]  ;;  %v11183_v19 = vld [vmem:[#allocation111_spill] sm:$0xff] }
0x14b3   :  { %v7267_v35 = vpop.f32.mrf.mxu1  ;;  %7905 = vmatprep.subr.bf16.mxu1 %v11069_v29  ;;  %7919 = vmatprep.mubr.msk.bf16.mxu1 %vm8723_vm0, %v11069_v29  ;;  %v4018_v43 = vmax.f32 %v11183_v19, 0.0  ;;  %v10306_v19 = vld [vmem:[#allocation3 + $0x38] sm:$0xff]  }
0x14b4   :  { %v7268_v53 = vadd.f32 %v7267_v35, %v7266_v6  ;;  %v11184_v6 = vld [vmem:[#allocation114_spill] sm:$0xff] }
0x14b5   :  { %v7269_v44 = vpop.f32.mrf.mxu1  ;;  %7521 = vmatpush3.bf16.msra.mxu0 %v10007_v27  ;;  %v4022_v35 = vmax.f32 %v11184_v6, 0.0 }
0x14b6   :  { %7906 = vmatpush3.bf16.msra.mxu1 %v11139_v14  ;;  %7522 = vmatprep.subr.bf16.mxu0 %v11181_v22  ;;  %v10302_v44 = vld [vmem:[#allocation3 + $0x78] sm:$0xff]  }
0x14b7   :  { %v7270_v25 = vpop.f32.mrf.mxu1  ;;  %7907 = vmatprep.subr.bf16.mxu1 %v11069_v29  ;;  %11185 = vst [vmem:[#allocation79_spill] sm:$0xff] %v10302_v44 }
0x14b8   :  { %v4072_v25 = vpack.c.bf16 %v4018_v43, %v4018_v43 }
0x14b9   :  { %7523 = vmatpush3.bf16.msra.mxu0 %v11182_v11 }
0x14ba   :  { %7908 = vmatpush3.bf16.msra.mxu1 %v11142_v18  ;;  %7524 = vmatprep.subr.bf16.mxu0 %v10029_v54  ;;  %v4076_v18 = vpack.c.bf16 %v4022_v35, %v4022_v35  ;;  %v10314_v35 = vld [vmem:[#allocation3 + $0x30] sm:$0xff]  }
0x14bb   :  { %7909 = vmatprep.subr.bf16.mxu1 %v11069_v29 }
0x14bd   :  { %7525 = vmatpush3.bf16.msra.mxu0 %v10033_v50 }
0x14be   :  { %7910 = vmatpush3.bf16.msra.mxu1 %v11145_v45  ;;  %7541 = vmatprep.subr.bf16.mxu0 %v10302_v44  ;;  %v10310_v45 = vld [vmem:[#allocation3 + $0x70] sm:$0xff]  }
0x14bf   :  { %7911 = vmatprep.subr.bf16.mxu1 %v11069_v29 }
0x14c0   :  { %v7288_v11 = vpop.f32.mrf.mxu0  ;;  %5231 = vmatmul.mubr.bf16.vlgmr.msra.gmra.mxu0 %v4072_v25 }
0x14c1   :  { %7542 = vmatpush3.bf16.msra.mxu0 %v10306_v19  ;;  %5310 = vmatprep.mubr.bf16.mxu0 %v4076_v18  ;;  %v10318_v18 = vld [vmem:[#allocation3 + $0x68] sm:$0xff]  }
0x14c2   :  { %7912 = vmatpush3.bf16.msra.mxu1 %v10043_v23  ;;  %v7289_v6 = vpop.f32.mrf.mxu0  ;;  %7543 = vmatprep.subr.bf16.mxu0 %v10310_v45 }
0x14c3   :  { %7913 = vmatprep.subr.bf16.mxu1 %v11069_v29  ;;  %v7290_v43 = vadd.f32 %v7289_v6, %v7288_v11  ;;  %v11186_v11 = vld [vmem:[#allocation112_spill] sm:$0xff] }
0x14c4   :  { %v7291_v50 = vpop.f32.mrf.mxu0 }
0x14c5   :  { %v4753_v44 = vadd.f32 %v7290_v43, %v7268_v53  ;;  %7544 = vmatpush3.bf16.msra.mxu0 %v10314_v35  ;;  %v4020_v50 = vmax.f32 %v11186_v11, 0.0  ;;  %v11187_v53 = vld [vmem:[#allocation115_spill] sm:$0xff] }
0x14c6   :  { %7914 = vmatpush3.bf16.msra.mxu1 %v10053_v34  ;;  %v7292_v25 = vpop.f32.mrf.mxu0  ;;  %7545 = vmatprep.subr.bf16.mxu0 %v10318_v18  ;;  %v4024_v6 = vmax.f32 %v11187_v53, 0.0  ;;  %v11206_v53 = vld [vmem:[#allocation103_spill] sm:$0xff] }
0x14c7   :  { %7915 = vmatprep.subr.bf16.mxu1 %v11069_v29  ;;  %v4074_v43 = vpack.c.bf16 %v4020_v50, %v4020_v50  ;;  %v11205_v50 = vld [vmem:[#allocation102_spill] sm:$0xff] }
0x14c8   :  { %v4078_v25 = vpack.c.bf16 %v4024_v6, %v4024_v6  ;;  %v11207_v6 = vld [vmem:[#allocation120_spill] sm:$0xff] }
0x14c9   :  { %7546 = vmatpush3.bf16.msra.mxu0 %v9809_v60 }
0x14ca   :  { %7916 = vmatpush3.bf16.msra.mxu1 %v10063_v51  ;;  %7547 = vmatprep.subr.bf16.mxu0 %v9812_v1 }
0x14cb   :  { %7917 = vmatprep.subr.bf16.mxu1 %v11069_v29 }
0x14cd   :  { %7548 = vmatpush3.bf16.msra.mxu0 %v9815_v4 }
0x14ce   :  { %7918 = vmatpush3.bf16.msra.mxu1 %v10069_v55  ;;  %7549 = vmatprep.subr.bf16.mxu0 %v9818_v61 }
0x14cf   :  { %7563 = vmatprep.subr.bf16.mxu1 %v11152_v62  ;;  %v11202_v62 = vld [vmem:[#allocation94_spill] sm:$0xff] }
0x14d1   :  { %v7310_v51 = vpop.f32.mrf.mxu1  ;;  %7920 = vmatmul.mubr.bf16.vlgmr.msra.gmra.mxu1 %v4074_v43  ;;  %7550 = vmatpush3.bf16.msra.mxu0 %v9823_v57  ;;  %v11188_v57 = vld [vmem:[#allocation113_spill] sm:$0xff]  ;;  %v4027_v43 = vmax.f32 %v11207_v6, 0.0 }
0x14d2   :  { %7564 = vmatpush3.bf16.msra.mxu1 %v9825_v56  ;;  %5350 = vmatprep.mubr.bf16.mxu1 %v4078_v25  ;;  %v4021_v56 = vmax.f32 %v11188_v57, 0.0  ;;  %v11208_v25 = vld [vmem:[#allocation122_spill] sm:$0xff] }
0x14d3   :  { %v7311_v60 = vpop.f32.mrf.mxu1  ;;  %7551 = vmatprep.subr.bf16.mxu0 %v9829_v24  ;;  %7565 = vmatprep.subr.bf16.mxu1 %v9831_v59  ;;  %v11189_v24 = vld [vmem:[#allocation118_spill] sm:$0xff] }
0x14d4   :  { %v7312_v1 = vadd.f32 %v7311_v60, %v7310_v51  ;;  %v4026_v59 = vmax.f32 %v11189_v24, 0.0  ;;  %v11201_v51 = vld [vmem:[#allocation93_spill] sm:$0xff]  ;;  %v4031_v60 = vmax.f32 %v11208_v25, 0.0 }
0x14d5   :  { %v7313_v4 = vpop.f32.mrf.mxu1  ;;  %7552 = vmatpush3.bf16.msra.mxu0 %v9841_v26  ;;  %v4075_v26 = vpack.c.bf16 %v4021_v56, %v4021_v56 }
0x14d6   :  { %v4793_v11 = vadd.f32 %v7312_v1, %v4753_v44  ;;  %7566 = vmatpush3.bf16.msra.mxu1 %v9843_v38  ;;  %7553 = vmatprep.subr.bf16.mxu0 %v9848_v9  ;;  %v4080_v38 = vpack.c.bf16 %v4026_v59, %v4026_v59  ;;  %v11204_v44 = vld [vmem:[#allocation96_spill] sm:$0xff]  ;;  %v4081_v1 = vpack.c.bf16 %v4027_v43, %v4027_v43  ;;  %v10415_v59 = vld [vmem:[#allocation3 + $0x28] sm:$0xff]  }
0x14d7   :  { %v7314_v61 = vpop.f32.mrf.mxu1  ;;  %7567 = vmatprep.subr.bf16.mxu1 %v9850_v37  ;;  %v4085_v4 = vpack.c.bf16 %v4031_v60, %v4031_v60  ;;  %v10490_v43 = vld [vmem:[#allocation3 + $0xd0] sm:$0xff]  }
0x14d8   :  { %v10493_v60 = vld [vmem:[#allocation3 + $0x170] sm:$0xff]  }
0x14d9   :  { %7554 = vmatpush3.bf16.msra.mxu0 %v9855_v12 }
0x14da   :  { %7568 = vmatpush3.bf16.msra.mxu1 %v9857_v33  ;;  %7555 = vmatprep.subr.bf16.mxu0 %v9861_v42 }
0x14db   :  { %7569 = vmatprep.subr.bf16.mxu1 %v9863_v40 }
0x14dd   :  { %7556 = vmatpush3.bf16.msra.mxu0 %v9867_v0  ;;  %v11190_v0 = vld [vmem:[#allocation116_spill] sm:$0xff] }
0x14de   :  { %7570 = vmatpush3.bf16.msra.mxu1 %v9869_v2  ;;  %7585 = vmatprep.subr.bf16.mxu0 %v9876_v41  ;;  %v4023_v2 = vmax.f32 %v11190_v0, 0.0 }
0x14df   :  { %7571 = vmatprep.subr.bf16.mxu1 %v9874_v28  ;;  %v11191_v28 = vld [vmem:[#allocation119_spill] sm:$0xff] }
0x14e0   :  { %v7332_v9 = vpop.f32.mrf.mxu0  ;;  %5311 = vmatmul.mubr.bf16.vlgmr.msra.gmra.mxu0 %v4075_v26  ;;  %v4028_v41 = vmax.f32 %v11191_v28, 0.0  ;;  %v11213_v26 = vld [vmem:[#allocation121_spill] sm:$0xff] }
0x14e1   :  { %7586 = vmatpush3.bf16.msra.mxu0 %v9882_v7  ;;  %5390 = vmatprep.mubr.bf16.mxu0 %v4080_v38  ;;  %v4029_v38 = vmax.f32 %v11213_v26, 0.0  ;;  %v10434_v28 = vld [vmem:[#allocation3 + $0x18] sm:$0xff]   ;;  %v10515_v26 = vld [vmem:[#allocation3 + $0xc0] sm:$0xff]  }
0x14e2   :  { %7572 = vmatpush3.bf16.msra.mxu1 %v9880_v8  ;;  %v7333_v37 = vpop.f32.mrf.mxu0  ;;  %7587 = vmatprep.subr.bf16.mxu0 %v9888_v31  ;;  %v4077_v8 = vpack.c.bf16 %v4023_v2, %v4023_v2 }
0x14e3   :  { %7573 = vmatprep.subr.bf16.mxu1 %v9886_v30  ;;  %v7334_v12 = vadd.f32 %v7333_v37, %v7332_v9  ;;  %v10420_v9 = vld [vmem:[#allocation3 + $0x60] sm:$0xff]  }
0x14e4   :  { %v7335_v33 = vpop.f32.mrf.mxu0 }
0x14e5   :  { %7588 = vmatpush3.bf16.msra.mxu0 %v9898_v5  ;;  %v4833_v42 = vadd.f32 %v7334_v12, %v4793_v11  ;;  %v10425_v12 = vld [vmem:[#allocation3 + $0x20] sm:$0xff]   ;;  %v4083_v33 = vpack.c.bf16 %v4029_v38, %v4029_v38 }
0x14e6   :  { %7574 = vmatpush3.bf16.msra.mxu1 %v9896_v10  ;;  %v7336_v40 = vpop.f32.mrf.mxu0  ;;  %7589 = vmatprep.subr.bf16.mxu0 %v9907_v58  ;;  %v11194_v10 = vld [vmem:[#allocation82_spill] sm:$0xff] }
0x14e7   :  { %7575 = vmatprep.subr.bf16.mxu1 %v9905_v63  ;;  %v11195_v63 = vld [vmem:[#allocation85_spill] sm:$0xff]  ;;  %v11196_v58 = vld [vmem:[#allocation86_spill] sm:$0xff] }
0x14e8   :  { %v10431_v40 = vld [vmem:[#allocation3 + $0xf8] sm:$0xff]   ;;  %v10518_v38 = vld [vmem:[#allocation3 + $0x160] sm:$0xff]  }
0x14e9   :  { %7590 = vmatpush3.bf16.msra.mxu0 %v9914_v36  ;;  %v11197_v36 = vld [vmem:[#allocation87_spill] sm:$0xff] }
0x14ea   :  { %7576 = vmatpush3.bf16.msra.mxu1 %v9912_v47  ;;  %7591 = vmatprep.subr.bf16.mxu0 %v9920_v49  ;;  %v4082_v47 = vpack.c.bf16 %v4028_v41, %v4028_v41  ;;  %v11193_v49 = vld [vmem:[#allocation80_spill] sm:$0xff] }
0x14eb   :  { %7577 = vmatprep.subr.bf16.mxu1 %v9918_v48 }
0x14ed   :  { %7592 = vmatpush3.bf16.msra.mxu0 %v9926_v46  ;;  %v11199_v46 = vld [vmem:[#allocation117_spill] sm:$0xff] }
0x14ee   :  { %7578 = vmatpush3.bf16.msra.mxu1 %v9924_v15  ;;  %7593 = vmatprep.subr.bf16.mxu0 %v9931_v16  ;;  %v11198_v15 = vld [vmem:[#allocation88_spill] sm:$0xff]  ;;  %v4025_v16 = vmax.f32 %v11199_v46, 0.0  ;;  %v11215_v46 = vld [vmem:[#allocation83_spill] sm:$0xff] }
0x14ef   :  { %7607 = vmatprep.subr.bf16.mxu1 %v9933_v17  ;;  %v11200_v17 = vld [vmem:[#allocation90_spill] sm:$0xff] }
0x14f1   :  { %v4872_v7 = vpop.f32.mrf.mxu1  ;;  %5351 = vmatmul.mubr.bf16.vlgmr.msra.gmra.mxu1 %v4077_v8  ;;  %7594 = vmatpush3.bf16.msra.mxu0 %v11165_v13  ;;  %v10440_v8 = vld [vmem:[#allocation3 + $0x50] sm:$0xff]  }
0x14f2   :  { %v10367_v30 = vadd.f32 %v4872_v7, %v4833_v42  ;;  %7608 = vmatpush3.bf16.msra.mxu1 %v11166_v39  ;;  %5430 = vmatprep.mubr.bf16.mxu1 %v4082_v47  ;;  %v11203_v39 = vld [vmem:[#allocation95_spill] sm:$0xff]  ;;  %v10428_v42 = vld [vmem:[#allocation3 + $0x58] sm:$0xff]   ;;  %v10443_v7 = vld [vmem:[#allocation3 + $0xf0] sm:$0xff]  }
0x14f3   :  { %v7881_v48 = vpop.f32.mrf.mxu1  ;;  %7595 = vmatprep.subr.bf16.mxu0 %v11193_v49  ;;  %7609 = vmatprep.subr.bf16.mxu1 %v9946_v21  ;;  %v4079_v21 = vpack.c.bf16 %v4025_v16, %v4025_v16  ;;  %v4030_v16 = vmax.f32 %v11215_v46, 0.0  ;;  %v10536_v46 = vld [vmem:[#allocation3 + $0x118] sm:$0xff]  }
0x14f4   :  { %11192 = vst [vmem:[#allocation81_spill] sm:$0xff] %v10367_v30 }
0x14f5   :  { %v4875_v31 = vpop.f32.mrf.mxu1  ;;  %7596 = vmatpush3.bf16.msra.mxu0 %v11169_v52 }
0x14f6   :  { %7610 = vmatpush3.bf16.msra.mxu1 %v11194_v10  ;;  %7597 = vmatprep.subr.bf16.mxu0 %v11195_v63  ;;  %v10446_v31 = vld [vmem:[#allocation3 + $0x10] sm:$0xff]   ;;  %v10452_v63 = vld [vmem:[#allocation3 + $0x48] sm:$0xff]  }
0x14f7   :  { %v7882_v5 = vpop.f32.mrf.mxu1  ;;  %7611 = vmatprep.subr.bf16.mxu1 %v11196_v58  ;;  %v10449_v10 = vld [vmem:[#allocation3 + $0xb0] sm:$0xff]   ;;  %v10455_v58 = vld [vmem:[#allocation3 + $0xe8] sm:$0xff]  }
0x14f9   :  { %7598 = vmatpush3.bf16.msra.mxu0 %v11197_v36  ;;  %v10458_v36 = vld [vmem:[#allocation3 + $0x8] sm:$0xff]  }
0x14fa   :  { %7612 = vmatpush3.bf16.msra.mxu1 %v11198_v15  ;;  %7599 = vmatprep.subr.bf16.mxu0 %v11174_v3  ;;  %v10461_v15 = vld [vmem:[#allocation3 + $0xa8] sm:$0xff]  }
0x14fb   :  { %7613 = vmatprep.subr.bf16.mxu1 %v11200_v17  ;;  %v10465_v17 = vld [vmem:[#allocation3 + $0x40] sm:$0xff]  }
0x14fd   :  { %7600 = vmatpush3.bf16.msra.mxu0 %v11129_v32 }
0x14fe   :  { %7614 = vmatpush3.bf16.msra.mxu1 %v11176_v20  ;;  %7923 = vmatprep.subr.bf16.mxu0 %v11069_v29 }
0x14ff   :  { %7615 = vmatprep.subr.bf16.mxu1 %v11201_v51  ;;  %v11216_v51 = vld [vmem:[#allocation100_spill] sm:$0xff] }
0x1500   :  { %v7363_v52 = vpop.f32.mrf.mxu0  ;;  %5391 = vmatmul.mubr.bf16.vlgmr.msra.gmra.mxu0 %v4079_v21  ;;  %v10468_v21 = vld [vmem:[#allocation3 + $0xe0] sm:$0xff]  }
0x1501   :  { %7924 = vmatpush3.bf16.msra.mxu0 %v11203_v39  ;;  %7939 = vmatprep.mubr.msk.bf16.mxu0 %vm8723_vm0, %v11069_v29  ;;  %v10475_v39 = vld [vmem:[#allocation3 + $0xa0] sm:$0xff]  }
0x1502   :  { %7616 = vmatpush3.bf16.msra.mxu1 %v11202_v62  ;;  %v7364_v13 = vpop.f32.mrf.mxu0  ;;  %7925 = vmatprep.subr.bf16.mxu0 %v11069_v29  ;;  %v10472_v62 = vld [vmem:[#allocation3] sm:$0xff]  }
0x1503   :  { %7617 = vmatprep.subr.bf16.mxu1 %v11204_v44  ;;  %v7365_v3 = vadd.f32 %v7364_v13, %v7363_v52  ;;  %v4035_v52 = vmax.f32 %v11216_v51, 0.0  ;;  %v4084_v13 = vpack.c.bf16 %v4030_v16, %v4030_v16  ;;  %v10478_v44 = vld [vmem:[#allocation3 + $0xd8] sm:$0xff]  }
0x1504   :  { %v7366_v32 = vpop.f32.mrf.mxu0  ;;  %v10539_v16 = vld [vmem:[#allocation3 + $0x1b8] sm:$0xff]  }
0x1505   :  { %7926 = vmatpush3.bf16.msra.mxu0 %v11139_v14  ;;  %v11210_v14 = vld [vmem:[#allocation105_spill] sm:$0xff]  ;;  %v4089_v32 = vpack.c.bf16 %v4035_v52, %v4035_v52  ;;  %v10542_v52 = vld [vmem:[#allocation3 + $0x150] sm:$0xff]  }
0x1506   :  { %7618 = vmatpush3.bf16.msra.mxu1 %v10007_v27  ;;  %v7367_v20 = vpop.f32.mrf.mxu0  ;;  %7927 = vmatprep.subr.bf16.mxu0 %v11069_v29  ;;  %v11209_v27 = vld [vmem:[#allocation104_spill] sm:$0xff] }
0x1507   :  { %7619 = vmatprep.subr.bf16.mxu1 %v11181_v22  ;;  %v11211_v22 = vld [vmem:[#allocation79_spill] sm:$0xff] }
0x1509   :  { %7928 = vmatpush3.bf16.msra.mxu0 %v11206_v53  ;;  %v10487_v53 = vld [vmem:[#allocation3 + $0x138] sm:$0xff]  }
0x150a   :  { %7620 = vmatpush3.bf16.msra.mxu1 %v11205_v50  ;;  %7929 = vmatprep.subr.bf16.mxu0 %v11069_v29  ;;  %v10484_v50 = vld [vmem:[#allocation3 + $0x98] sm:$0xff]  }
0x150b   :  { %7621 = vmatprep.subr.bf16.mxu1 %v10029_v54 }
0x150d   :  { %7930 = vmatpush3.bf16.msra.mxu0 %v11210_v14  ;;  %v10496_v14 = vld [vmem:[#allocation3 + $0x90] sm:$0xff]  }
0x150e   :  { %7622 = vmatpush3.bf16.msra.mxu1 %v11209_v27  ;;  %7931 = vmatprep.subr.bf16.mxu0 %v11069_v29 }
0x150f   :  { %7638 = vmatprep.subr.bf16.mxu1 %v11211_v22 }
0x1511   :  { %v7385_v11 = vpop.f32.mrf.mxu1  ;;  %5431 = vmatmul.mubr.bf16.vlgmr.msra.gmra.mxu1 %v4081_v1  ;;  %7932 = vmatpush3.bf16.msra.mxu0 %v10043_v23  ;;  %v11212_v23 = vld [vmem:[#allocation110_spill] sm:$0xff]  ;;  %v10499_v1 = vld [vmem:[#allocation3 + $0x130] sm:$0xff]  }
0x1512   :  { %7639 = vmatpush3.bf16.msra.mxu1 %v10306_v19  ;;  %5510 = vmatprep.mubr.bf16.mxu1 %v4085_v4 }
0x1513   :  { %v7386_v54 = vpop.f32.mrf.mxu1  ;;  %7933 = vmatprep.subr.bf16.mxu0 %v11069_v29  ;;  %7640 = vmatprep.subr.bf16.mxu1 %v10310_v45 }
0x1514   :  { %v7387_v61 = vadd.f32 %v7386_v54, %v7385_v11  ;;  %v10502_v54 = vld [vmem:[#allocation3 + $0xc8] sm:$0xff]  }
0x1515   :  { %v7388_v57 = vpop.f32.mrf.mxu1  ;;  %7934 = vmatpush3.bf16.msra.mxu0 %v10053_v34  ;;  %v11214_v34 = vld [vmem:[#allocation123_spill] sm:$0xff] }
0x1516   :  { %v4953_v56 = vadd.f32 %v7387_v61, %v7365_v3  ;;  %7641 = vmatpush3.bf16.msra.mxu1 %v10314_v35  ;;  %7935 = vmatprep.subr.bf16.mxu0 %v11069_v29  ;;  %v4033_v37 = vmax.f32 %v11214_v34, 0.0  ;;  %v10481_v3 = vld [vmem:[#allocation3 + $0x178] sm:$0xff]   ;;  %v10505_v61 = vld [vmem:[#allocation3 + $0x168] sm:$0xff]   ;;  %v11218_v34 = vld [vmem:[#allocation124_spill] sm:$0xff] }
0x1517   :  { %v7389_v24 = vpop.f32.mrf.mxu1  ;;  %7642 = vmatprep.subr.bf16.mxu1 %v10318_v18  ;;  %v10508_v57 = vld [vmem:[#allocation3 + $0x88] sm:$0xff]  }
0x1518   :  { %v4087_v0 = vpack.c.bf16 %v4033_v37, %v4033_v37  ;;  %v11217_v24 = vld [vmem:[#allocation91_spill] sm:$0xff]  ;;  %v4037_v37 = vmax.f32 %v11218_v34, 0.0  ;;  %v11220_v34 = vld [vmem:[#allocation98_spill] sm:$0xff] }
0x1519   :  { %7936 = vmatpush3.bf16.msra.mxu0 %v11212_v23  ;;  %v4032_v23 = vmax.f32 %v11217_v24, 0.0  ;;  %v10562_v24 = vld [vmem:[#allocation3 + $0x108] sm:$0xff]  }
0x151a   :  { %7643 = vmatpush3.bf16.msra.mxu1 %v10415_v59  ;;  %7937 = vmatprep.subr.bf16.mxu0 %v11069_v29 }
0x151b   :  { %7644 = vmatprep.subr.bf16.mxu1 %v10420_v9 }
0x151d   :  { %7938 = vmatpush3.bf16.msra.mxu0 %v10069_v55  ;;  %v10437_v55 = vld [vmem:[#allocation3 + $0xb8] sm:$0xff]  }
0x151e   :  { %7645 = vmatpush3.bf16.msra.mxu1 %v10425_v12  ;;  %7660 = vmatprep.subr.bf16.mxu0 %v10431_v40 }
0x151f   :  { %7646 = vmatprep.subr.bf16.mxu1 %v10428_v42 }
0x1520   :  { %v7407_v2 = vpop.f32.mrf.mxu0  ;;  %7940 = vmatmul.mubr.bf16.vlgmr.msra.gmra.mxu0 %v4083_v33  ;;  %v10522_v33 = vld [vmem:[#allocation3 + $0x80] sm:$0xff]  }
0x1521   :  { %7661 = vmatpush3.bf16.msra.mxu0 %v10437_v55  ;;  %5550 = vmatprep.mubr.bf16.mxu0 %v4087_v0  ;;  %v10525_v0 = vld [vmem:[#allocation3 + $0x120] sm:$0xff]  }
0x1522   :  { %7647 = vmatpush3.bf16.msra.mxu1 %v10434_v28  ;;  %v7408_v41 = vpop.f32.mrf.mxu0  ;;  %7662 = vmatprep.subr.bf16.mxu0 %v10443_v7 }
0x1523   :  { %7648 = vmatprep.subr.bf16.mxu1 %v10440_v8  ;;  %v7409_v47 = vadd.f32 %v7408_v41, %v7407_v2  ;;  %v4086_v2 = vpack.c.bf16 %v4032_v23, %v4032_v23  ;;  %v10528_v41 = vld [vmem:[#allocation3 + $0x158] sm:$0xff]   ;;  %v10565_v23 = vld [vmem:[#allocation3 + $0x1a8] sm:$0xff]  }
0x1524   :  { %v7410_v48 = vpop.f32.mrf.mxu0 }
0x1525   :  { %v4993_v49 = vadd.f32 %v7409_v47, %v4953_v56  ;;  %7663 = vmatpush3.bf16.msra.mxu0 %v10449_v10  ;;  %v10511_v56 = vld [vmem:[#allocation3 + $0x128] sm:$0xff]   ;;  %v10531_v47 = vld [vmem:[#allocation3 + $0x1f8] sm:$0xff]   ;;  %v4091_v48 = vpack.c.bf16 %v4037_v37, %v4037_v37  ;;  %v4034_v37 = vmax.f32 %v11220_v34, 0.0 }
0x1526   :  { %7649 = vmatpush3.bf16.msra.mxu1 %v10446_v31  ;;  %v7411_v5 = vpop.f32.mrf.mxu0  ;;  %7664 = vmatprep.subr.bf16.mxu0 %v10455_v58 }
0x1527   :  { %7650 = vmatprep.subr.bf16.mxu1 %v10452_v63 }
0x1529   :  { %7665 = vmatpush3.bf16.msra.mxu0 %v10461_v15 }
0x152a   :  { %7651 = vmatpush3.bf16.msra.mxu1 %v10458_v36  ;;  %7666 = vmatprep.subr.bf16.mxu0 %v10468_v21 }
0x152b   :  { %7652 = vmatprep.subr.bf16.mxu1 %v10465_v17 }
0x152d   :  { %7667 = vmatpush3.bf16.msra.mxu0 %v10475_v39 }
0x152e   :  { %7653 = vmatpush3.bf16.msra.mxu1 %v10472_v62  ;;  %7668 = vmatprep.subr.bf16.mxu0 %v10478_v44 }
0x152f   :  { %7682 = vmatprep.subr.bf16.mxu1 %v10481_v3 }
0x1531   :  { %v7429_v20 = vpop.f32.mrf.mxu1  ;;  %5511 = vmatmul.mubr.bf16.vlgmr.msra.gmra.mxu1 %v4084_v13  ;;  %7669 = vmatpush3.bf16.msra.mxu0 %v10484_v50  ;;  %v10587_v13 = vld [vmem:[#allocation3 + $0x198] sm:$0xff]  }
0x1532   :  { %7683 = vmatpush3.bf16.msra.mxu1 %v10487_v53  ;;  %5590 = vmatprep.mubr.bf16.mxu1 %v4089_v32  ;;  %v10547_v32 = vld [vmem:[#allocation3 + $0x1f0] sm:$0xff]   ;;  %11226 = vst [vmem:[#allocation112_spill] sm:$0xff] %v10587_v13 }
0x1533   :  { %v7430_v6 = vpop.f32.mrf.mxu1  ;;  %7670 = vmatprep.subr.bf16.mxu0 %v10490_v43  ;;  %7684 = vmatprep.subr.bf16.mxu1 %v10493_v60 }
0x1534   :  { %v7431_v25 = vadd.f32 %v7430_v6, %v7429_v20  ;;  %v10550_v6 = vld [vmem:[#allocation3 + $0x110] sm:$0xff]  }
0x1535   :  { %v7432_v27 = vpop.f32.mrf.mxu1  ;;  %7671 = vmatpush3.bf16.msra.mxu0 %v10496_v14 }
0x1536   :  { %7685 = vmatpush3.bf16.msra.mxu1 %v10499_v1  ;;  %v5033_v4 = vadd.f32 %v7431_v25, %v4993_v49  ;;  %7672 = vmatprep.subr.bf16.mxu0 %v10502_v54  ;;  %v10553_v25 = vld [vmem:[#allocation3 + $0x1b0] sm:$0xff]  }
0x1537   :  { %v7433_v11 = vpop.f32.mrf.mxu1  ;;  %7686 = vmatprep.subr.bf16.mxu1 %v10505_v61 }
0x1538   :  { %v10559_v11 = vld [vmem:[#allocation3 + $0x1e8] sm:$0xff]  }
0x1539   :  { %7673 = vmatpush3.bf16.msra.mxu0 %v10508_v57 }
0x153a   :  { %7687 = vmatpush3.bf16.msra.mxu1 %v10511_v56  ;;  %7674 = vmatprep.subr.bf16.mxu0 %v10515_v26 }
0x153b   :  { %7688 = vmatprep.subr.bf16.mxu1 %v10518_v38 }
0x153d   :  { %7675 = vmatpush3.bf16.msra.mxu0 %v10522_v33 }
0x153e   :  { %7689 = vmatpush3.bf16.msra.mxu1 %v10525_v0  ;;  %7704 = vmatprep.subr.bf16.mxu0 %v10531_v47 }
0x153f   :  { %7690 = vmatprep.subr.bf16.mxu1 %v10528_v41 }
0x1540   :  { %v5072_v49 = vpop.f32.mrf.mxu0  ;;  %5551 = vmatmul.mubr.bf16.vlgmr.msra.gmra.mxu0 %v4086_v2  ;;  %v10569_v2 = vld [vmem:[#allocation3 + $0x140] sm:$0xff]  }
0x1541   :  { %v10534_v5 = vadd.f32 %v5072_v49, %v5033_v4  ;;  %7705 = vmatpush3.bf16.msra.mxu0 %v10539_v16  ;;  %5630 = vmatprep.mubr.bf16.mxu0 %v4091_v48  ;;  %v10556_v4 = vld [vmem:[#allocation3 + $0x148] sm:$0xff]   ;;  %11221 = vst [vmem:[#allocation89_spill] sm:$0xff] %v10569_v2  ;;  %v10572_v48 = vld [vmem:[#allocation3 + $0x1e0] sm:$0xff]  }
0x1542   :  { %7691 = vmatpush3.bf16.msra.mxu1 %v10536_v46  ;;  %v7901_v51 = vpop.f32.mrf.mxu0  ;;  %7706 = vmatprep.subr.bf16.mxu0 %v10547_v32  ;;  %11222 = vst [vmem:[#allocation92_spill] sm:$0xff] %v10572_v48  ;;  %v10575_v49 = vld [vmem:[#allocation3 + $0x100] sm:$0xff]  }
0x1543   :  { %11219 = vst [vmem:[#allocation107_spill] sm:$0xff] %v10534_v5  ;;  %7692 = vmatprep.subr.bf16.mxu1 %v10542_v52  ;;  %11223 = vst [vmem:[#allocation101_spill] sm:$0xff] %v10575_v49  ;;  %v10578_v51 = vld [vmem:[#allocation3 + $0x1a0] sm:$0xff]   ;;  %v10590_v5 = vld [vmem:[#allocation3 + $0x238] sm:$0xff]  }
0x1544   :  { %v5075_v20 = vpop.f32.mrf.mxu0  ;;  %11224 = vst [vmem:[#allocation111_spill] sm:$0xff] %v10578_v51  ;;  %11227 = vst [vmem:[#allocation115_spill] sm:$0xff] %v10590_v5 }
0x1545   :  { %7707 = vmatpush3.bf16.msra.mxu0 %v10553_v25  ;;  %v4088_v20 = vpack.c.bf16 %v4034_v37, %v4034_v37  ;;  %v10595_v37 = vld [vmem:[#allocation3 + $0x1d0] sm:$0xff]  }
0x1546   :  { %7693 = vmatpush3.bf16.msra.mxu1 %v10550_v6  ;;  %v7902_v27 = vpop.f32.mrf.mxu0  ;;  %7708 = vmatprep.subr.bf16.mxu0 %v10559_v11  ;;  %11228 = vst [vmem:[#allocation113_spill] sm:$0xff] %v10595_v37 }
0x1547   :  { %7694 = vmatprep.subr.bf16.mxu1 %v10556_v4  ;;  %v10581_v27 = vld [vmem:[#allocation3 + $0x1d8] sm:$0xff]  }
0x1548   :  { %11225 = vst [vmem:[#allocation114_spill] sm:$0xff] %v10581_v27 }
0x1549   :  { %7709 = vmatpush3.bf16.msra.mxu0 %v10565_v23 }
0x154a   :  { %7695 = vmatpush3.bf16.msra.mxu1 %v10562_v24  ;;  %7710 = vmatprep.subr.bf16.mxu0 %v10572_v48  ;;  %v10618_v48 = vld [vmem:[#allocation3 + $0x1c0] sm:$0xff]  }
0x154b   :  { %7696 = vmatprep.subr.bf16.mxu1 %v10569_v2  ;;  %11235 = vst [vmem:[#allocation85_spill] sm:$0xff] %v10618_v48  ;;  %v10626_v2 = vld [vmem:[#allocation3 + $0x220] sm:$0xff]  }
0x154c   :  { %11237 = vst [vmem:[#allocation86_spill] sm:$0xff] %v10626_v2 }
0x154d   :  { %7711 = vmatpush3.bf16.msra.mxu0 %v10578_v51  ;;  %v10607_v51 = vld [vmem:[#allocation3 + $0x1c8] sm:$0xff]  }
0x154e   :  { %7697 = vmatpush3.bf16.msra.mxu1 %v10575_v49  ;;  %7712 = vmatprep.subr.bf16.mxu0 %v10581_v27  ;;  %v10601_v27 = vld [vmem:[#allocation3 + $0x190] sm:$0xff]   ;;  %11231 = vst [vmem:[#allocation119_spill] sm:$0xff] %v10607_v51 }
0x154f   :  { %7943 = vmatprep.subr.bf16.mxu1 %v11069_v29  ;;  %11229 = vst [vmem:[#allocation118_spill] sm:$0xff] %v10601_v27 }
0x1551   :  { %v10585_v34 = vpop.f32.mrf.mxu1  ;;  %5591 = vmatmul.mubr.bf16.vlgmr.msra.gmra.mxu1 %v4088_v20  ;;  %7713 = vmatpush3.bf16.msra.mxu0 %v10587_v13  ;;  %v10604_v13 = vld [vmem:[#allocation3 + $0x230] sm:$0xff]  }
0x1552   :  { %7944 = vmatpush3.bf16.msra.mxu1 %v10590_v5  ;;  %7714 = vmatprep.subr.bf16.mxu0 %v10595_v37  ;;  %11230 = vst [vmem:[#allocation116_spill] sm:$0xff] %v10604_v13  ;;  %v10611_v37 = vld [vmem:[#allocation3 + $0x188] sm:$0xff]  }
0x1553   :  { %v10593_v30 = vpop.f32.mrf.mxu1  ;;  %7945 = vmatprep.subr.bf16.mxu1 %v11069_v29  ;;  %7959 = vmatprep.mubr.msk.bf16.mxu1 %vm8723_vm0, %v11069_v29  ;;  %11232 = vst [vmem:[#allocation80_spill] sm:$0xff] %v10611_v37 }
0x1555   :  { %v7463_v20 = vpop.f32.mrf.mxu1  ;;  %7715 = vmatpush3.bf16.msra.mxu0 %v10601_v27  ;;  %v11234_v27 = vld [vmem:[#allocation84_spill] sm:$0xff] }
0x1556   :  { %7946 = vmatpush3.bf16.msra.mxu1 %v10604_v13  ;;  %7716 = vmatprep.subr.bf16.mxu0 %v10607_v51  ;;  %v10614_v20 = vld [vmem:[#allocation3 + $0x228] sm:$0xff]   ;;  %v4036_v49 = vmax.f32 %v11234_v27, 0.0  ;;  %v10623_v13 = vld [vmem:[#allocation3 + $0x180] sm:$0xff]  }
0x1557   :  { %v7464_v5 = vpop.f32.mrf.mxu1  ;;  %7947 = vmatprep.subr.bf16.mxu1 %v11069_v29  ;;  %11233 = vst [vmem:[#allocation82_spill] sm:$0xff] %v10614_v20 }
0x1558   :  { %v11236_v5 = vld [vmem:[#allocation108_spill] sm:$0xff] }
0x1559   :  { %7717 = vmatpush3.bf16.msra.mxu0 %v10611_v37  ;;  %v4040_v51 = vmax.f32 %v11236_v5, 0.0  ;;  %v4090_v37 = vpack.c.bf16 %v4036_v49, %v4036_v49 }
0x155a   :  { %7948 = vmatpush3.bf16.msra.mxu1 %v10614_v20  ;;  %7718 = vmatprep.subr.bf16.mxu0 %v10618_v48  ;;  %v10633_v48 = vld [vmem:[#allocation3 + $0x218] sm:$0xff]  }
0x155b   :  { %7949 = vmatprep.subr.bf16.mxu1 %v11069_v29  ;;  %v4094_v27 = vpack.c.bf16 %v4040_v51, %v4040_v51  ;;  %v11238_v51 = vld [vmem:[#allocation99_spill] sm:$0xff] }
0x155d   :  { %7719 = vmatpush3.bf16.msra.mxu0 %v10623_v13 }
0x155e   :  { %7950 = vmatpush3.bf16.msra.mxu1 %v10626_v2  ;;  %7735 = vmatprep.subr.bf16.mxu0 %v11211_v22  ;;  %v10641_v2 = vld [vmem:[#allocation3 + $0x210] sm:$0xff]  }
0x155f   :  { %7951 = vmatprep.subr.bf16.mxu1 %v11069_v29 }
0x1560   :  { %v10631_v20 = vpop.f32.mrf.mxu0  ;;  %5631 = vmatmul.mubr.bf16.vlgmr.msra.gmra.mxu0 %v4090_v37  ;;  %v11239_v37 = vld [vmem:[#allocation97_spill] sm:$0xff] }
0x1561   :  { %7736 = vmatpush3.bf16.msra.mxu0 %v10306_v19  ;;  %5710 = vmatprep.mubr.bf16.mxu0 %v4094_v27  ;;  %v10647_v19 = vld [vmem:[#allocation3 + $0x208] sm:$0xff]   ;;  %v4042_v27 = vmax.f32 %v11239_v37, 0.0 }
0x1562   :  { %7952 = vmatpush3.bf16.msra.mxu1 %v10633_v48  ;;  %v10637_v5 = vpop.f32.mrf.mxu0  ;;  %7737 = vmatprep.subr.bf16.mxu0 %v10310_v45  ;;  %v4038_v45 = vmax.f32 %v11238_v51, 0.0  ;;  %v11257_v51 = vld [vmem:[#allocation82_spill] sm:$0xff] }
0x1563   :  { %7953 = vmatprep.subr.bf16.mxu1 %v11069_v29 }
0x1564   :  { %v7485_v49 = vpop.f32.mrf.mxu0 }
0x1565   :  { %7738 = vmatpush3.bf16.msra.mxu0 %v10314_v35  ;;  %v10655_v35 = vld [vmem:[#allocation3 + $0x200] sm:$0xff]  }
0x1566   :  { %7954 = vmatpush3.bf16.msra.mxu1 %v10641_v2  ;;  %v7486_v22 = vpop.f32.mrf.mxu0  ;;  %7739 = vmatprep.subr.bf16.mxu0 %v10318_v18  ;;  %v4092_v18 = vpack.c.bf16 %v4038_v45, %v4038_v45  ;;  %v11258_v45 = vld [vmem:[#allocation127_spill] sm:$0xff] }
0x1567   :  { %7955 = vmatprep.subr.bf16.mxu1 %v11069_v29  ;;  %v4045_v37 = vmax.f32 %v11258_v45, 0.0 }
0x1569   :  { %7740 = vmatpush3.bf16.msra.mxu0 %v10415_v59  ;;  %v4096_v59 = vpack.c.bf16 %v4042_v27, %v4042_v27  ;;  %v11259_v27 = vld [vmem:[#allocation85_spill] sm:$0xff] }
0x156a   :  { %7956 = vmatpush3.bf16.msra.mxu1 %v10647_v19  ;;  %7741 = vmatprep.subr.bf16.mxu0 %v10420_v9 }
0x156b   :  { %7957 = vmatprep.subr.bf16.mxu1 %v11069_v29 }
0x156d   :  { %7742 = vmatpush3.bf16.msra.mxu0 %v10425_v12 }
0x156e   :  { %7958 = vmatpush3.bf16.msra.mxu1 %v10655_v35  ;;  %7743 = vmatprep.subr.bf16.mxu0 %v10428_v42  ;;  %v11240_v42 = vld [vmem:[#allocation77_spill] sm:$0xff] }
0x156f   :  { %7757 = vmatprep.subr.bf16.mxu1 %v10431_v40  ;;  %v4039_v40 = vmax.f32 %v11240_v42, 0.0 }
0x1571   :  { %v7504_v49 = vpop.f32.mrf.mxu1  ;;  %7960 = vmatmul.mubr.bf16.vlgmr.msra.gmra.mxu1 %v4092_v18  ;;  %7744 = vmatpush3.bf16.msra.mxu0 %v10434_v28  ;;  %v11241_v28 = vld [vmem:[#allocation109_spill] sm:$0xff]  ;;  %v11260_v18 = vld [vmem:[#allocation86_spill] sm:$0xff] }
0x1572   :  { %7758 = vmatpush3.bf16.msra.mxu1 %v10437_v55  ;;  %5750 = vmatprep.mubr.bf16.mxu1 %v4096_v59  ;;  %v4044_v55 = vmax.f32 %v11241_v28, 0.0  ;;  %v4099_v59 = vpack.c.bf16 %v4045_v37, %v4045_v37 }
0x1573   :  { %v7505_v9 = vpop.f32.mrf.mxu1  ;;  %7745 = vmatprep.subr.bf16.mxu0 %v10440_v8  ;;  %7759 = vmatprep.subr.bf16.mxu1 %v10443_v7  ;;  %v4093_v8 = vpack.c.bf16 %v4039_v40, %v4039_v40 }
0x1574   :  { %v4098_v7 = vpack.c.bf16 %v4044_v55, %v4044_v55 }
0x1575   :  { %v7507_v22 = vpop.f32.mrf.mxu1  ;;  %7746 = vmatpush3.bf16.msra.mxu0 %v10446_v31 }
0x1576   :  { %7760 = vmatpush3.bf16.msra.mxu1 %v10449_v10  ;;  %7747 = vmatprep.subr.bf16.mxu0 %v10452_v63 }
0x1577   :  { %v7508_v12 = vpop.f32.mrf.mxu1  ;;  %7761 = vmatprep.subr.bf16.mxu1 %v10455_v58 }
0x1579   :  { %7748 = vmatpush3.bf16.msra.mxu0 %v10458_v36  ;;  %v7484_v36 = vadd.f32 %v10637_v5, %v10631_v20  ;;  %v11255_v20 = vld [vmem:[#allocation119_spill] sm:$0xff]  ;;  %v11256_v5 = vld [vmem:[#allocation80_spill] sm:$0xff] }
0x157a   :  { %7762 = vmatpush3.bf16.msra.mxu1 %v10461_v15  ;;  %7749 = vmatprep.subr.bf16.mxu0 %v10465_v17  ;;  %v7462_v15 = vadd.f32 %v10593_v30, %v10585_v34  ;;  %v7506_v17 = vadd.f32 %v7505_v9, %v7504_v49 }
0x157b   :  { %7763 = vmatprep.subr.bf16.mxu1 %v10468_v21  ;;  %v11242_v21 = vld [vmem:[#allocation125_spill] sm:$0xff] }
0x157d   :  { %7750 = vmatpush3.bf16.msra.mxu0 %v10472_v62  ;;  %v4041_v62 = vmax.f32 %v11242_v21, 0.0 }
0x157e   :  { %7764 = vmatpush3.bf16.msra.mxu1 %v10475_v39  ;;  %7779 = vmatprep.subr.bf16.mxu0 %v10481_v3  ;;  %v5153_v39 = vadd.f32 %v7484_v36, %v7462_v15  ;;  %v11243_v3 = vld [vmem:[#allocation106_spill] sm:$0xff] }
0x157f   :  { %7765 = vmatprep.subr.bf16.mxu1 %v10478_v44  ;;  %v4095_v30 = vpack.c.bf16 %v4041_v62, %v4041_v62 }
0x1580   :  { %v7526_v31 = vpop.f32.mrf.mxu0  ;;  %5711 = vmatmul.mubr.bf16.vlgmr.msra.gmra.mxu0 %v4093_v8 }
0x1581   :  { %7780 = vmatpush3.bf16.msra.mxu0 %v10487_v53  ;;  %5790 = vmatprep.mubr.bf16.mxu0 %v4098_v7  ;;  %v5193_v53 = vadd.f32 %v7506_v17, %v5153_v39 }
0x1582   :  { %7766 = vmatpush3.bf16.msra.mxu1 %v10484_v50  ;;  %v7527_v10 = vpop.f32.mrf.mxu0  ;;  %7781 = vmatprep.subr.bf16.mxu0 %v10493_v60  ;;  %v4046_v50 = vmax.f32 %v11243_v3, 0.0 }
0x1583   :  { %7767 = vmatprep.subr.bf16.mxu1 %v10490_v43  ;;  %v7528_v44 = vadd.f32 %v7527_v10, %v7526_v31 }
0x1584   :  { %v7529_v63 = vpop.f32.mrf.mxu0  ;;  %v4100_v60 = vpack.c.bf16 %v4046_v50, %v4046_v50 }
0x1585   :  { %7782 = vmatpush3.bf16.msra.mxu0 %v10499_v1  ;;  %v5233_v43 = vadd.f32 %v7528_v44, %v5193_v53 }
0x1586   :  { %7768 = vmatpush3.bf16.msra.mxu1 %v10496_v14  ;;  %v7530_v58 = vpop.f32.mrf.mxu0  ;;  %7783 = vmatprep.subr.bf16.mxu0 %v10505_v61 }
0x1587   :  { %7769 = vmatprep.subr.bf16.mxu1 %v10502_v54 }
0x1589   :  { %7784 = vmatpush3.bf16.msra.mxu0 %v10511_v56  ;;  %v11244_v56 = vld [vmem:[#allocation126_spill] sm:$0xff] }
0x158a   :  { %7770 = vmatpush3.bf16.msra.mxu1 %v10508_v57  ;;  %7785 = vmatprep.subr.bf16.mxu0 %v10518_v38  ;;  %v11245_v38 = vld [vmem:[#allocation89_spill] sm:$0xff] }
0x158b   :  { %7771 = vmatprep.subr.bf16.mxu1 %v10515_v26  ;;  %v4043_v26 = vmax.f32 %v11244_v56, 0.0 }
0x158d   :  { %7786 = vmatpush3.bf16.msra.mxu0 %v10525_v0  ;;  %v11247_v0 = vld [vmem:[#allocation101_spill] sm:$0xff] }
0x158e   :  { %7772 = vmatpush3.bf16.msra.mxu1 %v10522_v33  ;;  %7787 = vmatprep.subr.bf16.mxu0 %v10528_v41  ;;  %v11246_v33 = vld [vmem:[#allocation92_spill] sm:$0xff]  ;;  %v11248_v41 = vld [vmem:[#allocation111_spill] sm:$0xff] }
0x158f   :  { %7801 = vmatprep.subr.bf16.mxu1 %v10531_v47  ;;  %v4097_v47 = vpack.c.bf16 %v4043_v26, %v4043_v26 }
0x1591   :  { %v5272_v14 = vpop.f32.mrf.mxu1  ;;  %5751 = vmatmul.mubr.bf16.vlgmr.msra.gmra.mxu1 %v4095_v30  ;;  %7788 = vmatpush3.bf16.msra.mxu0 %v10536_v46  ;;  %v11249_v46 = vld [vmem:[#allocation114_spill] sm:$0xff] }
0x1592   :  { %v5273_v1 = vadd.f32 %v5272_v14, %v5233_v43  ;;  %7802 = vmatpush3.bf16.msra.mxu1 %v10539_v16  ;;  %5830 = vmatprep.mubr.bf16.mxu1 %v4100_v60 }
0x1593   :  { %v7921_v54 = vpop.f32.mrf.mxu1  ;;  %7789 = vmatprep.subr.bf16.mxu0 %v10542_v52  ;;  %7803 = vmatprep.subr.bf16.mxu1 %v10547_v32  ;;  %v11250_v52 = vld [vmem:[#allocation112_spill] sm:$0xff]  ;;  %v11251_v32 = vld [vmem:[#allocation115_spill] sm:$0xff] }
0x1594   :  { %5881 = vrot.lane.b32.xlu0 %v5273_v1, %s8724_s0 }
0x1595   :  { %v5275_v61 = vpop.f32.mrf.mxu1  ;;  %7790 = vmatpush3.bf16.msra.mxu0 %v10550_v6 }
0x1596   :  { %7804 = vmatpush3.bf16.msra.mxu1 %v10553_v25  ;;  %7791 = vmatprep.subr.bf16.mxu0 %v10556_v4  ;;  %v11252_v25 = vld [vmem:[#allocation113_spill] sm:$0xff] }
0x1597   :  { %v7922_v57 = vpop.f32.mrf.mxu1  ;;  %7805 = vmatprep.subr.bf16.mxu1 %v10559_v11 }
0x1599   :  { %7792 = vmatpush3.bf16.msra.mxu0 %v10562_v24  ;;  %v11253_v24 = vld [vmem:[#allocation118_spill] sm:$0xff] }
0x159a   :  { %7806 = vmatpush3.bf16.msra.mxu1 %v10565_v23  ;;  %7793 = vmatprep.subr.bf16.mxu0 %v11245_v38  ;;  %v11254_v23 = vld [vmem:[#allocation116_spill] sm:$0xff] }
0x159b   :  { %7807 = vmatprep.subr.bf16.mxu1 %v11246_v33 }
0x159d   :  { %7794 = vmatpush3.bf16.msra.mxu0 %v11247_v0 }
0x159e   :  { %7808 = vmatpush3.bf16.msra.mxu1 %v11248_v41  ;;  %7963 = vmatprep.subr.bf16.mxu0 %v11069_v29 }
0x159f   :  { %7809 = vmatprep.subr.bf16.mxu1 %v11249_v46 }
0x15a0   :  { %v7557_v16 = vpop.f32.mrf.mxu0  ;;  %5791 = vmatmul.mubr.bf16.vlgmr.msra.gmra.mxu0 %v4097_v47 }
0x15a1   :  { %7964 = vmatpush3.bf16.msra.mxu0 %v11251_v32  ;;  %7979 = vmatprep.mubr.msk.bf16.mxu0 %vm8723_vm0, %v11069_v29 }
0x15a2   :  { %7810 = vmatpush3.bf16.msra.mxu1 %v11250_v52  ;;  %v7558_v6 = vpop.f32.mrf.mxu0  ;;  %7965 = vmatprep.subr.bf16.mxu0 %v11069_v29 }
0x15a3   :  { %7811 = vmatprep.subr.bf16.mxu1 %v11252_v25  ;;  %v7559_v4 = vadd.f32 %v7558_v6, %v7557_v16 }
0x15a4   :  { %v7560_v11 = vpop.f32.mrf.mxu0 }
0x15a5   :  { %7966 = vmatpush3.bf16.msra.mxu0 %v11254_v23 }
0x15a6   :  { %7812 = vmatpush3.bf16.msra.mxu1 %v11253_v24  ;;  %v7561_v34 = vpop.f32.mrf.mxu0  ;;  %7967 = vmatprep.subr.bf16.mxu0 %v11069_v29 }
0x15a7   :  { %7813 = vmatprep.subr.bf16.mxu1 %v11255_v20 }
0x15a9   :  { %7968 = vmatpush3.bf16.msra.mxu0 %v11257_v51 }
0x15aa   :  { %7814 = vmatpush3.bf16.msra.mxu1 %v11256_v5  ;;  %7969 = vmatprep.subr.bf16.mxu0 %v11069_v29 }
0x15ab   :  { %7815 = vmatprep.subr.bf16.mxu1 %v11259_v27 }
0x15ad   :  { %7970 = vmatpush3.bf16.msra.mxu0 %v11260_v18 }
0x15ae   :  { %7816 = vmatpush3.bf16.msra.mxu1 %v10623_v13  ;;  %7971 = vmatprep.subr.bf16.mxu0 %v11069_v29  ;;  %v11261_v13 = vld [vmem:[#allocation78_spill] sm:$0xff] }
0x15af   :  { %v4047_v28 = vmax.f32 %v11261_v13, 0.0 }
0x15b1   :  { %v7579_v49 = vpop.f32.mrf.mxu1  ;;  %5831 = vmatmul.mubr.bf16.vlgmr.msra.gmra.mxu1 %v4099_v59  ;;  %7972 = vmatpush3.bf16.msra.mxu0 %v10633_v48  ;;  %v4101_v48 = vpack.c.bf16 %v4047_v28, %v4047_v28 }
0x15b2   :  { %7973 = vmatprep.subr.bf16.mxu0 %v11069_v29 }
0x15b3   :  { %v7580_v9 = vpop.f32.mrf.mxu1 }
0x15b4   :  { %v7581_v22 = vadd.f32 %v7580_v9, %v7579_v49 }
0x15b5   :  { %v7582_v12 = vpop.f32.mrf.mxu1  ;;  %7974 = vmatpush3.bf16.msra.mxu0 %v10641_v2 }
0x15b6   :  { %v5353_v42 = vadd.f32 %v7581_v22, %v7559_v4  ;;  %7975 = vmatprep.subr.bf16.mxu0 %v11069_v29 }
0x15b7   :  { %v7583_v40 = vpop.f32.mrf.mxu1 }
0x15b9   :  { %7976 = vmatpush3.bf16.msra.mxu0 %v10647_v19 }
0x15ba   :  { %7977 = vmatprep.subr.bf16.mxu0 %v11069_v29 }
0x15bd   :  { %7978 = vmatpush3.bf16.msra.mxu0 %v10655_v35 }
0x15c0   :  { %v7601_v55 = vpop.f32.mrf.mxu0  ;;  %7980 = vmatmul.mubr.bf16.vlgmr.msra.gmra.mxu0 %v4101_v48 }
0x15c2   :  { %v7602_v8 = vpop.f32.mrf.mxu0 }
0x15c3   :  { %v7603_v7 = vadd.f32 %v7602_v8, %v7601_v55 }
0x15c4   :  { %v7604_v31 = vpop.f32.mrf.mxu0 }
0x15c5   :  { %v5393_v10 = vadd.f32 %v7603_v7, %v5353_v42 }
0x15c6   :  { %v7605_v63 = vpop.f32.mrf.mxu0 }
0x15d1   :  { %v7623_v2 = vpop.f32.mrf.mxu1 }
0x15d3   :  { %v7624_v58 = vpop.f32.mrf.mxu1 }
0x15d4   :  { %v7625_v36 = vadd.f32 %v7624_v58, %v7623_v2 }
0x15d5   :  { %v7626_v15 = vpop.f32.mrf.mxu1 }
0x15d6   :  { %v5433_v17 = vadd.f32 %v7625_v36, %v5393_v10 }
0x15d7   :  { %v7627_v19 = vpop.f32.mrf.mxu1 }
0x15e0   :  { %v5472_v21 = vpop.f32.mrf.mxu0 }
0x15e1   :  { %v5473_v62 = vadd.f32 %v5472_v21, %v5433_v17 }
0x15e2   :  { %v7941_v39 = vpop.f32.mrf.mxu0 }
0x15e3   :  { %v11263_v39 = vld [vmem:[#allocation107_spill] sm:$0xff] }
0x15e4   :  { %v5475_v44 = vpop.f32.mrf.mxu0 }
0x15e6   :  { %v7942_v3 = vpop.f32.mrf.mxu0 }
0x15f1   :  { %v7654_v35 = vpop.f32.mrf.mxu1 }
0x15f3   :  { %v7655_v50 = vpop.f32.mrf.mxu1 }
0x15f4   :  { %v7656_v47 = vadd.f32 %v7655_v50, %v7654_v35 }
0x15f5   :  { %v7657_v53 = vpop.f32.mrf.mxu1 }
0x15f7   :  { %v7658_v30 = vpop.f32.mrf.mxu1 }
0x1600   :  { %v7676_v43 = vpop.f32.mrf.mxu0 }
0x1602   :  { %v7677_v60 = vpop.f32.mrf.mxu0 }
0x1603   :  { %v7678_v41 = vadd.f32 %v7677_v60, %v7676_v43 }
0x1604   :  { %v7679_v14 = vpop.f32.mrf.mxu0 }
0x1605   :  { %v5553_v16 = vadd.f32 %v7678_v41, %v7656_v47 }
0x1606   :  { %v7680_v1 = vpop.f32.mrf.mxu0  ;;  %v5882_v19 = vpop.permute.xlu0 %5881 }
0x1611   :  { %v7698_v54 = vpop.f32.mrf.mxu1 }
0x1613   :  { %v7699_v61 = vpop.f32.mrf.mxu1 }
0x1614   :  { %v7700_v46 = vadd.f32 %v7699_v61, %v7698_v54 }
0x1615   :  { %v7701_v57 = vpop.f32.mrf.mxu1 }
0x1616   :  { %v5593_v32 = vadd.f32 %v7700_v46, %v5553_v16 }
0x1617   :  { %v7702_v56 = vpop.f32.mrf.mxu1 }
0x1620   :  { %v7720_v26 = vpop.f32.mrf.mxu0 }
0x1622   :  { %v7721_v38 = vpop.f32.mrf.mxu0 }
0x1623   :  { %v7722_v52 = vadd.f32 %v7721_v38, %v7720_v26 }
0x1624   :  { %v7723_v33 = vpop.f32.mrf.mxu0 }
0x1625   :  { %v5633_v6 = vadd.f32 %v7722_v52, %v5593_v32 }
0x1626   :  { %v7724_v0 = vpop.f32.mrf.mxu0 }
0x1631   :  { %v5672_v25 = vpop.f32.mrf.mxu1 }
0x1632   :  { %v5673_v4 = vadd.f32 %v5672_v25, %v5633_v6 }
0x1633   :  { %v7961_v11 = vpop.f32.mrf.mxu1 }
0x1634   :  { %v5879_v24 = vmax.f32 %v5473_v62, %v5673_v4  ;;  %v11262_v62 = vld [vmem:[#allocation81_spill] sm:$0xff] }
0x1635   :  { %v5675_v23 = vpop.f32.mrf.mxu1  ;;  %v11264_v44 = vmax.f32 %v11262_v62, %v11263_v39 }
0x1636   :  { %5885 = vrot.lane.b32.xlu0 %v5879_v24, %s8717_s1 }
0x1637   :  { %v7962_v34 = vpop.f32.mrf.mxu1  ;;  %v5893_v3 = vsel %vm5892_vm1, %v11264_v44, %v5882_v19 }
0x1640   :  { %v7751_v20 = vpop.f32.mrf.mxu0 }
0x1642   :  { %v7752_v5 = vpop.f32.mrf.mxu0 }
0x1643   :  { %v7753_v55 = vadd.f32 %v7752_v5, %v7751_v20 }
0x1644   :  { %v7754_v51 = vpop.f32.mrf.mxu0 }
0x1646   :  { %v7755_v45 = vpop.f32.mrf.mxu0 }
0x1651   :  { %v7773_v37 = vpop.f32.mrf.mxu1 }
0x1653   :  { %v7774_v27 = vpop.f32.mrf.mxu1 }
0x1654   :  { %v7775_v48 = vadd.f32 %v7774_v27, %v7773_v37 }
0x1655   :  { %v7776_v18 = vpop.f32.mrf.mxu1 }
0x1656   :  { %v5753_v7 = vadd.f32 %v7775_v48, %v7753_v55 }
0x1657   :  { %v7777_v59 = vpop.f32.mrf.mxu1 }
0x1660   :  { %v7795_v49 = vpop.f32.mrf.mxu0 }
0x1662   :  { %v7796_v9 = vpop.f32.mrf.mxu0 }
0x1663   :  { %v7797_v8 = vadd.f32 %v7796_v9, %v7795_v49 }
0x1664   :  { %v7798_v22 = vpop.f32.mrf.mxu0 }
0x1665   :  { %v5793_v10 = vadd.f32 %v7797_v8, %v5753_v7 }
0x1666   :  { %v7799_v12 = vpop.f32.mrf.mxu0 }
0x1671   :  { %v7817_v42 = vpop.f32.mrf.mxu1 }
0x1673   :  { %v7818_v40 = vpop.f32.mrf.mxu1 }
0x1674   :  { %v7819_v31 = vadd.f32 %v7818_v40, %v7817_v42 }
0x1675   :  { %v7820_v13 = vpop.f32.mrf.mxu1 }
0x1676   :  { %v5833_v63 = vadd.f32 %v7819_v31, %v5793_v10 }
0x1677   :  { %v7821_v28 = vpop.f32.mrf.mxu1 }
0x1680   :  { %v5872_v2 = vpop.f32.mrf.mxu0 }
0x1681   :  { %v5873_v58 = vadd.f32 %v5872_v2, %v5833_v63 }
0x1682   :  { %v7981_v36 = vpop.f32.mrf.mxu0 }
0x1683   :  { %5889 = vrot.lane.b32.xlu1 %v5873_v58, %s8725_s17 }
0x1684   :  { %v5875_v15 = vpop.f32.mrf.mxu0 }
0x1686   :  { %v7982_v17 = vpop.f32.mrf.mxu0 }
0x16a8   :  { %v5886_v21 = vpop.permute.xlu0 %5885 }
0x16a9   :  { %v5894_v35 = vsel %vm575_vm5, %v5893_v3, %v5886_v21 }
0x16f5   :  { %v5890_v50 = vpop.permute.xlu1 %5889 }
0x16f6   :  { %v10749_v53 = vsel %vm5895_vm2, %v5894_v35, %v5890_v50 }
0x16f7   :  { %8701 = dma.done.wait [#allocation8 + $0x2], 3072 }
0x16f8   :  { %8702 = vsyncadd [#allocation8 + $0x2], 4294964224 }
0x16f9   :  { %8703 = dma.done.wait [#allocation8 + $0x3], 6144 }
0x16fa   :  { %8704 = vsyncadd [#allocation8 + $0x3], 4294961152 }
0x16fb   :  { %8705 = dma.done.wait [#allocation8 + $0x4], 2048 }
0x16fc   :  { %8706 = vsyncadd [#allocation8 + $0x4], 4294965248 }
0x16fd   :  { %8707 = dma.done.wait [#allocation8 + $0x5], 384 }
0x16fe   :  { %8708 = vsyncadd [#allocation8 + $0x5], 4294966912  ;;  %7983 = vmatprep.subr.bf16.mxu0 %v11069_v29  ;;  %7999 = vmatprep.mubr.msk.bf16.mxu0 %vm8723_vm0, %v11069_v29  ;;  %v11265_v30 = vmov 0   ;;  %v8589_v43 = vld [vmem:[#allocation4 + $0xac] ss:$12 sps:$4 sm:$0xff]   ;;  %v11267_v20 = vld [vmem:[#allocation72_spill] sm:$0xff]  ;;  %v5916_v27 = vpack.c.bf16 %v10749_v53, %v10749_v53 }
0x16ff   :  { %6121 = vmatprep.mubr.bf16.mxu1 %v11265_v30  ;;  %v8591_v60 = vld [vmem:[#allocation4 + $0xb0] ss:$12 sps:$4 sm:$0xff]   ;;  %6089 = vmatprep.subr.bf16.mxu1 %v8589_v43  ;;  %v8592_v14 = vld [vmem:[#allocation4 + $0xa8] ss:$12 sps:$4 sm:$0xff]   ;;  %v8595_v54 = vld [vmem:[#allocation4 + $0x98] ss:$12 sps:$4 sm:$0xff]  }
0x1700   :  { %7984 = vmatpush3.bf16.msra.mxu0 %v8591_v60  ;;  %v8593_v1 = vld [vmem:[#allocation4 + $0x94] ss:$12 sps:$4 sm:$0xff]   ;;  %6090 = vmatpush1.bf16.msra.mxu1 %v8592_v14  ;;  %v8596_v61 = vld [vmem:[#allocation4 + $0x90] ss:$12 sps:$4 sm:$0xff]   ;;  %v8600_v26 = vld [vmem:[#allocation4 + $0x78] ss:$12 sps:$4 sm:$0xff]  }
0x1701   :  { %7985 = vmatprep.subr.bf16.mxu0 %v11069_v29  ;;  %6091 = vmatprep.subr.bf16.mxu1 %v8593_v1  ;;  %v8597_v57 = vld [vmem:[#allocation4 + $0x7c] ss:$12 sps:$4 sm:$0xff]   ;;  %v8599_v56 = vld [vmem:[#allocation4 + $0x80] ss:$12 sps:$4 sm:$0xff]   ;;  %v8601_v38 = vld [vmem:[#allocation4 + $0x64] ss:$12 sps:$4 sm:$0xff]  }
0x1702   :  { %v8603_v33 = vld [vmem:[#allocation4 + $0x68] ss:$12 sps:$4 sm:$0xff]   ;;  %v8604_v0 = vld [vmem:[#allocation4 + $0x60] ss:$12 sps:$4 sm:$0xff]   ;;  %v8607_v47 = vld [vmem:[#allocation4 + $0x50] ss:$12 sps:$4 sm:$0xff]  }
0x1703   :  { %v8605_v41 = vld [vmem:[#allocation4 + $0x4c] ss:$12 sps:$4 sm:$0xff]   ;;  %v8608_v46 = vld [vmem:[#allocation4 + $0x48] ss:$12 sps:$4 sm:$0xff]   ;;  %v8612_v32 = vld [vmem:[#allocation4 + $0x30] ss:$12 sps:$4 sm:$0xff]  }
0x1704   :  { %7986 = vmatpush3.bf16.msra.mxu0 %v8595_v54  ;;  %6092 = vmatpush1.bf16.msra.mxu1 %v8596_v61  ;;  %v8609_v16 = vld [vmem:[#allocation4 + $0x34] ss:$12 sps:$4 sm:$0xff]   ;;  %v8611_v52 = vld [vmem:[#allocation4 + $0x38] ss:$12 sps:$4 sm:$0xff]   ;;  %v8613_v6 = vld [vmem:[#allocation4 + $0x1c] ss:$12 sps:$4 sm:$0xff]  }
0x1705   :  { %7987 = vmatprep.subr.bf16.mxu0 %v11069_v29  ;;  %6093 = vmatprep.subr.bf16.mxu1 %v8597_v57  ;;  %v8615_v25 = vld [vmem:[#allocation4 + $0x20] ss:$12 sps:$4 sm:$0xff]   ;;  %v8616_v4 = vld [vmem:[#allocation4 + $0x18] ss:$12 sps:$4 sm:$0xff]   ;;  %v8619_v24 = vld [vmem:[#allocation4 + $0x8] ss:$12 sps:$4 sm:$0xff]  }
0x1706   :  { %v8617_v11 = vld [vmem:[#allocation4 + $0x4] ss:$12 sps:$4 sm:$0xff]   ;;  %v8620_v23 = vld [vmem:[#allocation4] ss:$12 sps:$4 sm:$0xff]   ;;  %v11266_v34 = vld [vmem:[#allocation73_spill] sm:$0xff]  ;;  %vm6736_vm3 = vcmask 1041408  }
0x1707   :  { %v7227_v5 = vcombine.high %v11267_v20, %v11266_v34  ;;  %v11268_v51 = vld [vmem:[#allocation41_spill] sm:$0xff]  ;;  %v11269_v45 = vld [vmem:[#allocation40_spill] sm:$0xff]  ;;  %v7226_v18 = vcombine.low %v11267_v20, %v11266_v34  ;;  %v11271_v49 = vld [vmem:[#allocation70_spill] sm:$0xff]  ;;  %vm6745_vm4 = vcmask 1024  }
0x1708   :  { %7988 = vmatpush3.bf16.msra.mxu0 %v8599_v56  ;;  %6094 = vmatpush1.bf16.msra.mxu1 %v8600_v26  ;;  %v7195_v37 = vcombine.high %v11269_v45, %v11268_v51  ;;  %v7194_v59 = vcombine.low %v11269_v45, %v11268_v51  ;;  %v11272_v22 = vld [vmem:[#allocation39_spill] sm:$0xff]  ;;  %v11273_v12 = vld [vmem:[#allocation38_spill] sm:$0xff]  ;;  %v11274_v28 = vld [vmem:[#allocation69_spill] sm:$0xff] }
0x1709   :  { %7989 = vmatprep.subr.bf16.mxu0 %v11069_v29  ;;  %6095 = vmatprep.subr.bf16.mxu1 %v8601_v38  ;;  %v7193_v42 = vcombine.high %v11273_v12, %v11272_v22  ;;  %v7192_v13 = vcombine.low %v11273_v12, %v11272_v22  ;;  %v11275_v48 = vld [vmem:[#allocation68_spill] sm:$0xff]  ;;  %v11276_v8 = vld [vmem:[#allocation37_spill] sm:$0xff]  ;;  %v11278_v2 = vld [vmem:[#allocation67_spill] sm:$0xff] }
0x170a   :  { %v7223_v55 = vcombine.high %v11275_v48, %v11274_v28  ;;  %v11277_v7 = vld [vmem:[#allocation36_spill] sm:$0xff]  ;;  %v7222_v10 = vcombine.low %v11275_v48, %v11274_v28  ;;  %v11279_v58 = vld [vmem:[#allocation66_spill] sm:$0xff]  ;;  %v11280_v15 = vld [vmem:[#allocation35_spill] sm:$0xff] }
0x170b   :  { %v7191_v31 = vcombine.high %v11277_v7, %v11276_v8  ;;  %v7190_v63 = vcombine.low %v11277_v7, %v11276_v8  ;;  %v7221_v36 = vcombine.high %v11279_v58, %v11278_v2  ;;  %v11281_v17 = vld [vmem:[#allocation34_spill] sm:$0xff]  ;;  %v7220_v21 = vcombine.low %v11279_v58, %v11278_v2  ;;  %v11282_v39 = vld [vmem:[#allocation65_spill] sm:$0xff]  ;;  %v11283_v44 = vld [vmem:[#allocation64_spill] sm:$0xff] }
0x170c   :  { %7990 = vmatpush3.bf16.msra.mxu0 %v8603_v33  ;;  %6096 = vmatpush1.bf16.msra.mxu1 %v8604_v0  ;;  %v7189_v19 = vcombine.high %v11281_v17, %v11280_v15  ;;  %v7188_v62 = vcombine.low %v11281_v17, %v11280_v15  ;;  %v7219_v3 = vcombine.high %v11283_v44, %v11282_v39  ;;  %v11284_v35 = vld [vmem:[#allocation33_spill] sm:$0xff]  ;;  %v11285_v50 = vld [vmem:[#allocation32_spill] sm:$0xff]  ;;  %v11286_v60 = vld [vmem:[#allocation63_spill] sm:$0xff] }
0x170d   :  { %7991 = vmatprep.subr.bf16.mxu0 %v11069_v29  ;;  %6097 = vmatprep.subr.bf16.mxu1 %v8605_v41  ;;  %v7187_v53 = vcombine.high %v11285_v50, %v11284_v35  ;;  %v7186_v43 = vcombine.low %v11285_v50, %v11284_v35  ;;  %v11287_v14 = vld [vmem:[#allocation62_spill] sm:$0xff]  ;;  %v11288_v54 = vld [vmem:[#allocation31_spill] sm:$0xff]  ;;  %v11290_v38 = vld [vmem:[#allocation61_spill] sm:$0xff] }
0x170e   :  { %v7217_v1 = vcombine.high %v11287_v14, %v11286_v60  ;;  %v11289_v61 = vld [vmem:[#allocation30_spill] sm:$0xff]  ;;  %v7216_v56 = vcombine.low %v11287_v14, %v11286_v60  ;;  %v11291_v33 = vld [vmem:[#allocation60_spill] sm:$0xff]  ;;  %v11292_v41 = vld [vmem:[#allocation29_spill] sm:$0xff] }
0x170f   :  { %v7185_v57 = vcombine.high %v11289_v61, %v11288_v54  ;;  %v7184_v26 = vcombine.low %v11289_v61, %v11288_v54  ;;  %v7215_v0 = vcombine.high %v11291_v33, %v11290_v38  ;;  %v11298_v34 = vld [vmem:[#allocation55_spill] sm:$0xff]  ;;  %v11299_v20 = vld [vmem:[#allocation54_spill] sm:$0xff]  ;;  %v11300_v45 = vld [vmem:[#allocation53_spill] sm:$0xff]  ;;  %v7214_v8 = vcombine.low %v11291_v33, %v11290_v38 }
0x1710   :  { %7992 = vmatpush3.bf16.msra.mxu0 %v8607_v47  ;;  %6098 = vmatpush1.bf16.msra.mxu1 %v8608_v46  ;;  %v11293_v47 = vld [vmem:[#allocation28_spill] sm:$0xff]  ;;  %v7208_v51 = vcombine.low %v11299_v20, %v11298_v34  ;;  %v11304_v22 = vld [vmem:[#allocation49_spill] sm:$0xff]  ;;  %v11307_v28 = vld [vmem:[#allocation46_spill] sm:$0xff] }
0x1711   :  { %7993 = vmatprep.subr.bf16.mxu0 %v11069_v29  ;;  %6099 = vmatprep.subr.bf16.mxu1 %v8609_v16  ;;  %v7183_v46 = vcombine.high %v11293_v47, %v11292_v41  ;;  %v7182_v16 = vcombine.low %v11293_v47, %v11292_v41  ;;  %v11305_v12 = vld [vmem:[#allocation48_spill] sm:$0xff]  ;;  %v11308_v7 = vld [vmem:[#allocation45_spill] sm:$0xff]  ;;  %v11311_v2 = vld [vmem:[#allocation58_spill] sm:$0xff] }
0x1712   :  { %v11312_v17 = vld [vmem:[#allocation43_spill] sm:$0xff]  ;;  %v11315_v50 = vld [vmem:[#allocation76_spill] sm:$0xff]  ;;  %v8622_v41 = vld [vmem:[#allocation6 + $0x38] sm:$0xff]  }
0x1713   :  { %v11317_v14 = vld [vmem:[#allocation75_spill] sm:$0xff] }
0x1714   :  { %7994 = vmatpush3.bf16.msra.mxu0 %v8611_v52  ;;  %6100 = vmatpush1.bf16.msra.mxu1 %v8612_v32  ;;  %v11294_v52 = vld [vmem:[#allocation27_spill] sm:$0xff]  ;;  %v11295_v32 = vld [vmem:[#allocation26_spill] sm:$0xff] }
0x1715   :  { %7995 = vmatprep.subr.bf16.mxu0 %v11069_v29  ;;  %6101 = vmatprep.subr.bf16.mxu1 %v8613_v6  ;;  %v7181_v6 = vcombine.high %v11295_v32, %v11294_v52 }
0x1718   :  { %7996 = vmatpush3.bf16.msra.mxu0 %v8615_v25  ;;  %6102 = vmatpush1.bf16.msra.mxu1 %v8616_v4  ;;  %v7180_v25 = vcombine.low %v11295_v32, %v11294_v52  ;;  %v11296_v4 = vld [vmem:[#allocation57_spill] sm:$0xff]  ;;  %v8623_v52 = vld [vmem:[#allocation6 + $0x70] sm:$0xff]  }
0x1719   :  { %7997 = vmatprep.subr.bf16.mxu0 %v11069_v29  ;;  %6103 = vmatprep.subr.bf16.mxu1 %v8617_v11  ;;  %v11270_v29 = vld [vmem:[#allocation71_spill] sm:$0xff]  ;;  %v11297_v11 = vld [vmem:[#allocation56_spill] sm:$0xff] }
0x171a   :  { %v7225_v9 = vcombine.high %v11271_v49, %v11270_v29  ;;  %v7224_v40 = vcombine.low %v11271_v49, %v11270_v29  ;;  %v11303_v29 = vld [vmem:[#allocation50_spill] sm:$0xff] }
0x171c   :  { %7998 = vmatpush3.bf16.msra.mxu0 %v8619_v24  ;;  %6104 = vmatpush1.bf16.msra.mxu1 %v8620_v23  ;;  %v7211_v24 = vcombine.high %v11297_v11, %v11296_v4  ;;  %v7210_v23 = vcombine.low %v11297_v11, %v11296_v4  ;;  %v8624_v11 = vld [vmem:[#allocation6 + $0x30] sm:$0xff]  }
0x171d   :  { %6513 = vmatprep.subr.bf16.mxu0 %v7227_v5  ;;  %6472 = vmatprep.subr.bf16.mxu1 %v7195_v37  ;;  %v7209_v5 = vcombine.high %v11299_v20, %v11298_v34  ;;  %v11301_v37 = vld [vmem:[#allocation52_spill] sm:$0xff]  ;;  %v8626_v34 = vld [vmem:[#allocation6 + $0x28] sm:$0xff]   ;;  %v8627_v20 = vld [vmem:[#allocation6 + $0x60] sm:$0xff]  }
0x171f   :  { %8000 = vmatmul.mubr.bf16.vlgmr.msra.gmra.mxu0 %v5916_v27  ;;  %6122 = vmatmul.mubr.bf16.vlgmr.msra.gmra.mxu1 %v5916_v27  ;;  %v7207_v27 = vcombine.high %v11301_v37, %v11300_v45 }
0x1720   :  { %6514 = vmatpush1.bf16.msra.mxu0 %v7226_v18  ;;  %6473 = vmatpush1.bf16.msra.mxu1 %v7194_v59  ;;  %v7206_v18 = vcombine.low %v11301_v37, %v11300_v45  ;;  %v11302_v59 = vld [vmem:[#allocation51_spill] sm:$0xff]  ;;  %v8630_v45 = vld [vmem:[#allocation6 + $0x18] sm:$0xff]   ;;  %v8631_v37 = vld [vmem:[#allocation6 + $0x50] sm:$0xff]  }
0x1721   :  { %6515 = vmatprep.subr.bf16.mxu0 %v7225_v9  ;;  %6474 = vmatprep.subr.bf16.mxu1 %v7193_v42  ;;  %v7205_v49 = vcombine.high %v11303_v29, %v11302_v59  ;;  %v7204_v9 = vcombine.low %v11303_v29, %v11302_v59  ;;  %v7203_v42 = vcombine.high %v11305_v12, %v11304_v22  ;;  %v8634_v59 = vld [vmem:[#allocation6 + $0x8] sm:$0xff]   ;;  %v8635_v29 = vld [vmem:[#allocation6 + $0x40] sm:$0xff]  }
0x1722   :  { %6545 = vmatprep.mubr.bf16.mxu0 %v11265_v30  ;;  %v7218_v30 = vcombine.low %v11283_v44, %v11282_v39  ;;  %v8621_v39 = vld [vmem:[#allocation6 + $0x78] sm:$0xff]   ;;  %v11314_v44 = vlaneseq }
0x1724   :  { %6516 = vmatpush1.bf16.msra.mxu0 %v7224_v40  ;;  %6475 = vmatpush1.bf16.msra.mxu1 %v7192_v13  ;;  %v7202_v40 = vcombine.low %v11305_v12, %v11304_v22  ;;  %v11306_v13 = vld [vmem:[#allocation47_spill] sm:$0xff] }
0x1725   :  { %6517 = vmatprep.subr.bf16.mxu0 %v7223_v55  ;;  %6476 = vmatprep.subr.bf16.mxu1 %v7191_v31  ;;  %v7201_v48 = vcombine.high %v11307_v28, %v11306_v13  ;;  %v7200_v55 = vcombine.low %v11307_v28, %v11306_v13  ;;  %v11309_v31 = vld [vmem:[#allocation44_spill] sm:$0xff] }
0x1728   :  { %6518 = vmatpush1.bf16.msra.mxu0 %v7222_v10  ;;  %6477 = vmatpush1.bf16.msra.mxu1 %v7190_v63  ;;  %v7199_v10 = vcombine.high %v11309_v31, %v11308_v7  ;;  %v11310_v63 = vld [vmem:[#allocation59_spill] sm:$0xff] }
0x1729   :  { %6519 = vmatprep.subr.bf16.mxu0 %v7221_v36  ;;  %6478 = vmatprep.subr.bf16.mxu1 %v7189_v19  ;;  %v7213_v58 = vcombine.high %v11311_v2, %v11310_v63  ;;  %v7198_v36 = vcombine.low %v11309_v31, %v11308_v7  ;;  %v7212_v15 = vcombine.low %v11311_v2, %v11310_v63  ;;  %v11313_v19 = vld [vmem:[#allocation42_spill] sm:$0xff] }
0x172c   :  { %6520 = vmatpush1.bf16.msra.mxu0 %v7220_v21  ;;  %6479 = vmatpush1.bf16.msra.mxu1 %v7188_v62  ;;  %v7197_v21 = vcombine.high %v11313_v19, %v11312_v17  ;;  %v7196_v62 = vcombine.low %v11313_v19, %v11312_v17 }
0x172d   :  { %6521 = vmatprep.subr.bf16.mxu0 %v7219_v3  ;;  %6480 = vmatprep.subr.bf16.mxu1 %v7187_v53  ;;  %v10862_v3 = vshrl.u32 %v11314_v44, 7 }
0x172f   :  { %v5951_v35 = vsub.s32 0, %v10862_v3  ;;  %v6592_v19 = vsub.s32 2, %v10862_v3 }
0x1730   :  { %6522 = vmatpush1.bf16.msra.mxu0 %v7218_v30  ;;  %6481 = vmatpush1.bf16.msra.mxu1 %v7186_v43  ;;  %v11316_v30 = vld [vmem:[#allocation74_spill] sm:$0xff] }
0x1731   :  { %6523 = vmatprep.subr.bf16.mxu0 %v7217_v1  ;;  %6482 = vmatprep.subr.bf16.mxu1 %v7185_v57  ;;  %v5960_v53 = vrot.slane %v11315_v50, %v5951_v35  ;;  %v5952_v43 = vrot.slane %v11316_v30, %v5951_v35  ;;  %v5956_v1 = vrot.slane %v11317_v14, %v5951_v35 }
0x1734   :  { %6524 = vmatpush1.bf16.msra.mxu0 %v7216_v56  ;;  %6483 = vmatpush1.bf16.msra.mxu1 %v7184_v26 }
0x1735   :  { %6525 = vmatprep.subr.bf16.mxu0 %v7215_v0  ;;  %6484 = vmatprep.subr.bf16.mxu1 %v7183_v46 }
0x1738   :  { %6485 = vmatpush1.bf16.msra.mxu1 %v7182_v16  ;;  %6526 = vmatpush1.bf16.msra.mxu0 %v7214_v8 }
0x1739   :  { %6486 = vmatprep.subr.bf16.mxu1 %v7181_v6  ;;  %6527 = vmatprep.subr.bf16.mxu0 %v7213_v58 }
0x173c   :  { %6487 = vmatpush1.bf16.msra.mxu1 %v7180_v25  ;;  %6528 = vmatpush1.bf16.msra.mxu0 %v7212_v15 }
0x173d   :  { %6488 = vmatprep.subr.bf16.mxu1 %v7211_v24  ;;  %7841 = vmatprep.subr.bf16.mxu0 %v8621_v39  ;;  %v6733_v39 = vsub.s32 4, %v10862_v3 }
0x1740   :  { %6489 = vmatpush2.bf16.msra.mxu1 %v7210_v23  ;;  %v8625_v23 = vld [vmem:[#allocation6 + $0x68] sm:$0xff]  }
0x1741   :  { %6490 = vmatprep.subr.bf16.mxu1 %v7209_v5  ;;  %v8628_v5 = vld [vmem:[#allocation6 + $0x20] sm:$0xff]  }
0x1744   :  { %6491 = vmatpush2.bf16.msra.mxu1 %v7208_v51  ;;  %v8629_v51 = vld [vmem:[#allocation6 + $0x58] sm:$0xff]  }
0x1745   :  { %6492 = vmatprep.subr.bf16.mxu1 %v7207_v27  ;;  %v8632_v27 = vld [vmem:[#allocation6 + $0x10] sm:$0xff]  }
0x1748   :  { %6493 = vmatpush2.bf16.msra.mxu1 %v7206_v18  ;;  %v8633_v18 = vld [vmem:[#allocation6 + $0x48] sm:$0xff]  }
0x1749   :  { %6494 = vmatprep.subr.bf16.mxu1 %v7205_v49  ;;  %v8636_v49 = vld [vmem:[#allocation6] sm:$0xff]  }
0x174c   :  { %6495 = vmatpush2.bf16.msra.mxu1 %v7204_v9  ;;  %v6226_v9 = vsub.s32 1, %v10862_v3 }
0x174d   :  { %6496 = vmatprep.subr.bf16.mxu1 %v7203_v42 }
0x174e   :  { %v6227_v12 = vrot.slane %v11316_v30, %v6226_v9 }
0x1750   :  { %6497 = vmatpush2.bf16.msra.mxu1 %v7202_v40  ;;  %v6231_v40 = vrot.slane %v11317_v14, %v6226_v9 }
0x1751   :  { %6498 = vmatprep.subr.bf16.mxu1 %v7201_v48 }
0x1754   :  { %6499 = vmatpush2.bf16.msra.mxu1 %v7200_v55 }
0x1755   :  { %6500 = vmatprep.subr.bf16.mxu1 %v7199_v10 }
0x1758   :  { %6501 = vmatpush2.bf16.msra.mxu1 %v7198_v36 }
0x1759   :  { %6502 = vmatprep.subr.bf16.mxu1 %v7197_v21 }
0x175c   :  { %6503 = vmatpush2.bf16.msra.mxu1 %v7196_v62  ;;  %v6593_v62 = vrot.slane %v11316_v30, %v6592_v19 }
0x17df   :  { %v6164_v60 = vpop.f32.mrf.mxu0  ;;  %v6123_v61 = vpop.f32.mrf.mxu1 }
0x17e0   :  { %v6165_v54 = vadd.f32 %v6164_v60, %v5960_v53  ;;  %v6124_v57 = vadd.f32 %v6123_v61, %v5952_v43  ;;  %v6734_v43 = vrot.slane %v11316_v30, %v6733_v39  ;;  %v6742_v61 = vsub.s32 3, %v10862_v3 }
0x17e1   :  { %v8001_v56 = vpop.f32.mrf.mxu0  ;;  %v6125_v38 = vpop.f32.mrf.mxu1 }
0x17e2   :  { %v6172_v26 = vmax.f32 %v6165_v54, 0.0  ;;  %v6126_v33 = vadd.f32 %v6125_v38, %v5956_v1  ;;  %v6170_v46 = vmax.f32 %v6124_v57, 0.0  ;;  %v6743_v57 = vrot.slane %v11316_v30, %v6742_v61 }
0x17e3   :  { %v6167_v0 = vpop.f32.mrf.mxu0  ;;  %v6127_v16 = vpop.f32.mrf.mxu1 }
0x17e4   :  { %v6175_v47 = vpack.c.bf16 %v6172_v26, %v6172_v26  ;;  %v6171_v32 = vmax.f32 %v6126_v33, 0.0  ;;  %v6173_v24 = vpack.c.bf16 %v6170_v46, %v6170_v46 }
0x17e5   :  { %v8002_v6 = vpop.f32.mrf.mxu0  ;;  %v6128_v25 = vpop.f32.mrf.mxu1 }
0x17e6   :  { %6546 = vmatmul.mubr.bf16.vlgmr.msra.gmra.mxu0 %v6175_v47  ;;  %v6174_v4 = vpack.c.bf16 %v6171_v32, %v6171_v32 }
0x17e7   :  { %7842 = vmatpush3.bf16.msra.mxu0 %v8622_v41 }
0x17e8   :  { %7843 = vmatprep.subr.bf16.mxu0 %v8623_v52  ;;  %6504 = vmatprep.mubr.bf16.mxu1 %v6174_v4 }
0x17e9   :  { %6505 = vmatmul.mubr.bf16.vlgmr.msra.gmra.mxu1 %v6173_v24 }
0x17eb   :  { %7844 = vmatpush3.bf16.msra.mxu0 %v8624_v11 }
0x17ec   :  { %7845 = vmatprep.subr.bf16.mxu0 %v8625_v23 }
0x17ef   :  { %7846 = vmatpush3.bf16.msra.mxu0 %v8626_v34 }
0x17f0   :  { %7847 = vmatprep.subr.bf16.mxu0 %v8627_v20 }
0x17f3   :  { %7848 = vmatpush3.bf16.msra.mxu0 %v8628_v5 }
0x17f4   :  { %7849 = vmatprep.subr.bf16.mxu0 %v8629_v51 }
0x17f7   :  { %7850 = vmatpush3.bf16.msra.mxu0 %v8630_v45 }
0x17f8   :  { %7851 = vmatprep.subr.bf16.mxu0 %v8631_v37 }
0x17fb   :  { %7852 = vmatpush3.bf16.msra.mxu0 %v8632_v27 }
0x17fc   :  { %7853 = vmatprep.subr.bf16.mxu0 %v8633_v18 }
0x17ff   :  { %7854 = vmatpush3.bf16.msra.mxu0 %v8634_v59 }
0x1800   :  { %7855 = vmatprep.subr.bf16.mxu0 %v8635_v29 }
0x1803   :  { %7856 = vmatpush3.bf16.msra.mxu0 %v8636_v49 }
0x18a6   :  { %v6547_v22 = vpop.f32.mrf.mxu0 }
0x18a8   :  { %v6549_v42 = vpop.f32.mrf.mxu0 }
0x18a9   :  { %v6506_v13 = vpop.f32.mrf.mxu1 }
0x18aa   :  { %v6551_v28 = vpop.f32.mrf.mxu0  ;;  %v6507_v48 = vadd.f32 %v6506_v13, %v6227_v12 }
0x18ab   :  { %v6508_v55 = vpop.f32.mrf.mxu1 }
0x18ac   :  { %v6552_v8 = vpop.f32.mrf.mxu0  ;;  %v6548_v7 = vadd.f32 %v6547_v22, %v6507_v48  ;;  %v6509_v31 = vadd.f32 %v6508_v55, %v6231_v40 }
0x18ad   :  { %v6510_v10 = vpop.f32.mrf.mxu1 }
0x18ae   :  { %v6550_v63 = vadd.f32 %v6549_v42, %v6509_v31  ;;  %v6554_v2 = vmax.f32 %v6548_v7, 0.0 }
0x18af   :  { %v6511_v58 = vpop.f32.mrf.mxu1 }
0x18b0   :  { %v6555_v36 = vmax.f32 %v6550_v63, 0.0  ;;  %v6556_v17 = vpack.c.bf16 %v6554_v2, %v6554_v2 }
0x18b2   :  { %v6557_v15 = vpack.c.bf16 %v6555_v36, %v6555_v36 }
0x18b4   :  { %6722 = vmatprep.mubr.bf16.mxu0 %v6557_v15 }
0x18b5   :  { %6723 = vmatmul.mubr.bf16.vlgmr.msra.gmra.mxu0 %v6556_v17 }
0x1975   :  { %v7857_v21 = vpop.f32.mrf.mxu0 }
0x1977   :  { %v7858_v44 = vpop.f32.mrf.mxu0 }
0x1978   :  { %v7859_v35 = vadd.f32 %v7858_v44, %v7857_v21 }
0x1979   :  { %v7860_v50 = vpop.f32.mrf.mxu0 }
0x197a   :  { %v6725_v53 = vadd.f32 %v7859_v35, %v6593_v62 }
0x197b   :  { %v7861_v60 = vpop.f32.mrf.mxu0 }
0x197c   :  { %v6730_v14 = vmax.f32 %v6725_v53, 0.0 }
0x197e   :  { %v6735_v1 = vmul.f32 %v6734_v43, %v6730_v14 }
0x1980   :  { %v6737_v54 = vsel %vm6736_vm3, %v6735_v1, 0.0 }
0x1981   :  { %6738 = vadd.xlane.f32.xlu0 %v6737_v54 }
0x1a0a   :  { %v6739_v56 = vpop.xlane.xlu0 %6738 }
0x1a0b   :  { %v6744_v26 = vadd.f32 %v6743_v57, %v6739_v56 }
0x1a0d   :  { %6746 = vst.msk [vmem:[%s10887_s8] sm:$0x3] %vm6745_vm4, %v6744_v26 }
0x1a0e   :  { %6751 = vsyncmov [#allocation8] }
0x1a11   :  { %s6752_s20 = vpop.sfrf %6751 }
0x1a12   :  { %p7244_p1 = scmp.ne.s32.totalorder %s6752_s20, 0 }
0x1a14   :  { %6756 = shalt.err (%p7244_p1)  }
0x1a15   :  { %6758 = vsyncmov [#allocation8 + $0x1] }
0x1a18   :  { %s6759_s4 = vpop.sfrf %6758 }
0x1a19   :  { %p7245_p2 = scmp.ne.s32.totalorder %s6759_s4, 0 }
0x1a1b   :  { %6763 = shalt.err (%p7245_p2)  }
0x1a1c   :  { %6765 = vsyncmov [#allocation8 + $0x2] }
0x1a1f   :  { %s6766_s21 = vpop.sfrf %6765 }
0x1a20   :  { %p7246_p3 = scmp.ne.s32.totalorder %s6766_s21, 0 }
0x1a22   :  { %6770 = shalt.err (%p7246_p3)  }
0x1a23   :  { %6772 = vsyncmov [#allocation8 + $0x3] }
0x1a26   :  { %s6773_s22 = vpop.sfrf %6772 }
0x1a27   :  { %p7247_p4 = scmp.ne.s32.totalorder %s6773_s22, 0 }
0x1a29   :  { %6777 = shalt.err (%p7247_p4)  }
0x1a2a   :  { %6779 = vsyncmov [#allocation8 + $0x4] }
0x1a2d   :  { %s6780_s23 = vpop.sfrf %6779 }
0x1a2e   :  { %p7248_p5 = scmp.ne.s32.totalorder %s6780_s23, 0 }
0x1a30   :  { %6784 = shalt.err (%p7248_p5)  }
0x1a31   :  { %6786 = vsyncmov [#allocation8 + $0x5] }
0x1a34   :  { %s6787_s8 = vpop.sfrf %6786 }
0x1a35   :  { %p7249_p6 = scmp.ne.s32.totalorder %s6787_s8, 0 }
0x1a37   :  { %6791 = shalt.err (%p7249_p6)  }

</bundles_post_ra>
